<compile_context>
chip_gen: v6e
topology: v6e:2x2x1
jax: 0.10.0
libtpu: 0.0.40
codegen_flags: <defaults>
</compile_context>

<pallas_src>
import functools
import math

import numpy as np

import jax
import jax.numpy as jnp
from jax.experimental import pallas as pl
from jax.experimental.pallas import tpu as pltpu


# ----------------------------------------------------------------------------
# In-kernel helpers
# ----------------------------------------------------------------------------

def _load(slab_ref, entry):
    """Load one packed parameter from the weight slab (static slice)."""
    off, rows, cols = entry
    return slab_ref[off:off + rows, 0:cols]


def _attn(slab_ref, x, ctx, p, heads, dim_head):
    """Linformer attention, head-fused projections.

    x   : (n_x, dim)      queries input
    ctx : (n_ctx, dim)    context
    p   : dict of slab entries (wq has the softmax scale folded in,
          pk_t/pv_t are pre-transposed projections (kproj, n_ctx)).
    """
    wq = _load(slab_ref, p["wq"])        # (dim, inner)
    wk = _load(slab_ref, p["wk"])        # (dim, inner)
    wv = _load(slab_ref, p["wv"])        # (dim, inner)
    pk_t = _load(slab_ref, p["pk_t"])    # (kproj, n_ctx)
    pv_t = _load(slab_ref, p["pv_t"])    # (kproj, n_ctx)
    wo = _load(slab_ref, p["wo"])        # (inner, dim)
    bo = _load(slab_ref, p["bo"])        # (1, dim)

    # Dense, head-fused projections: single 2-D MXU matmuls.
    q2 = jnp.dot(x, wq, preferred_element_type=jnp.float32)       # (n_x, inner)
    k2 = jnp.dot(ctx, wk, preferred_element_type=jnp.float32)     # (n_ctx, inner)
    v2 = jnp.dot(ctx, wv, preferred_element_type=jnp.float32)     # (n_ctx, inner)

    # Linformer length projection, shared across heads: one matmul each.
    kp = jnp.dot(pk_t, k2, preferred_element_type=jnp.float32)    # (kproj, inner)
    vp = jnp.dot(pv_t, v2, preferred_element_type=jnp.float32)    # (kproj, inner)

    # Scores / A@V need a per-head view; take static lane slices (inner is
    # head-major: columns [h*dh, (h+1)*dh) belong to head h).
    head_outs = []
    for h in range(heads):
        sl = slice(h * dim_head, (h + 1) * dim_head)
        s = jnp.einsum("ne,ke->nk", q2[:, sl], kp[:, sl],
                       preferred_element_type=jnp.float32)         # (n_x, kproj)
        m = jnp.max(s, axis=-1, keepdims=True)
        e = jnp.exp(s - m)
        denom = jnp.sum(e, axis=-1, keepdims=True)
        a = e * pl.reciprocal(denom, approx=True) + 1e-6            # softmax + 1e-6
        head_outs.append(jnp.dot(a, vp[:, sl],
                                 preferred_element_type=jnp.float32))  # (n_x, dh)
    o2 = head_outs[0] if heads == 1 else jnp.concatenate(head_outs, axis=-1)

    # Output projection: one dense 2-D matmul over inner.
    return jnp.dot(o2, wo, preferred_element_type=jnp.float32) + bo


def _ff(slab_ref, x, p, eps):
    """LayerNorm -> Linear -> GELU(exact erf), eval mode."""
    g = _load(slab_ref, p["ln_g"])       # (1, dim)
    beta = _load(slab_ref, p["ln_b"])    # (1, dim)
    w = _load(slab_ref, p["w"])          # (dim, dim)
    b = _load(slab_ref, p["b"])          # (1, dim)

    mu = jnp.mean(x, axis=-1, keepdims=True)
    xc = x - mu
    var = jnp.mean(xc * xc, axis=-1, keepdims=True)
    y = xc * jax.lax.rsqrt(var + eps) * g + beta
    z = jnp.dot(y, w, preferred_element_type=jnp.float32) + b
    # PyTorch nn.GELU() default: exact erf form.
    return 0.5 * z * (1.0 + jax.lax.erf(z * (1.0 / math.sqrt(2.0))))


# ----------------------------------------------------------------------------
# Fused kernel: full PerceiverIOLinstyle forward (all batch elements)
# ----------------------------------------------------------------------------

def _fused_perceiver_kernel(data_ref, queries_ref, slab_ref, out_ref, *,
                            plan, batch, depth, cross_heads, cross_dim_head,
                            latent_heads, latent_dim_head, has_decoder_ff, eps):
    lat0 = _load(slab_ref, plan["latents"])            # (num_latents, latent_dim)
    wl = _load(slab_ref, plan["logits_w"])              # (queries_dim, ld_pad)
    bl = _load(slab_ref, plan["logits_b"])              # (1, ld_pad)

    # Batch is small & static -> unrolled here (no per-grid-step overhead).
    for bi in range(batch):
        data_b = data_ref[bi]                           # (seq_len, latent_dim)
        q_b = queries_ref[bi]                           # (n_q, queries_dim)

        x = _attn(slab_ref, lat0, data_b, plan["cross_attn"],
                  cross_heads, cross_dim_head) + lat0
        x = _ff(slab_ref, x, plan["cross_ff"], eps) + x
        for li in range(depth):
            lyr = plan["layers"][li]
            x = _attn(slab_ref, x, x, lyr["attn"],
                      latent_heads, latent_dim_head) + x
            x = _ff(slab_ref, x, lyr["ff"], eps) + x

        lat = _attn(slab_ref, q_b, x, plan["dec_attn"],
                    cross_heads, cross_dim_head)
        if has_decoder_ff:
            lat = lat + _ff(slab_ref, lat, plan["dec_ff"], eps)

        # Lane-dense (padded to 128) logits store.
        out_ref[bi] = jnp.dot(lat, wl, preferred_element_type=jnp.float32) + bl


# ----------------------------------------------------------------------------
# Host-side parameter packing (layout plumbing, done once)
# ----------------------------------------------------------------------------

def prepare_kernel_params(params, cfg):
    """Re-arrange + pack ALL weights into one lane-dense f32 slab.

    Returns (slab, plan, ld_pad) where `plan` mirrors the network structure
    with (row_offset, rows, cols) entries into the slab.
    """
    def prep_attn(p, heads, dim_head):
        inner = heads * dim_head
        scale = dim_head ** (-0.5)
        return dict(
            wq=p["wq"] * scale,               # fold softmax scale into Q weights
            wk=p["wkv"][:, :inner],
            wv=p["wkv"][:, inner:],
            pk_t=p["proj_k"].T,                # (kproj, n_ctx)
            pv_t=p["proj_v"].T,
            wo=p["wo"],
            bo=p["bo"],
        )

    def prep_ff(p):
        return dict(ln_g=p["ln_g"], ln_b=p["ln_b"], w=p["w"], b=p["b"])

    logits_dim = cfg["logits_dim"]
    ld_pad = max(128, ((logits_dim + 127) // 128) * 128)
    qd = params["to_logits"]["w"].shape[0]
    wl = jnp.zeros((qd, ld_pad), jnp.float32).at[:, :logits_dim].set(params["to_logits"]["w"])
    bl = jnp.zeros((1, ld_pad), jnp.float32).at[:, :logits_dim].set(params["to_logits"]["b"])

    tree = dict(
        latents=params["latents"],
        cross_attn=prep_attn(params["cross_attn"], cfg["cross_heads"], cfg["cross_dim_head"]),
        cross_ff=prep_ff(params["cross_ff"]),
        layers=[dict(attn=prep_attn(l["attn"], cfg["latent_heads"], cfg["latent_dim_head"]),
                     ff=prep_ff(l["ff"])) for l in params["layers"]],
        dec_attn=prep_attn(params["decoder_cross_attn"], cfg["cross_heads"], cfg["cross_dim_head"]),
        dec_ff=prep_ff(params["decoder_ff"]) if params["decoder_ff"] is not None else None,
        logits_w=wl,
        logits_b=bl,
    )

    leaves, treedef = jax.tree_util.tree_flatten(tree)

    # One lane-dense slab: width = 128-multiple covering the widest param,
    # each param's row block starts on an 8-row (sublane) boundary.
    width = 128
    for a in leaves:
        width = max(width, ((a.shape[-1] + 127) // 128) * 128)

    entries, blocks, row = [], [], 0
    for a in leaves:
        a_np = np.asarray(a, dtype=np.float32)
        r, c = a_np.shape
        rp = ((r + 7) // 8) * 8
        blk = np.zeros((rp, width), np.float32)
        blk[:r, :c] = a_np
        blocks.append(blk)
        entries.append((row, r, c))
        row += rp

    slab = jnp.asarray(np.concatenate(blocks, axis=0))          # (total_rows, width)
    plan = jax.tree_util.tree_unflatten(treedef, entries)
    return slab, plan, ld_pad


# ----------------------------------------------------------------------------
# pallas_call wrapper: full forward in one launch
# ----------------------------------------------------------------------------

def perceiver_io_linstyle_forward(data, queries, params, cfg):
    b, seq_len, latent_dim = data.shape
    _, n_q, queries_dim = queries.shape

    slab, plan, ld_pad = prepare_kernel_params(params, cfg)

    kernel = functools.partial(
        _fused_perceiver_kernel,
        plan=plan,
        batch=b,
        depth=cfg["depth"],
        cross_heads=cfg["cross_heads"],
        cross_dim_head=cfg["cross_dim_head"],
        latent_heads=cfg["latent_heads"],
        latent_dim_head=cfg["latent_dim_head"],
        has_decoder_ff=params["decoder_ff"] is not None,
        eps=1e-5,
    )

    vmem = pl.BlockSpec(memory_space=pltpu.MemorySpace.VMEM)
    out = pl.pallas_call(
        kernel,
        out_shape=jax.ShapeDtypeStruct((b, n_q, ld_pad), jnp.float32),
        in_specs=[vmem, vmem, vmem],          # data, queries, weight slab
        out_specs=pl.BlockSpec(memory_space=pltpu.MemorySpace.VMEM),
    )(data, queries, slab)

    return out[:, :, :cfg["logits_dim"]]


# ----------------------------------------------------------------------------
# Parameter init (deterministic, synthetic) — canonical (PyTorch-like) layout
# ----------------------------------------------------------------------------

def init_linformer_params(key, dim, seq_len, kproj, heads, dim_head, w_scale=0.1):
    inner = heads * dim_head
    ks = jax.random.split(key, 5)
    return dict(
        wq=jax.random.normal(ks[0], (dim, inner), jnp.float32) * w_scale,
        wkv=jax.random.normal(ks[1], (dim, 2 * inner), jnp.float32) * w_scale,
        proj_k=jax.random.normal(ks[2], (seq_len, kproj), jnp.float32),
        proj_v=jax.random.normal(ks[3], (seq_len, kproj), jnp.float32),
        wo=jax.random.normal(ks[4], (inner, dim), jnp.float32) * w_scale,
        bo=jnp.zeros((1, dim), jnp.float32),
    )


def init_ff_params(key, dim, w_scale=0.1):
    return dict(
        ln_g=jnp.ones((1, dim), jnp.float32),
        ln_b=jnp.zeros((1, dim), jnp.float32),
        w=jax.random.normal(key, (dim, dim), jnp.float32) * w_scale,
        b=jnp.zeros((1, dim), jnp.float32),
    )


def init_perceiver_params(key, *, depth, queries_dim, logits_dim, num_latents,
                          latent_dim, cross_heads, latent_heads, cross_dim_head,
                          latent_dim_head, seq_len, kproj, decoder_ff):
    # decoder to_kv consumes latents of width latent_dim with a queries_dim-wide
    # weight (same constraint as the PyTorch module).
    assert queries_dim == latent_dim, "queries_dim must equal latent_dim"
    keys = jax.random.split(key, 6 + 2 * depth)
    params = dict(
        latents=jax.random.normal(keys[0], (num_latents, latent_dim), jnp.float32),
        cross_attn=init_linformer_params(keys[1], latent_dim, seq_len, kproj,
                                         cross_heads, cross_dim_head),
        cross_ff=init_ff_params(keys[2], latent_dim),
        layers=[],
        decoder_cross_attn=init_linformer_params(keys[3], queries_dim, num_latents,
                                                 kproj, cross_heads, cross_dim_head),
        decoder_ff=init_ff_params(keys[4], queries_dim) if decoder_ff else None,
        to_logits=dict(
            w=jax.random.normal(keys[5], (queries_dim, logits_dim), jnp.float32) * 0.1,
            b=jnp.zeros((1, logits_dim), jnp.float32),
        ),
    )
    for i in range(depth):
        params["layers"].append(dict(
            attn=init_linformer_params(keys[6 + 2 * i], latent_dim, num_latents,
                                       kproj, latent_heads, latent_dim_head),
            ff=init_ff_params(keys[7 + 2 * i], latent_dim),
        ))
    return params


# ----------------------------------------------------------------------------
# Pure-JAX reference (mirrors the PyTorch forward, eval mode)
# ----------------------------------------------------------------------------

def _ref_attn(x, context, p, heads, dim_head):
    inner = heads * dim_head
    q = x @ p["wq"]
    kv = context @ p["wkv"]
    k_, v_ = kv[..., :inner], kv[..., inner:]
    k_ = jnp.einsum("bnd,nk->bkd", k_, p["proj_k"])
    v_ = jnp.einsum("bnd,nk->bkd", v_, p["proj_v"])

    def split(t):
        bb, nn, _ = t.shape
        return t.reshape(bb, nn, heads, dim_head).transpose(0, 2, 1, 3)

    qh, kh, vh = split(q), split(k_), split(v_)
    attn = jnp.einsum("bhnd,bhkd->bhnk", qh, kh) * dim_head ** (-0.5)
    attn = jax.nn.softmax(attn, axis=-1) + 1e-6
    out = jnp.einsum("bhnk,bhkd->bhnd", attn, vh)
    out = out.transpose(0, 2, 1, 3).reshape(x.shape[0], x.shape[1], inner)
    return out @ p["wo"] + p["bo"][0]


def _ref_ff(x, p, eps=1e-5):
    mu = jnp.mean(x, axis=-1, keepdims=True)
    xc = x - mu
    var = jnp.mean(xc * xc, axis=-1, keepdims=True)
    y = xc * jax.lax.rsqrt(var + eps) * p["ln_g"][0] + p["ln_b"][0]
    z = y @ p["w"] + p["b"][0]
    return 0.5 * z * (1.0 + jax.lax.erf(z / math.sqrt(2.0)))


def _ref_forward(data, queries, params, cfg):
    b = data.shape[0]
    x = jnp.broadcast_to(params["latents"][None], (b,) + params["latents"].shape)
    x = _ref_attn(x, data, params["cross_attn"], cfg["cross_heads"], cfg["cross_dim_head"]) + x
    x = _ref_ff(x, params["cross_ff"]) + x
    for layer in params["layers"]:
        x = _ref_attn(x, x, layer["attn"], cfg["latent_heads"], cfg["latent_dim_head"]) + x
        x = _ref_ff(x, layer["ff"]) + x
    latents = _ref_attn(queries, x, params["decoder_cross_attn"],
                        cfg["cross_heads"], cfg["cross_dim_head"])
    if params["decoder_ff"] is not None:
        latents = latents + _ref_ff(latents, params["decoder_ff"])
    return latents @ params["to_logits"]["w"] + params["to_logits"]["b"][0]


# ----------------------------------------------------------------------------
# Main
# ----------------------------------------------------------------------------

if __name__ == "__main__":
    cfg = dict(
        depth=2,
        queries_dim=32,       # must equal latent_dim (decoder to_kv consumes latents)
        logits_dim=10,
        num_latents=8,
        latent_dim=32,
        cross_heads=1,
        latent_heads=4,
        cross_dim_head=16,
        latent_dim_head=8,
        seq_len=16,
        kproj=8,
        decoder_ff=True,
    )

    key = jax.random.PRNGKey(0)
    k_params, k_data, k_queries = jax.random.split(key, 3)

    params = init_perceiver_params(k_params, **cfg)

    batch = 2
    n_queries = 8
    data = jax.random.normal(k_data, (batch, cfg["seq_len"], cfg["latent_dim"]), jnp.float32)
    queries = jax.random.normal(k_queries, (batch, n_queries, cfg["queries_dim"]), jnp.float32)

    out = perceiver_io_linstyle_forward(data, queries, params, cfg)
    out = jax.block_until_ready(out)

    ref = _ref_forward(data, queries, params, cfg)
    assert out.shape == (batch, n_queries, cfg["logits_dim"])
    assert bool(jnp.all(jnp.isfinite(out)))
    assert bool(jnp.allclose(out, ref, rtol=1e-2, atol=1e-2)), (
        f"max abs diff {float(jnp.max(jnp.abs(out - ref)))}")

    print("KERNEL_OK")
</pallas_src>

<mosaic_0001>
module attributes {stable_mosaic.version = 11 : i64} {
  func.func @_fused_perceiver_kernel(%arg0: memref<2x16x32xf32, #tpu.memory_space<vmem>>, %arg1: memref<2x8x32xf32, #tpu.memory_space<vmem>>, %arg2: memref<848x128xf32, #tpu.memory_space<vmem>>, %arg3: memref<2x8x128xf32, #tpu.memory_space<vmem>>) attributes {dimension_semantics = [], scalar_prefetch = 0 : i64, scratch_operands = 0 : i64, tpu.core_type = #tpu.core_type<tc>} {
    %c384 = arith.constant 384 : index
    %c0 = arith.constant 0 : index
    %0 = vector.load %arg2[%c384, %c0] : memref<848x128xf32, #tpu.memory_space<vmem>>, vector<8x32xf32>
    %c816 = arith.constant 816 : index
    %c0_0 = arith.constant 0 : index
    %1 = vector.load %arg2[%c816, %c0_0] : memref<848x128xf32, #tpu.memory_space<vmem>>, vector<32x128xf32>
    %c808 = arith.constant 808 : index
    %c0_1 = arith.constant 0 : index
    %2 = vector.load %arg2[%c808, %c0_1] : memref<848x128xf32, #tpu.memory_space<vmem>>, vector<1x128xf32>
    %c0_2 = arith.constant 0 : index
    %c0_3 = arith.constant 0 : index
    %c0_4 = arith.constant 0 : index
    %3 = vector.load %arg0[%c0_2, %c0_3, %c0_4] : memref<2x16x32xf32, #tpu.memory_space<vmem>>, vector<1x16x32xf32>
    %4 = vector.shape_cast %3 : vector<1x16x32xf32> to vector<16x32xf32>
    %c0_5 = arith.constant 0 : index
    %c0_6 = arith.constant 0 : index
    %c0_7 = arith.constant 0 : index
    %5 = vector.load %arg1[%c0_5, %c0_6, %c0_7] : memref<2x8x32xf32, #tpu.memory_space<vmem>>, vector<1x8x32xf32>
    %6 = vector.shape_cast %5 : vector<1x8x32xf32> to vector<8x32xf32>
    %c72 = arith.constant 72 : index
    %c0_8 = arith.constant 0 : index
    %7 = vector.load %arg2[%c72, %c0_8] : memref<848x128xf32, #tpu.memory_space<vmem>>, vector<32x16xf32>
    %c24 = arith.constant 24 : index
    %c0_9 = arith.constant 0 : index
    %8 = vector.load %arg2[%c24, %c0_9] : memref<848x128xf32, #tpu.memory_space<vmem>>, vector<32x16xf32>
    %c104 = arith.constant 104 : index
    %c0_10 = arith.constant 0 : index
    %9 = vector.load %arg2[%c104, %c0_10] : memref<848x128xf32, #tpu.memory_space<vmem>>, vector<32x16xf32>
    %c8 = arith.constant 8 : index
    %c0_11 = arith.constant 0 : index
    %10 = vector.load %arg2[%c8, %c0_11] : memref<848x128xf32, #tpu.memory_space<vmem>>, vector<8x16xf32>
    %c16 = arith.constant 16 : index
    %c0_12 = arith.constant 0 : index
    %11 = vector.load %arg2[%c16, %c0_12] : memref<848x128xf32, #tpu.memory_space<vmem>>, vector<8x16xf32>
    %c56 = arith.constant 56 : index
    %c0_13 = arith.constant 0 : index
    %12 = vector.load %arg2[%c56, %c0_13] : memref<848x128xf32, #tpu.memory_space<vmem>>, vector<16x32xf32>
    %c0_14 = arith.constant 0 : index
    %c0_15 = arith.constant 0 : index
    %13 = vector.load %arg2[%c0_14, %c0_15] : memref<848x128xf32, #tpu.memory_space<vmem>>, vector<1x32xf32>
    %cst = arith.constant dense<0.000000e+00> : vector<8x16xf32>
    %14 = tpu.matmul %0, %7, %cst {dimension_numbers = #tpu.dot_dimension_numbers<[1], [0], [0], [1], [0, 0, 1, 1], [], []>} : vector<8x32xf32>, vector<32x16xf32>, vector<8x16xf32> -> vector<8x16xf32>
    %cst_16 = arith.constant dense<0.000000e+00> : vector<16x16xf32>
    %15 = tpu.matmul %4, %8, %cst_16 {dimension_numbers = #tpu.dot_dimension_numbers<[1], [0], [0], [1], [0, 0, 1, 1], [], []>} : vector<16x32xf32>, vector<32x16xf32>, vector<16x16xf32> -> vector<16x16xf32>
    %cst_17 = arith.constant dense<0.000000e+00> : vector<16x16xf32>
    %16 = tpu.matmul %4, %9, %cst_17 {dimension_numbers = #tpu.dot_dimension_numbers<[1], [0], [0], [1], [0, 0, 1, 1], [], []>} : vector<16x32xf32>, vector<32x16xf32>, vector<16x16xf32> -> vector<16x16xf32>
    %cst_18 = arith.constant dense<0.000000e+00> : vector<8x16xf32>
    %17 = tpu.matmul %10, %15, %cst_18 {dimension_numbers = #tpu.dot_dimension_numbers<[1], [0], [0], [1], [0, 0, 1, 1], [], []>} : vector<8x16xf32>, vector<16x16xf32>, vector<8x16xf32> -> vector<8x16xf32>
    %cst_19 = arith.constant dense<0.000000e+00> : vector<8x16xf32>
    %18 = tpu.matmul %11, %16, %cst_19 {dimension_numbers = #tpu.dot_dimension_numbers<[1], [0], [0], [1], [0, 0, 1, 1], [], []>} : vector<8x16xf32>, vector<16x16xf32>, vector<8x16xf32> -> vector<8x16xf32>
    "tpu.trace_start"() <{level = 10 : i32, message = "ne,ke->nk"}> : () -> ()
    %cst_20 = arith.constant dense<0.000000e+00> : vector<8x8xf32>
    %19 = tpu.matmul %14, %17, %cst_20 {dimension_numbers = #tpu.dot_dimension_numbers<[1], [1], [0], [0], [0, 0, 1, 0], [], []>} : vector<8x16xf32>, vector<8x16xf32>, vector<8x8xf32> -> vector<8x8xf32>
    "tpu.trace_stop"() : () -> ()
    %cst_21 = arith.constant dense<0xFF800000> : vector<8xf32>
    %20 = vector.multi_reduction <maximumf>, %19, %cst_21 [1] : vector<8x8xf32> to vector<8xf32>
    %21 = vector.shape_cast %20 : vector<8xf32> to vector<8x1xf32>
    %22 = vector.broadcast %21 : vector<8x1xf32> to vector<8x8xf32>
    %23 = arith.subf %19, %22 : vector<8x8xf32>
    %24 = math.exp %23 : vector<8x8xf32>
    %cst_22 = arith.constant dense<0.000000e+00> : vector<8xf32>
    %25 = vector.multi_reduction <add>, %24, %cst_22 [1] : vector<8x8xf32> to vector<8xf32>
    %26 = vector.shape_cast %25 : vector<8xf32> to vector<8x1xf32>
    %27 = tpu.reciprocal %26 {approx = true} : vector<8x1xf32> -> vector<8x1xf32>
    %28 = vector.broadcast %27 : vector<8x1xf32> to vector<8x8xf32>
    %29 = arith.mulf %24, %28 : vector<8x8xf32>
    %cst_23 = arith.constant 9.99999997E-7 : f32
    %30 = vector.broadcast %cst_23 : f32 to vector<8x8xf32>
    %31 = arith.addf %29, %30 : vector<8x8xf32>
    %cst_24 = arith.constant dense<0.000000e+00> : vector<8x16xf32>
    %32 = tpu.matmul %31, %18, %cst_24 {dimension_numbers = #tpu.dot_dimension_numbers<[1], [0], [0], [1], [0, 0, 1, 1], [], []>} : vector<8x8xf32>, vector<8x16xf32>, vector<8x16xf32> -> vector<8x16xf32>
    %cst_25 = arith.constant dense<0.000000e+00> : vector<8x32xf32>
    %33 = tpu.matmul %32, %12, %cst_25 {dimension_numbers = #tpu.dot_dimension_numbers<[1], [0], [0], [1], [0, 0, 1, 1], [], []>} : vector<8x16xf32>, vector<16x32xf32>, vector<8x32xf32> -> vector<8x32xf32>
    %34 = vector.broadcast %13 : vector<1x32xf32> to vector<8x32xf32>
    %35 = arith.addf %33, %34 : vector<8x32xf32>
    %36 = arith.addf %35, %0 : vector<8x32xf32>
    %c152 = arith.constant 152 : index
    %c0_26 = arith.constant 0 : index
    %37 = vector.load %arg2[%c152, %c0_26] : memref<848x128xf32, #tpu.memory_space<vmem>>, vector<1x32xf32>
    %c144 = arith.constant 144 : index
    %c0_27 = arith.constant 0 : index
    %38 = vector.load %arg2[%c144, %c0_27] : memref<848x128xf32, #tpu.memory_space<vmem>>, vector<1x32xf32>
    %c160 = arith.constant 160 : index
    %c0_28 = arith.constant 0 : index
    %39 = vector.load %arg2[%c160, %c0_28] : memref<848x128xf32, #tpu.memory_space<vmem>>, vector<32x32xf32>
    %c136 = arith.constant 136 : index
    %c0_29 = arith.constant 0 : index
    %40 = vector.load %arg2[%c136, %c0_29] : memref<848x128xf32, #tpu.memory_space<vmem>>, vector<1x32xf32>
    %cst_30 = arith.constant dense<0.000000e+00> : vector<8xf32>
    %41 = vector.multi_reduction <add>, %36, %cst_30 [1] : vector<8x32xf32> to vector<8xf32>
    %42 = vector.shape_cast %41 : vector<8xf32> to vector<8x1xf32>
    %cst_31 = arith.constant 3.200000e+01 : f32
    %43 = vector.broadcast %cst_31 : f32 to vector<8x1xf32>
    %44 = arith.divf %42, %43 : vector<8x1xf32>
    %45 = vector.broadcast %44 : vector<8x1xf32> to vector<8x32xf32>
    %46 = arith.subf %36, %45 : vector<8x32xf32>
    %47 = arith.mulf %46, %46 : vector<8x32xf32>
    %cst_32 = arith.constant dense<0.000000e+00> : vector<8xf32>
    %48 = vector.multi_reduction <add>, %47, %cst_32 [1] : vector<8x32xf32> to vector<8xf32>
    %49 = vector.shape_cast %48 : vector<8xf32> to vector<8x1xf32>
    %cst_33 = arith.constant 3.200000e+01 : f32
    %50 = vector.broadcast %cst_33 : f32 to vector<8x1xf32>
    %51 = arith.divf %49, %50 : vector<8x1xf32>
    %cst_34 = arith.constant 9.99999974E-6 : f32
    %52 = vector.broadcast %cst_34 : f32 to vector<8x1xf32>
    %53 = arith.addf %51, %52 : vector<8x1xf32>
    %54 = math.rsqrt %53 : vector<8x1xf32>
    %55 = vector.broadcast %54 : vector<8x1xf32> to vector<8x32xf32>
    %56 = arith.mulf %46, %55 : vector<8x32xf32>
    %57 = vector.broadcast %37 : vector<1x32xf32> to vector<8x32xf32>
    %58 = arith.mulf %56, %57 : vector<8x32xf32>
    %59 = vector.broadcast %38 : vector<1x32xf32> to vector<8x32xf32>
    %60 = arith.addf %58, %59 : vector<8x32xf32>
    %cst_35 = arith.constant dense<0.000000e+00> : vector<8x32xf32>
    %61 = tpu.matmul %60, %39, %cst_35 {dimension_numbers = #tpu.dot_dimension_numbers<[1], [0], [0], [1], [0, 0, 1, 1], [], []>} : vector<8x32xf32>, vector<32x32xf32>, vector<8x32xf32> -> vector<8x32xf32>
    %62 = vector.broadcast %40 : vector<1x32xf32> to vector<8x32xf32>
    %63 = arith.addf %61, %62 : vector<8x32xf32>
    %cst_36 = arith.constant 5.000000e-01 : f32
    %64 = vector.broadcast %cst_36 : f32 to vector<8x32xf32>
    %65 = arith.mulf %64, %63 : vector<8x32xf32>
    %cst_37 = arith.constant 0.707106769 : f32
    %66 = vector.broadcast %cst_37 : f32 to vector<8x32xf32>
    %67 = arith.mulf %63, %66 : vector<8x32xf32>
    %68 = math.erf %67 : vector<8x32xf32>
    %cst_38 = arith.constant 1.000000e+00 : f32
    %69 = vector.broadcast %cst_38 : f32 to vector<8x32xf32>
    %70 = arith.addf %69, %68 : vector<8x32xf32>
    %71 = arith.mulf %65, %70 : vector<8x32xf32>
    %72 = arith.addf %71, %36 : vector<8x32xf32>
    %c480 = arith.constant 480 : index
    %c0_39 = arith.constant 0 : index
    %73 = vector.load %arg2[%c480, %c0_39] : memref<848x128xf32, #tpu.memory_space<vmem>>, vector<32x32xf32>
    %c416 = arith.constant 416 : index
    %c0_40 = arith.constant 0 : index
    %74 = vector.load %arg2[%c416, %c0_40] : memref<848x128xf32, #tpu.memory_space<vmem>>, vector<32x32xf32>
    %c512 = arith.constant 512 : index
    %c0_41 = arith.constant 0 : index
    %75 = vector.load %arg2[%c512, %c0_41] : memref<848x128xf32, #tpu.memory_space<vmem>>, vector<32x32xf32>
    %c400 = arith.constant 400 : index
    %c0_42 = arith.constant 0 : index
    %76 = vector.load %arg2[%c400, %c0_42] : memref<848x128xf32, #tpu.memory_space<vmem>>, vector<8x8xf32>
    %c408 = arith.constant 408 : index
    %c0_43 = arith.constant 0 : index
    %77 = vector.load %arg2[%c408, %c0_43] : memref<848x128xf32, #tpu.memory_space<vmem>>, vector<8x8xf32>
    %c448 = arith.constant 448 : index
    %c0_44 = arith.constant 0 : index
    %78 = vector.load %arg2[%c448, %c0_44] : memref<848x128xf32, #tpu.memory_space<vmem>>, vector<32x32xf32>
    %c392 = arith.constant 392 : index
    %c0_45 = arith.constant 0 : index
    %79 = vector.load %arg2[%c392, %c0_45] : memref<848x128xf32, #tpu.memory_space<vmem>>, vector<1x32xf32>
    %cst_46 = arith.constant dense<0.000000e+00> : vector<8x32xf32>
    %80 = tpu.matmul %72, %73, %cst_46 {dimension_numbers = #tpu.dot_dimension_numbers<[1], [0], [0], [1], [0, 0, 1, 1], [], []>} : vector<8x32xf32>, vector<32x32xf32>, vector<8x32xf32> -> vector<8x32xf32>
    %cst_47 = arith.constant dense<0.000000e+00> : vector<8x32xf32>
    %81 = tpu.matmul %72, %74, %cst_47 {dimension_numbers = #tpu.dot_dimension_numbers<[1], [0], [0], [1], [0, 0, 1, 1], [], []>} : vector<8x32xf32>, vector<32x32xf32>, vector<8x32xf32> -> vector<8x32xf32>
    %cst_48 = arith.constant dense<0.000000e+00> : vector<8x32xf32>
    %82 = tpu.matmul %72, %75, %cst_48 {dimension_numbers = #tpu.dot_dimension_numbers<[1], [0], [0], [1], [0, 0, 1, 1], [], []>} : vector<8x32xf32>, vector<32x32xf32>, vector<8x32xf32> -> vector<8x32xf32>
    %cst_49 = arith.constant dense<0.000000e+00> : vector<8x32xf32>
    %83 = tpu.matmul %76, %81, %cst_49 {dimension_numbers = #tpu.dot_dimension_numbers<[1], [0], [0], [1], [0, 0, 1, 1], [], []>} : vector<8x8xf32>, vector<8x32xf32>, vector<8x32xf32> -> vector<8x32xf32>
    %cst_50 = arith.constant dense<0.000000e+00> : vector<8x32xf32>
    %84 = tpu.matmul %77, %82, %cst_50 {dimension_numbers = #tpu.dot_dimension_numbers<[1], [0], [0], [1], [0, 0, 1, 1], [], []>} : vector<8x8xf32>, vector<8x32xf32>, vector<8x32xf32> -> vector<8x32xf32>
    %85 = vector.extract_strided_slice %80 {offsets = [0, 0], sizes = [8, 8], strides = [1, 1]} : vector<8x32xf32> to vector<8x8xf32>
    %86 = vector.extract_strided_slice %83 {offsets = [0, 0], sizes = [8, 8], strides = [1, 1]} : vector<8x32xf32> to vector<8x8xf32>
    "tpu.trace_start"() <{level = 10 : i32, message = "ne,ke->nk"}> : () -> ()
    %cst_51 = arith.constant dense<0.000000e+00> : vector<8x8xf32>
    %87 = tpu.matmul %85, %86, %cst_51 {dimension_numbers = #tpu.dot_dimension_numbers<[1], [1], [0], [0], [0, 0, 1, 0], [], []>} : vector<8x8xf32>, vector<8x8xf32>, vector<8x8xf32> -> vector<8x8xf32>
    "tpu.trace_stop"() : () -> ()
    %cst_52 = arith.constant dense<0xFF800000> : vector<8xf32>
    %88 = vector.multi_reduction <maximumf>, %87, %cst_52 [1] : vector<8x8xf32> to vector<8xf32>
    %89 = vector.shape_cast %88 : vector<8xf32> to vector<8x1xf32>
    %90 = vector.broadcast %89 : vector<8x1xf32> to vector<8x8xf32>
    %91 = arith.subf %87, %90 : vector<8x8xf32>
    %92 = math.exp %91 : vector<8x8xf32>
    %cst_53 = arith.constant dense<0.000000e+00> : vector<8xf32>
    %93 = vector.multi_reduction <add>, %92, %cst_53 [1] : vector<8x8xf32> to vector<8xf32>
    %94 = vector.shape_cast %93 : vector<8xf32> to vector<8x1xf32>
    %95 = tpu.reciprocal %94 {approx = true} : vector<8x1xf32> -> vector<8x1xf32>
    %96 = vector.broadcast %95 : vector<8x1xf32> to vector<8x8xf32>
    %97 = arith.mulf %92, %96 : vector<8x8xf32>
    %cst_54 = arith.constant 9.99999997E-7 : f32
    %98 = vector.broadcast %cst_54 : f32 to vector<8x8xf32>
    %99 = arith.addf %97, %98 : vector<8x8xf32>
    %100 = vector.extract_strided_slice %84 {offsets = [0, 0], sizes = [8, 8], strides = [1, 1]} : vector<8x32xf32> to vector<8x8xf32>
    %cst_55 = arith.constant dense<0.000000e+00> : vector<8x8xf32>
    %101 = tpu.matmul %99, %100, %cst_55 {dimension_numbers = #tpu.dot_dimension_numbers<[1], [0], [0], [1], [0, 0, 1, 1], [], []>} : vector<8x8xf32>, vector<8x8xf32>, vector<8x8xf32> -> vector<8x8xf32>
    %102 = vector.extract_strided_slice %80 {offsets = [0, 8], sizes = [8, 8], strides = [1, 1]} : vector<8x32xf32> to vector<8x8xf32>
    %103 = vector.extract_strided_slice %83 {offsets = [0, 8], sizes = [8, 8], strides = [1, 1]} : vector<8x32xf32> to vector<8x8xf32>
    "tpu.trace_start"() <{level = 10 : i32, message = "ne,ke->nk"}> : () -> ()
    %cst_56 = arith.constant dense<0.000000e+00> : vector<8x8xf32>
    %104 = tpu.matmul %102, %103, %cst_56 {dimension_numbers = #tpu.dot_dimension_numbers<[1], [1], [0], [0], [0, 0, 1, 0], [], []>} : vector<8x8xf32>, vector<8x8xf32>, vector<8x8xf32> -> vector<8x8xf32>
    "tpu.trace_stop"() : () -> ()
    %cst_57 = arith.constant dense<0xFF800000> : vector<8xf32>
    %105 = vector.multi_reduction <maximumf>, %104, %cst_57 [1] : vector<8x8xf32> to vector<8xf32>
    %106 = vector.shape_cast %105 : vector<8xf32> to vector<8x1xf32>
    %107 = vector.broadcast %106 : vector<8x1xf32> to vector<8x8xf32>
    %108 = arith.subf %104, %107 : vector<8x8xf32>
    %109 = math.exp %108 : vector<8x8xf32>
    %cst_58 = arith.constant dense<0.000000e+00> : vector<8xf32>
    %110 = vector.multi_reduction <add>, %109, %cst_58 [1] : vector<8x8xf32> to vector<8xf32>
    %111 = vector.shape_cast %110 : vector<8xf32> to vector<8x1xf32>
    %112 = tpu.reciprocal %111 {approx = true} : vector<8x1xf32> -> vector<8x1xf32>
    %113 = vector.broadcast %112 : vector<8x1xf32> to vector<8x8xf32>
    %114 = arith.mulf %109, %113 : vector<8x8xf32>
    %cst_59 = arith.constant 9.99999997E-7 : f32
    %115 = vector.broadcast %cst_59 : f32 to vector<8x8xf32>
    %116 = arith.addf %114, %115 : vector<8x8xf32>
    %117 = vector.extract_strided_slice %84 {offsets = [0, 8], sizes = [8, 8], strides = [1, 1]} : vector<8x32xf32> to vector<8x8xf32>
    %cst_60 = arith.constant dense<0.000000e+00> : vector<8x8xf32>
    %118 = tpu.matmul %116, %117, %cst_60 {dimension_numbers = #tpu.dot_dimension_numbers<[1], [0], [0], [1], [0, 0, 1, 1], [], []>} : vector<8x8xf32>, vector<8x8xf32>, vector<8x8xf32> -> vector<8x8xf32>
    %119 = vector.extract_strided_slice %80 {offsets = [0, 16], sizes = [8, 8], strides = [1, 1]} : vector<8x32xf32> to vector<8x8xf32>
    %120 = vector.extract_strided_slice %83 {offsets = [0, 16], sizes = [8, 8], strides = [1, 1]} : vector<8x32xf32> to vector<8x8xf32>
    "tpu.trace_start"() <{level = 10 : i32, message = "ne,ke->nk"}> : () -> ()
    %cst_61 = arith.constant dense<0.000000e+00> : vector<8x8xf32>
    %121 = tpu.matmul %119, %120, %cst_61 {dimension_numbers = #tpu.dot_dimension_numbers<[1], [1], [0], [0], [0, 0, 1, 0], [], []>} : vector<8x8xf32>, vector<8x8xf32>, vector<8x8xf32> -> vector<8x8xf32>
    "tpu.trace_stop"() : () -> ()
    %cst_62 = arith.constant dense<0xFF800000> : vector<8xf32>
    %122 = vector.multi_reduction <maximumf>, %121, %cst_62 [1] : vector<8x8xf32> to vector<8xf32>
    %123 = vector.shape_cast %122 : vector<8xf32> to vector<8x1xf32>
    %124 = vector.broadcast %123 : vector<8x1xf32> to vector<8x8xf32>
    %125 = arith.subf %121, %124 : vector<8x8xf32>
    %126 = math.exp %125 : vector<8x8xf32>
    %cst_63 = arith.constant dense<0.000000e+00> : vector<8xf32>
    %127 = vector.multi_reduction <add>, %126, %cst_63 [1] : vector<8x8xf32> to vector<8xf32>
    %128 = vector.shape_cast %127 : vector<8xf32> to vector<8x1xf32>
    %129 = tpu.reciprocal %128 {approx = true} : vector<8x1xf32> -> vector<8x1xf32>
    %130 = vector.broadcast %129 : vector<8x1xf32> to vector<8x8xf32>
    %131 = arith.mulf %126, %130 : vector<8x8xf32>
    %cst_64 = arith.constant 9.99999997E-7 : f32
    %132 = vector.broadcast %cst_64 : f32 to vector<8x8xf32>
    %133 = arith.addf %131, %132 : vector<8x8xf32>
    %134 = vector.extract_strided_slice %84 {offsets = [0, 16], sizes = [8, 8], strides = [1, 1]} : vector<8x32xf32> to vector<8x8xf32>
    %cst_65 = arith.constant dense<0.000000e+00> : vector<8x8xf32>
    %135 = tpu.matmul %133, %134, %cst_65 {dimension_numbers = #tpu.dot_dimension_numbers<[1], [0], [0], [1], [0, 0, 1, 1], [], []>} : vector<8x8xf32>, vector<8x8xf32>, vector<8x8xf32> -> vector<8x8xf32>
    %136 = vector.extract_strided_slice %80 {offsets = [0, 24], sizes = [8, 8], strides = [1, 1]} : vector<8x32xf32> to vector<8x8xf32>
    %137 = vector.extract_strided_slice %83 {offsets = [0, 24], sizes = [8, 8], strides = [1, 1]} : vector<8x32xf32> to vector<8x8xf32>
    "tpu.trace_start"() <{level = 10 : i32, message = "ne,ke->nk"}> : () -> ()
    %cst_66 = arith.constant dense<0.000000e+00> : vector<8x8xf32>
    %138 = tpu.matmul %136, %137, %cst_66 {dimension_numbers = #tpu.dot_dimension_numbers<[1], [1], [0], [0], [0, 0, 1, 0], [], []>} : vector<8x8xf32>, vector<8x8xf32>, vector<8x8xf32> -> vector<8x8xf32>
    "tpu.trace_stop"() : () -> ()
    %cst_67 = arith.constant dense<0xFF800000> : vector<8xf32>
    %139 = vector.multi_reduction <maximumf>, %138, %cst_67 [1] : vector<8x8xf32> to vector<8xf32>
    %140 = vector.shape_cast %139 : vector<8xf32> to vector<8x1xf32>
    %141 = vector.broadcast %140 : vector<8x1xf32> to vector<8x8xf32>
    %142 = arith.subf %138, %141 : vector<8x8xf32>
    %143 = math.exp %142 : vector<8x8xf32>
    %cst_68 = arith.constant dense<0.000000e+00> : vector<8xf32>
    %144 = vector.multi_reduction <add>, %143, %cst_68 [1] : vector<8x8xf32> to vector<8xf32>
    %145 = vector.shape_cast %144 : vector<8xf32> to vector<8x1xf32>
    %146 = tpu.reciprocal %145 {approx = true} : vector<8x1xf32> -> vector<8x1xf32>
    %147 = vector.broadcast %146 : vector<8x1xf32> to vector<8x8xf32>
    %148 = arith.mulf %143, %147 : vector<8x8xf32>
    %cst_69 = arith.constant 9.99999997E-7 : f32
    %149 = vector.broadcast %cst_69 : f32 to vector<8x8xf32>
    %150 = arith.addf %148, %149 : vector<8x8xf32>
    %151 = vector.extract_strided_slice %84 {offsets = [0, 24], sizes = [8, 8], strides = [1, 1]} : vector<8x32xf32> to vector<8x8xf32>
    %cst_70 = arith.constant dense<0.000000e+00> : vector<8x8xf32>
    %152 = tpu.matmul %150, %151, %cst_70 {dimension_numbers = #tpu.dot_dimension_numbers<[1], [0], [0], [1], [0, 0, 1, 1], [], []>} : vector<8x8xf32>, vector<8x8xf32>, vector<8x8xf32> -> vector<8x8xf32>
    %153 = tpu.concatenate %101, %118, %135, %152 in 1 : vector<8x8xf32>, vector<8x8xf32>, vector<8x8xf32>, vector<8x8xf32> -> vector<8x32xf32>
    %cst_71 = arith.constant dense<0.000000e+00> : vector<8x32xf32>
    %154 = tpu.matmul %153, %78, %cst_71 {dimension_numbers = #tpu.dot_dimension_numbers<[1], [0], [0], [1], [0, 0, 1, 1], [], []>} : vector<8x32xf32>, vector<32x32xf32>, vector<8x32xf32> -> vector<8x32xf32>
    %155 = vector.broadcast %79 : vector<1x32xf32> to vector<8x32xf32>
    %156 = arith.addf %154, %155 : vector<8x32xf32>
    %157 = arith.addf %156, %72 : vector<8x32xf32>
    %c560 = arith.constant 560 : index
    %c0_72 = arith.constant 0 : index
    %158 = vector.load %arg2[%c560, %c0_72] : memref<848x128xf32, #tpu.memory_space<vmem>>, vector<1x32xf32>
    %c552 = arith.constant 552 : index
    %c0_73 = arith.constant 0 : index
    %159 = vector.load %arg2[%c552, %c0_73] : memref<848x128xf32, #tpu.memory_space<vmem>>, vector<1x32xf32>
    %c568 = arith.constant 568 : index
    %c0_74 = arith.constant 0 : index
    %160 = vector.load %arg2[%c568, %c0_74] : memref<848x128xf32, #tpu.memory_space<vmem>>, vector<32x32xf32>
    %c544 = arith.constant 544 : index
    %c0_75 = arith.constant 0 : index
    %161 = vector.load %arg2[%c544, %c0_75] : memref<848x128xf32, #tpu.memory_space<vmem>>, vector<1x32xf32>
    %cst_76 = arith.constant dense<0.000000e+00> : vector<8xf32>
    %162 = vector.multi_reduction <add>, %157, %cst_76 [1] : vector<8x32xf32> to vector<8xf32>
    %163 = vector.shape_cast %162 : vector<8xf32> to vector<8x1xf32>
    %cst_77 = arith.constant 3.200000e+01 : f32
    %164 = vector.broadcast %cst_77 : f32 to vector<8x1xf32>
    %165 = arith.divf %163, %164 : vector<8x1xf32>
    %166 = vector.broadcast %165 : vector<8x1xf32> to vector<8x32xf32>
    %167 = arith.subf %157, %166 : vector<8x32xf32>
    %168 = arith.mulf %167, %167 : vector<8x32xf32>
    %cst_78 = arith.constant dense<0.000000e+00> : vector<8xf32>
    %169 = vector.multi_reduction <add>, %168, %cst_78 [1] : vector<8x32xf32> to vector<8xf32>
    %170 = vector.shape_cast %169 : vector<8xf32> to vector<8x1xf32>
    %cst_79 = arith.constant 3.200000e+01 : f32
    %171 = vector.broadcast %cst_79 : f32 to vector<8x1xf32>
    %172 = arith.divf %170, %171 : vector<8x1xf32>
    %cst_80 = arith.constant 9.99999974E-6 : f32
    %173 = vector.broadcast %cst_80 : f32 to vector<8x1xf32>
    %174 = arith.addf %172, %173 : vector<8x1xf32>
    %175 = math.rsqrt %174 : vector<8x1xf32>
    %176 = vector.broadcast %175 : vector<8x1xf32> to vector<8x32xf32>
    %177 = arith.mulf %167, %176 : vector<8x32xf32>
    %178 = vector.broadcast %158 : vector<1x32xf32> to vector<8x32xf32>
    %179 = arith.mulf %177, %178 : vector<8x32xf32>
    %180 = vector.broadcast %159 : vector<1x32xf32> to vector<8x32xf32>
    %181 = arith.addf %179, %180 : vector<8x32xf32>
    %cst_81 = arith.constant dense<0.000000e+00> : vector<8x32xf32>
    %182 = tpu.matmul %181, %160, %cst_81 {dimension_numbers = #tpu.dot_dimension_numbers<[1], [0], [0], [1], [0, 0, 1, 1], [], []>} : vector<8x32xf32>, vector<32x32xf32>, vector<8x32xf32> -> vector<8x32xf32>
    %183 = vector.broadcast %161 : vector<1x32xf32> to vector<8x32xf32>
    %184 = arith.addf %182, %183 : vector<8x32xf32>
    %cst_82 = arith.constant 5.000000e-01 : f32
    %185 = vector.broadcast %cst_82 : f32 to vector<8x32xf32>
    %186 = arith.mulf %185, %184 : vector<8x32xf32>
    %cst_83 = arith.constant 0.707106769 : f32
    %187 = vector.broadcast %cst_83 : f32 to vector<8x32xf32>
    %188 = arith.mulf %184, %187 : vector<8x32xf32>
    %189 = math.erf %188 : vector<8x32xf32>
    %cst_84 = arith.constant 1.000000e+00 : f32
    %190 = vector.broadcast %cst_84 : f32 to vector<8x32xf32>
    %191 = arith.addf %190, %189 : vector<8x32xf32>
    %192 = arith.mulf %186, %191 : vector<8x32xf32>
    %193 = arith.addf %192, %157 : vector<8x32xf32>
    %c688 = arith.constant 688 : index
    %c0_85 = arith.constant 0 : index
    %194 = vector.load %arg2[%c688, %c0_85] : memref<848x128xf32, #tpu.memory_space<vmem>>, vector<32x32xf32>
    %c624 = arith.constant 624 : index
    %c0_86 = arith.constant 0 : index
    %195 = vector.load %arg2[%c624, %c0_86] : memref<848x128xf32, #tpu.memory_space<vmem>>, vector<32x32xf32>
    %c720 = arith.constant 720 : index
    %c0_87 = arith.constant 0 : index
    %196 = vector.load %arg2[%c720, %c0_87] : memref<848x128xf32, #tpu.memory_space<vmem>>, vector<32x32xf32>
    %c608 = arith.constant 608 : index
    %c0_88 = arith.constant 0 : index
    %197 = vector.load %arg2[%c608, %c0_88] : memref<848x128xf32, #tpu.memory_space<vmem>>, vector<8x8xf32>
    %c616 = arith.constant 616 : index
    %c0_89 = arith.constant 0 : index
    %198 = vector.load %arg2[%c616, %c0_89] : memref<848x128xf32, #tpu.memory_space<vmem>>, vector<8x8xf32>
    %c656 = arith.constant 656 : index
    %c0_90 = arith.constant 0 : index
    %199 = vector.load %arg2[%c656, %c0_90] : memref<848x128xf32, #tpu.memory_space<vmem>>, vector<32x32xf32>
    %c600 = arith.constant 600 : index
    %c0_91 = arith.constant 0 : index
    %200 = vector.load %arg2[%c600, %c0_91] : memref<848x128xf32, #tpu.memory_space<vmem>>, vector<1x32xf32>
    %cst_92 = arith.constant dense<0.000000e+00> : vector<8x32xf32>
    %201 = tpu.matmul %193, %194, %cst_92 {dimension_numbers = #tpu.dot_dimension_numbers<[1], [0], [0], [1], [0, 0, 1, 1], [], []>} : vector<8x32xf32>, vector<32x32xf32>, vector<8x32xf32> -> vector<8x32xf32>
    %cst_93 = arith.constant dense<0.000000e+00> : vector<8x32xf32>
    %202 = tpu.matmul %193, %195, %cst_93 {dimension_numbers = #tpu.dot_dimension_numbers<[1], [0], [0], [1], [0, 0, 1, 1], [], []>} : vector<8x32xf32>, vector<32x32xf32>, vector<8x32xf32> -> vector<8x32xf32>
    %cst_94 = arith.constant dense<0.000000e+00> : vector<8x32xf32>
    %203 = tpu.matmul %193, %196, %cst_94 {dimension_numbers = #tpu.dot_dimension_numbers<[1], [0], [0], [1], [0, 0, 1, 1], [], []>} : vector<8x32xf32>, vector<32x32xf32>, vector<8x32xf32> -> vector<8x32xf32>
    %cst_95 = arith.constant dense<0.000000e+00> : vector<8x32xf32>
    %204 = tpu.matmul %197, %202, %cst_95 {dimension_numbers = #tpu.dot_dimension_numbers<[1], [0], [0], [1], [0, 0, 1, 1], [], []>} : vector<8x8xf32>, vector<8x32xf32>, vector<8x32xf32> -> vector<8x32xf32>
    %cst_96 = arith.constant dense<0.000000e+00> : vector<8x32xf32>
    %205 = tpu.matmul %198, %203, %cst_96 {dimension_numbers = #tpu.dot_dimension_numbers<[1], [0], [0], [1], [0, 0, 1, 1], [], []>} : vector<8x8xf32>, vector<8x32xf32>, vector<8x32xf32> -> vector<8x32xf32>
    %206 = vector.extract_strided_slice %201 {offsets = [0, 0], sizes = [8, 8], strides = [1, 1]} : vector<8x32xf32> to vector<8x8xf32>
    %207 = vector.extract_strided_slice %204 {offsets = [0, 0], sizes = [8, 8], strides = [1, 1]} : vector<8x32xf32> to vector<8x8xf32>
    "tpu.trace_start"() <{level = 10 : i32, message = "ne,ke->nk"}> : () -> ()
    %cst_97 = arith.constant dense<0.000000e+00> : vector<8x8xf32>
    %208 = tpu.matmul %206, %207, %cst_97 {dimension_numbers = #tpu.dot_dimension_numbers<[1], [1], [0], [0], [0, 0, 1, 0], [], []>} : vector<8x8xf32>, vector<8x8xf32>, vector<8x8xf32> -> vector<8x8xf32>
    "tpu.trace_stop"() : () -> ()
    %cst_98 = arith.constant dense<0xFF800000> : vector<8xf32>
    %209 = vector.multi_reduction <maximumf>, %208, %cst_98 [1] : vector<8x8xf32> to vector<8xf32>
    %210 = vector.shape_cast %209 : vector<8xf32> to vector<8x1xf32>
    %211 = vector.broadcast %210 : vector<8x1xf32> to vector<8x8xf32>
    %212 = arith.subf %208, %211 : vector<8x8xf32>
    %213 = math.exp %212 : vector<8x8xf32>
    %cst_99 = arith.constant dense<0.000000e+00> : vector<8xf32>
    %214 = vector.multi_reduction <add>, %213, %cst_99 [1] : vector<8x8xf32> to vector<8xf32>
    %215 = vector.shape_cast %214 : vector<8xf32> to vector<8x1xf32>
    %216 = tpu.reciprocal %215 {approx = true} : vector<8x1xf32> -> vector<8x1xf32>
    %217 = vector.broadcast %216 : vector<8x1xf32> to vector<8x8xf32>
    %218 = arith.mulf %213, %217 : vector<8x8xf32>
    %cst_100 = arith.constant 9.99999997E-7 : f32
    %219 = vector.broadcast %cst_100 : f32 to vector<8x8xf32>
    %220 = arith.addf %218, %219 : vector<8x8xf32>
    %221 = vector.extract_strided_slice %205 {offsets = [0, 0], sizes = [8, 8], strides = [1, 1]} : vector<8x32xf32> to vector<8x8xf32>
    %cst_101 = arith.constant dense<0.000000e+00> : vector<8x8xf32>
    %222 = tpu.matmul %220, %221, %cst_101 {dimension_numbers = #tpu.dot_dimension_numbers<[1], [0], [0], [1], [0, 0, 1, 1], [], []>} : vector<8x8xf32>, vector<8x8xf32>, vector<8x8xf32> -> vector<8x8xf32>
    %223 = vector.extract_strided_slice %201 {offsets = [0, 8], sizes = [8, 8], strides = [1, 1]} : vector<8x32xf32> to vector<8x8xf32>
    %224 = vector.extract_strided_slice %204 {offsets = [0, 8], sizes = [8, 8], strides = [1, 1]} : vector<8x32xf32> to vector<8x8xf32>
    "tpu.trace_start"() <{level = 10 : i32, message = "ne,ke->nk"}> : () -> ()
    %cst_102 = arith.constant dense<0.000000e+00> : vector<8x8xf32>
    %225 = tpu.matmul %223, %224, %cst_102 {dimension_numbers = #tpu.dot_dimension_numbers<[1], [1], [0], [0], [0, 0, 1, 0], [], []>} : vector<8x8xf32>, vector<8x8xf32>, vector<8x8xf32> -> vector<8x8xf32>
    "tpu.trace_stop"() : () -> ()
    %cst_103 = arith.constant dense<0xFF800000> : vector<8xf32>
    %226 = vector.multi_reduction <maximumf>, %225, %cst_103 [1] : vector<8x8xf32> to vector<8xf32>
    %227 = vector.shape_cast %226 : vector<8xf32> to vector<8x1xf32>
    %228 = vector.broadcast %227 : vector<8x1xf32> to vector<8x8xf32>
    %229 = arith.subf %225, %228 : vector<8x8xf32>
    %230 = math.exp %229 : vector<8x8xf32>
    %cst_104 = arith.constant dense<0.000000e+00> : vector<8xf32>
    %231 = vector.multi_reduction <add>, %230, %cst_104 [1] : vector<8x8xf32> to vector<8xf32>
    %232 = vector.shape_cast %231 : vector<8xf32> to vector<8x1xf32>
    %233 = tpu.reciprocal %232 {approx = true} : vector<8x1xf32> -> vector<8x1xf32>
    %234 = vector.broadcast %233 : vector<8x1xf32> to vector<8x8xf32>
    %235 = arith.mulf %230, %234 : vector<8x8xf32>
    %cst_105 = arith.constant 9.99999997E-7 : f32
    %236 = vector.broadcast %cst_105 : f32 to vector<8x8xf32>
    %237 = arith.addf %235, %236 : vector<8x8xf32>
    %238 = vector.extract_strided_slice %205 {offsets = [0, 8], sizes = [8, 8], strides = [1, 1]} : vector<8x32xf32> to vector<8x8xf32>
    %cst_106 = arith.constant dense<0.000000e+00> : vector<8x8xf32>
    %239 = tpu.matmul %237, %238, %cst_106 {dimension_numbers = #tpu.dot_dimension_numbers<[1], [0], [0], [1], [0, 0, 1, 1], [], []>} : vector<8x8xf32>, vector<8x8xf32>, vector<8x8xf32> -> vector<8x8xf32>
    %240 = vector.extract_strided_slice %201 {offsets = [0, 16], sizes = [8, 8], strides = [1, 1]} : vector<8x32xf32> to vector<8x8xf32>
    %241 = vector.extract_strided_slice %204 {offsets = [0, 16], sizes = [8, 8], strides = [1, 1]} : vector<8x32xf32> to vector<8x8xf32>
    "tpu.trace_start"() <{level = 10 : i32, message = "ne,ke->nk"}> : () -> ()
    %cst_107 = arith.constant dense<0.000000e+00> : vector<8x8xf32>
    %242 = tpu.matmul %240, %241, %cst_107 {dimension_numbers = #tpu.dot_dimension_numbers<[1], [1], [0], [0], [0, 0, 1, 0], [], []>} : vector<8x8xf32>, vector<8x8xf32>, vector<8x8xf32> -> vector<8x8xf32>
    "tpu.trace_stop"() : () -> ()
    %cst_108 = arith.constant dense<0xFF800000> : vector<8xf32>
    %243 = vector.multi_reduction <maximumf>, %242, %cst_108 [1] : vector<8x8xf32> to vector<8xf32>
    %244 = vector.shape_cast %243 : vector<8xf32> to vector<8x1xf32>
    %245 = vector.broadcast %244 : vector<8x1xf32> to vector<8x8xf32>
    %246 = arith.subf %242, %245 : vector<8x8xf32>
    %247 = math.exp %246 : vector<8x8xf32>
    %cst_109 = arith.constant dense<0.000000e+00> : vector<8xf32>
    %248 = vector.multi_reduction <add>, %247, %cst_109 [1] : vector<8x8xf32> to vector<8xf32>
    %249 = vector.shape_cast %248 : vector<8xf32> to vector<8x1xf32>
    %250 = tpu.reciprocal %249 {approx = true} : vector<8x1xf32> -> vector<8x1xf32>
    %251 = vector.broadcast %250 : vector<8x1xf32> to vector<8x8xf32>
    %252 = arith.mulf %247, %251 : vector<8x8xf32>
    %cst_110 = arith.constant 9.99999997E-7 : f32
    %253 = vector.broadcast %cst_110 : f32 to vector<8x8xf32>
    %254 = arith.addf %252, %253 : vector<8x8xf32>
    %255 = vector.extract_strided_slice %205 {offsets = [0, 16], sizes = [8, 8], strides = [1, 1]} : vector<8x32xf32> to vector<8x8xf32>
    %cst_111 = arith.constant dense<0.000000e+00> : vector<8x8xf32>
    %256 = tpu.matmul %254, %255, %cst_111 {dimension_numbers = #tpu.dot_dimension_numbers<[1], [0], [0], [1], [0, 0, 1, 1], [], []>} : vector<8x8xf32>, vector<8x8xf32>, vector<8x8xf32> -> vector<8x8xf32>
    %257 = vector.extract_strided_slice %201 {offsets = [0, 24], sizes = [8, 8], strides = [1, 1]} : vector<8x32xf32> to vector<8x8xf32>
    %258 = vector.extract_strided_slice %204 {offsets = [0, 24], sizes = [8, 8], strides = [1, 1]} : vector<8x32xf32> to vector<8x8xf32>
    "tpu.trace_start"() <{level = 10 : i32, message = "ne,ke->nk"}> : () -> ()
    %cst_112 = arith.constant dense<0.000000e+00> : vector<8x8xf32>
    %259 = tpu.matmul %257, %258, %cst_112 {dimension_numbers = #tpu.dot_dimension_numbers<[1], [1], [0], [0], [0, 0, 1, 0], [], []>} : vector<8x8xf32>, vector<8x8xf32>, vector<8x8xf32> -> vector<8x8xf32>
    "tpu.trace_stop"() : () -> ()
    %cst_113 = arith.constant dense<0xFF800000> : vector<8xf32>
    %260 = vector.multi_reduction <maximumf>, %259, %cst_113 [1] : vector<8x8xf32> to vector<8xf32>
    %261 = vector.shape_cast %260 : vector<8xf32> to vector<8x1xf32>
    %262 = vector.broadcast %261 : vector<8x1xf32> to vector<8x8xf32>
    %263 = arith.subf %259, %262 : vector<8x8xf32>
    %264 = math.exp %263 : vector<8x8xf32>
    %cst_114 = arith.constant dense<0.000000e+00> : vector<8xf32>
    %265 = vector.multi_reduction <add>, %264, %cst_114 [1] : vector<8x8xf32> to vector<8xf32>
    %266 = vector.shape_cast %265 : vector<8xf32> to vector<8x1xf32>
    %267 = tpu.reciprocal %266 {approx = true} : vector<8x1xf32> -> vector<8x1xf32>
    %268 = vector.broadcast %267 : vector<8x1xf32> to vector<8x8xf32>
    %269 = arith.mulf %264, %268 : vector<8x8xf32>
    %cst_115 = arith.constant 9.99999997E-7 : f32
    %270 = vector.broadcast %cst_115 : f32 to vector<8x8xf32>
    %271 = arith.addf %269, %270 : vector<8x8xf32>
    %272 = vector.extract_strided_slice %205 {offsets = [0, 24], sizes = [8, 8], strides = [1, 1]} : vector<8x32xf32> to vector<8x8xf32>
    %cst_116 = arith.constant dense<0.000000e+00> : vector<8x8xf32>
    %273 = tpu.matmul %271, %272, %cst_116 {dimension_numbers = #tpu.dot_dimension_numbers<[1], [0], [0], [1], [0, 0, 1, 1], [], []>} : vector<8x8xf32>, vector<8x8xf32>, vector<8x8xf32> -> vector<8x8xf32>
    %274 = tpu.concatenate %222, %239, %256, %273 in 1 : vector<8x8xf32>, vector<8x8xf32>, vector<8x8xf32>, vector<8x8xf32> -> vector<8x32xf32>
    %cst_117 = arith.constant dense<0.000000e+00> : vector<8x32xf32>
    %275 = tpu.matmul %274, %199, %cst_117 {dimension_numbers = #tpu.dot_dimension_numbers<[1], [0], [0], [1], [0, 0, 1, 1], [], []>} : vector<8x32xf32>, vector<32x32xf32>, vector<8x32xf32> -> vector<8x32xf32>
    %276 = vector.broadcast %200 : vector<1x32xf32> to vector<8x32xf32>
    %277 = arith.addf %275, %276 : vector<8x32xf32>
    %278 = arith.addf %277, %193 : vector<8x32xf32>
    %c768 = arith.constant 768 : index
    %c0_118 = arith.constant 0 : index
    %279 = vector.load %arg2[%c768, %c0_118] : memref<848x128xf32, #tpu.memory_space<vmem>>, vector<1x32xf32>
    %c760 = arith.constant 760 : index
    %c0_119 = arith.constant 0 : index
    %280 = vector.load %arg2[%c760, %c0_119] : memref<848x128xf32, #tpu.memory_space<vmem>>, vector<1x32xf32>
    %c776 = arith.constant 776 : index
    %c0_120 = arith.constant 0 : index
    %281 = vector.load %arg2[%c776, %c0_120] : memref<848x128xf32, #tpu.memory_space<vmem>>, vector<32x32xf32>
    %c752 = arith.constant 752 : index
    %c0_121 = arith.constant 0 : index
    %282 = vector.load %arg2[%c752, %c0_121] : memref<848x128xf32, #tpu.memory_space<vmem>>, vector<1x32xf32>
    %cst_122 = arith.constant dense<0.000000e+00> : vector<8xf32>
    %283 = vector.multi_reduction <add>, %278, %cst_122 [1] : vector<8x32xf32> to vector<8xf32>
    %284 = vector.shape_cast %283 : vector<8xf32> to vector<8x1xf32>
    %cst_123 = arith.constant 3.200000e+01 : f32
    %285 = vector.broadcast %cst_123 : f32 to vector<8x1xf32>
    %286 = arith.divf %284, %285 : vector<8x1xf32>
    %287 = vector.broadcast %286 : vector<8x1xf32> to vector<8x32xf32>
    %288 = arith.subf %278, %287 : vector<8x32xf32>
    %289 = arith.mulf %288, %288 : vector<8x32xf32>
    %cst_124 = arith.constant dense<0.000000e+00> : vector<8xf32>
    %290 = vector.multi_reduction <add>, %289, %cst_124 [1] : vector<8x32xf32> to vector<8xf32>
    %291 = vector.shape_cast %290 : vector<8xf32> to vector<8x1xf32>
    %cst_125 = arith.constant 3.200000e+01 : f32
    %292 = vector.broadcast %cst_125 : f32 to vector<8x1xf32>
    %293 = arith.divf %291, %292 : vector<8x1xf32>
    %cst_126 = arith.constant 9.99999974E-6 : f32
    %294 = vector.broadcast %cst_126 : f32 to vector<8x1xf32>
    %295 = arith.addf %293, %294 : vector<8x1xf32>
    %296 = math.rsqrt %295 : vector<8x1xf32>
    %297 = vector.broadcast %296 : vector<8x1xf32> to vector<8x32xf32>
    %298 = arith.mulf %288, %297 : vector<8x32xf32>
    %299 = vector.broadcast %279 : vector<1x32xf32> to vector<8x32xf32>
    %300 = arith.mulf %298, %299 : vector<8x32xf32>
    %301 = vector.broadcast %280 : vector<1x32xf32> to vector<8x32xf32>
    %302 = arith.addf %300, %301 : vector<8x32xf32>
    %cst_127 = arith.constant dense<0.000000e+00> : vector<8x32xf32>
    %303 = tpu.matmul %302, %281, %cst_127 {dimension_numbers = #tpu.dot_dimension_numbers<[1], [0], [0], [1], [0, 0, 1, 1], [], []>} : vector<8x32xf32>, vector<32x32xf32>, vector<8x32xf32> -> vector<8x32xf32>
    %304 = vector.broadcast %282 : vector<1x32xf32> to vector<8x32xf32>
    %305 = arith.addf %303, %304 : vector<8x32xf32>
    %cst_128 = arith.constant 5.000000e-01 : f32
    %306 = vector.broadcast %cst_128 : f32 to vector<8x32xf32>
    %307 = arith.mulf %306, %305 : vector<8x32xf32>
    %cst_129 = arith.constant 0.707106769 : f32
    %308 = vector.broadcast %cst_129 : f32 to vector<8x32xf32>
    %309 = arith.mulf %305, %308 : vector<8x32xf32>
    %310 = math.erf %309 : vector<8x32xf32>
    %cst_130 = arith.constant 1.000000e+00 : f32
    %311 = vector.broadcast %cst_130 : f32 to vector<8x32xf32>
    %312 = arith.addf %311, %310 : vector<8x32xf32>
    %313 = arith.mulf %307, %312 : vector<8x32xf32>
    %314 = arith.addf %313, %278 : vector<8x32xf32>
    %c264 = arith.constant 264 : index
    %c0_131 = arith.constant 0 : index
    %315 = vector.load %arg2[%c264, %c0_131] : memref<848x128xf32, #tpu.memory_space<vmem>>, vector<32x16xf32>
    %c216 = arith.constant 216 : index
    %c0_132 = arith.constant 0 : index
    %316 = vector.load %arg2[%c216, %c0_132] : memref<848x128xf32, #tpu.memory_space<vmem>>, vector<32x16xf32>
    %c296 = arith.constant 296 : index
    %c0_133 = arith.constant 0 : index
    %317 = vector.load %arg2[%c296, %c0_133] : memref<848x128xf32, #tpu.memory_space<vmem>>, vector<32x16xf32>
    %c200 = arith.constant 200 : index
    %c0_134 = arith.constant 0 : index
    %318 = vector.load %arg2[%c200, %c0_134] : memref<848x128xf32, #tpu.memory_space<vmem>>, vector<8x8xf32>
    %c208 = arith.constant 208 : index
    %c0_135 = arith.constant 0 : index
    %319 = vector.load %arg2[%c208, %c0_135] : memref<848x128xf32, #tpu.memory_space<vmem>>, vector<8x8xf32>
    %c248 = arith.constant 248 : index
    %c0_136 = arith.constant 0 : index
    %320 = vector.load %arg2[%c248, %c0_136] : memref<848x128xf32, #tpu.memory_space<vmem>>, vector<16x32xf32>
    %c192 = arith.constant 192 : index
    %c0_137 = arith.constant 0 : index
    %321 = vector.load %arg2[%c192, %c0_137] : memref<848x128xf32, #tpu.memory_space<vmem>>, vector<1x32xf32>
    %cst_138 = arith.constant dense<0.000000e+00> : vector<8x16xf32>
    %322 = tpu.matmul %6, %315, %cst_138 {dimension_numbers = #tpu.dot_dimension_numbers<[1], [0], [0], [1], [0, 0, 1, 1], [], []>} : vector<8x32xf32>, vector<32x16xf32>, vector<8x16xf32> -> vector<8x16xf32>
    %cst_139 = arith.constant dense<0.000000e+00> : vector<8x16xf32>
    %323 = tpu.matmul %314, %316, %cst_139 {dimension_numbers = #tpu.dot_dimension_numbers<[1], [0], [0], [1], [0, 0, 1, 1], [], []>} : vector<8x32xf32>, vector<32x16xf32>, vector<8x16xf32> -> vector<8x16xf32>
    %cst_140 = arith.constant dense<0.000000e+00> : vector<8x16xf32>
    %324 = tpu.matmul %314, %317, %cst_140 {dimension_numbers = #tpu.dot_dimension_numbers<[1], [0], [0], [1], [0, 0, 1, 1], [], []>} : vector<8x32xf32>, vector<32x16xf32>, vector<8x16xf32> -> vector<8x16xf32>
    %cst_141 = arith.constant dense<0.000000e+00> : vector<8x16xf32>
    %325 = tpu.matmul %318, %323, %cst_141 {dimension_numbers = #tpu.dot_dimension_numbers<[1], [0], [0], [1], [0, 0, 1, 1], [], []>} : vector<8x8xf32>, vector<8x16xf32>, vector<8x16xf32> -> vector<8x16xf32>
    %cst_142 = arith.constant dense<0.000000e+00> : vector<8x16xf32>
    %326 = tpu.matmul %319, %324, %cst_142 {dimension_numbers = #tpu.dot_dimension_numbers<[1], [0], [0], [1], [0, 0, 1, 1], [], []>} : vector<8x8xf32>, vector<8x16xf32>, vector<8x16xf32> -> vector<8x16xf32>
    "tpu.trace_start"() <{level = 10 : i32, message = "ne,ke->nk"}> : () -> ()
    %cst_143 = arith.constant dense<0.000000e+00> : vector<8x8xf32>
    %327 = tpu.matmul %322, %325, %cst_143 {dimension_numbers = #tpu.dot_dimension_numbers<[1], [1], [0], [0], [0, 0, 1, 0], [], []>} : vector<8x16xf32>, vector<8x16xf32>, vector<8x8xf32> -> vector<8x8xf32>
    "tpu.trace_stop"() : () -> ()
    %cst_144 = arith.constant dense<0xFF800000> : vector<8xf32>
    %328 = vector.multi_reduction <maximumf>, %327, %cst_144 [1] : vector<8x8xf32> to vector<8xf32>
    %329 = vector.shape_cast %328 : vector<8xf32> to vector<8x1xf32>
    %330 = vector.broadcast %329 : vector<8x1xf32> to vector<8x8xf32>
    %331 = arith.subf %327, %330 : vector<8x8xf32>
    %332 = math.exp %331 : vector<8x8xf32>
    %cst_145 = arith.constant dense<0.000000e+00> : vector<8xf32>
    %333 = vector.multi_reduction <add>, %332, %cst_145 [1] : vector<8x8xf32> to vector<8xf32>
    %334 = vector.shape_cast %333 : vector<8xf32> to vector<8x1xf32>
    %335 = tpu.reciprocal %334 {approx = true} : vector<8x1xf32> -> vector<8x1xf32>
    %336 = vector.broadcast %335 : vector<8x1xf32> to vector<8x8xf32>
    %337 = arith.mulf %332, %336 : vector<8x8xf32>
    %cst_146 = arith.constant 9.99999997E-7 : f32
    %338 = vector.broadcast %cst_146 : f32 to vector<8x8xf32>
    %339 = arith.addf %337, %338 : vector<8x8xf32>
    %cst_147 = arith.constant dense<0.000000e+00> : vector<8x16xf32>
    %340 = tpu.matmul %339, %326, %cst_147 {dimension_numbers = #tpu.dot_dimension_numbers<[1], [0], [0], [1], [0, 0, 1, 1], [], []>} : vector<8x8xf32>, vector<8x16xf32>, vector<8x16xf32> -> vector<8x16xf32>
    %cst_148 = arith.constant dense<0.000000e+00> : vector<8x32xf32>
    %341 = tpu.matmul %340, %320, %cst_148 {dimension_numbers = #tpu.dot_dimension_numbers<[1], [0], [0], [1], [0, 0, 1, 1], [], []>} : vector<8x16xf32>, vector<16x32xf32>, vector<8x32xf32> -> vector<8x32xf32>
    %342 = vector.broadcast %321 : vector<1x32xf32> to vector<8x32xf32>
    %343 = arith.addf %341, %342 : vector<8x32xf32>
    %c344 = arith.constant 344 : index
    %c0_149 = arith.constant 0 : index
    %344 = vector.load %arg2[%c344, %c0_149] : memref<848x128xf32, #tpu.memory_space<vmem>>, vector<1x32xf32>
    %c336 = arith.constant 336 : index
    %c0_150 = arith.constant 0 : index
    %345 = vector.load %arg2[%c336, %c0_150] : memref<848x128xf32, #tpu.memory_space<vmem>>, vector<1x32xf32>
    %c352 = arith.constant 352 : index
    %c0_151 = arith.constant 0 : index
    %346 = vector.load %arg2[%c352, %c0_151] : memref<848x128xf32, #tpu.memory_space<vmem>>, vector<32x32xf32>
    %c328 = arith.constant 328 : index
    %c0_152 = arith.constant 0 : index
    %347 = vector.load %arg2[%c328, %c0_152] : memref<848x128xf32, #tpu.memory_space<vmem>>, vector<1x32xf32>
    %cst_153 = arith.constant dense<0.000000e+00> : vector<8xf32>
    %348 = vector.multi_reduction <add>, %343, %cst_153 [1] : vector<8x32xf32> to vector<8xf32>
    %349 = vector.shape_cast %348 : vector<8xf32> to vector<8x1xf32>
    %cst_154 = arith.constant 3.200000e+01 : f32
    %350 = vector.broadcast %cst_154 : f32 to vector<8x1xf32>
    %351 = arith.divf %349, %350 : vector<8x1xf32>
    %352 = vector.broadcast %351 : vector<8x1xf32> to vector<8x32xf32>
    %353 = arith.subf %343, %352 : vector<8x32xf32>
    %354 = arith.mulf %353, %353 : vector<8x32xf32>
    %cst_155 = arith.constant dense<0.000000e+00> : vector<8xf32>
    %355 = vector.multi_reduction <add>, %354, %cst_155 [1] : vector<8x32xf32> to vector<8xf32>
    %356 = vector.shape_cast %355 : vector<8xf32> to vector<8x1xf32>
    %cst_156 = arith.constant 3.200000e+01 : f32
    %357 = vector.broadcast %cst_156 : f32 to vector<8x1xf32>
    %358 = arith.divf %356, %357 : vector<8x1xf32>
    %cst_157 = arith.constant 9.99999974E-6 : f32
    %359 = vector.broadcast %cst_157 : f32 to vector<8x1xf32>
    %360 = arith.addf %358, %359 : vector<8x1xf32>
    %361 = math.rsqrt %360 : vector<8x1xf32>
    %362 = vector.broadcast %361 : vector<8x1xf32> to vector<8x32xf32>
    %363 = arith.mulf %353, %362 : vector<8x32xf32>
    %364 = vector.broadcast %344 : vector<1x32xf32> to vector<8x32xf32>
    %365 = arith.mulf %363, %364 : vector<8x32xf32>
    %366 = vector.broadcast %345 : vector<1x32xf32> to vector<8x32xf32>
    %367 = arith.addf %365, %366 : vector<8x32xf32>
    %cst_158 = arith.constant dense<0.000000e+00> : vector<8x32xf32>
    %368 = tpu.matmul %367, %346, %cst_158 {dimension_numbers = #tpu.dot_dimension_numbers<[1], [0], [0], [1], [0, 0, 1, 1], [], []>} : vector<8x32xf32>, vector<32x32xf32>, vector<8x32xf32> -> vector<8x32xf32>
    %369 = vector.broadcast %347 : vector<1x32xf32> to vector<8x32xf32>
    %370 = arith.addf %368, %369 : vector<8x32xf32>
    %cst_159 = arith.constant 5.000000e-01 : f32
    %371 = vector.broadcast %cst_159 : f32 to vector<8x32xf32>
    %372 = arith.mulf %371, %370 : vector<8x32xf32>
    %cst_160 = arith.constant 0.707106769 : f32
    %373 = vector.broadcast %cst_160 : f32 to vector<8x32xf32>
    %374 = arith.mulf %370, %373 : vector<8x32xf32>
    %375 = math.erf %374 : vector<8x32xf32>
    %cst_161 = arith.constant 1.000000e+00 : f32
    %376 = vector.broadcast %cst_161 : f32 to vector<8x32xf32>
    %377 = arith.addf %376, %375 : vector<8x32xf32>
    %378 = arith.mulf %372, %377 : vector<8x32xf32>
    %379 = arith.addf %343, %378 : vector<8x32xf32>
    %cst_162 = arith.constant dense<0.000000e+00> : vector<8x128xf32>
    %380 = tpu.matmul %379, %1, %cst_162 {dimension_numbers = #tpu.dot_dimension_numbers<[1], [0], [0], [1], [0, 0, 1, 1], [], []>} : vector<8x32xf32>, vector<32x128xf32>, vector<8x128xf32> -> vector<8x128xf32>
    %381 = vector.broadcast %2 : vector<1x128xf32> to vector<8x128xf32>
    %382 = arith.addf %380, %381 : vector<8x128xf32>
    %c0_163 = arith.constant 0 : index
    %c0_164 = arith.constant 0 : index
    %c0_165 = arith.constant 0 : index
    %383 = vector.load %arg3[%c0_163, %c0_164, %c0_165] : memref<2x8x128xf32, #tpu.memory_space<vmem>>, vector<1x8x128xf32>
    %384 = vector.shape_cast %383 : vector<1x8x128xf32> to vector<8x128xf32>
    %385 = vector.shape_cast %382 : vector<8x128xf32> to vector<1x8x128xf32>
    tpu.vector_store %arg3[%c0_163, %c0_164, %c0_165], %385 {strides = array<i32>} : memref<2x8x128xf32, #tpu.memory_space<vmem>>, vector<1x8x128xf32>,
    %c1 = arith.constant 1 : index
    %c0_166 = arith.constant 0 : index
    %c0_167 = arith.constant 0 : index
    %386 = vector.load %arg0[%c1, %c0_166, %c0_167] : memref<2x16x32xf32, #tpu.memory_space<vmem>>, vector<1x16x32xf32>
    %387 = vector.shape_cast %386 : vector<1x16x32xf32> to vector<16x32xf32>
    %c1_168 = arith.constant 1 : index
    %c0_169 = arith.constant 0 : index
    %c0_170 = arith.constant 0 : index
    %388 = vector.load %arg1[%c1_168, %c0_169, %c0_170] : memref<2x8x32xf32, #tpu.memory_space<vmem>>, vector<1x8x32xf32>
    %389 = vector.shape_cast %388 : vector<1x8x32xf32> to vector<8x32xf32>
    %c72_171 = arith.constant 72 : index
    %c0_172 = arith.constant 0 : index
    %390 = vector.load %arg2[%c72_171, %c0_172] : memref<848x128xf32, #tpu.memory_space<vmem>>, vector<32x16xf32>
    %c24_173 = arith.constant 24 : index
    %c0_174 = arith.constant 0 : index
    %391 = vector.load %arg2[%c24_173, %c0_174] : memref<848x128xf32, #tpu.memory_space<vmem>>, vector<32x16xf32>
    %c104_175 = arith.constant 104 : index
    %c0_176 = arith.constant 0 : index
    %392 = vector.load %arg2[%c104_175, %c0_176] : memref<848x128xf32, #tpu.memory_space<vmem>>, vector<32x16xf32>
    %c8_177 = arith.constant 8 : index
    %c0_178 = arith.constant 0 : index
    %393 = vector.load %arg2[%c8_177, %c0_178] : memref<848x128xf32, #tpu.memory_space<vmem>>, vector<8x16xf32>
    %c16_179 = arith.constant 16 : index
    %c0_180 = arith.constant 0 : index
    %394 = vector.load %arg2[%c16_179, %c0_180] : memref<848x128xf32, #tpu.memory_space<vmem>>, vector<8x16xf32>
    %c56_181 = arith.constant 56 : index
    %c0_182 = arith.constant 0 : index
    %395 = vector.load %arg2[%c56_181, %c0_182] : memref<848x128xf32, #tpu.memory_space<vmem>>, vector<16x32xf32>
    %c0_183 = arith.constant 0 : index
    %c0_184 = arith.constant 0 : index
    %396 = vector.load %arg2[%c0_183, %c0_184] : memref<848x128xf32, #tpu.memory_space<vmem>>, vector<1x32xf32>
    %cst_185 = arith.constant dense<0.000000e+00> : vector<8x16xf32>
    %397 = tpu.matmul %0, %390, %cst_185 {dimension_numbers = #tpu.dot_dimension_numbers<[1], [0], [0], [1], [0, 0, 1, 1], [], []>} : vector<8x32xf32>, vector<32x16xf32>, vector<8x16xf32> -> vector<8x16xf32>
    %cst_186 = arith.constant dense<0.000000e+00> : vector<16x16xf32>
    %398 = tpu.matmul %387, %391, %cst_186 {dimension_numbers = #tpu.dot_dimension_numbers<[1], [0], [0], [1], [0, 0, 1, 1], [], []>} : vector<16x32xf32>, vector<32x16xf32>, vector<16x16xf32> -> vector<16x16xf32>
    %cst_187 = arith.constant dense<0.000000e+00> : vector<16x16xf32>
    %399 = tpu.matmul %387, %392, %cst_187 {dimension_numbers = #tpu.dot_dimension_numbers<[1], [0], [0], [1], [0, 0, 1, 1], [], []>} : vector<16x32xf32>, vector<32x16xf32>, vector<16x16xf32> -> vector<16x16xf32>
    %cst_188 = arith.constant dense<0.000000e+00> : vector<8x16xf32>
    %400 = tpu.matmul %393, %398, %cst_188 {dimension_numbers = #tpu.dot_dimension_numbers<[1], [0], [0], [1], [0, 0, 1, 1], [], []>} : vector<8x16xf32>, vector<16x16xf32>, vector<8x16xf32> -> vector<8x16xf32>
    %cst_189 = arith.constant dense<0.000000e+00> : vector<8x16xf32>
    %401 = tpu.matmul %394, %399, %cst_189 {dimension_numbers = #tpu.dot_dimension_numbers<[1], [0], [0], [1], [0, 0, 1, 1], [], []>} : vector<8x16xf32>, vector<16x16xf32>, vector<8x16xf32> -> vector<8x16xf32>
    "tpu.trace_start"() <{level = 10 : i32, message = "ne,ke->nk"}> : () -> ()
    %cst_190 = arith.constant dense<0.000000e+00> : vector<8x8xf32>
    %402 = tpu.matmul %397, %400, %cst_190 {dimension_numbers = #tpu.dot_dimension_numbers<[1], [1], [0], [0], [0, 0, 1, 0], [], []>} : vector<8x16xf32>, vector<8x16xf32>, vector<8x8xf32> -> vector<8x8xf32>
    "tpu.trace_stop"() : () -> ()
    %cst_191 = arith.constant dense<0xFF800000> : vector<8xf32>
    %403 = vector.multi_reduction <maximumf>, %402, %cst_191 [1] : vector<8x8xf32> to vector<8xf32>
    %404 = vector.shape_cast %403 : vector<8xf32> to vector<8x1xf32>
    %405 = vector.broadcast %404 : vector<8x1xf32> to vector<8x8xf32>
    %406 = arith.subf %402, %405 : vector<8x8xf32>
    %407 = math.exp %406 : vector<8x8xf32>
    %cst_192 = arith.constant dense<0.000000e+00> : vector<8xf32>
    %408 = vector.multi_reduction <add>, %407, %cst_192 [1] : vector<8x8xf32> to vector<8xf32>
    %409 = vector.shape_cast %408 : vector<8xf32> to vector<8x1xf32>
    %410 = tpu.reciprocal %409 {approx = true} : vector<8x1xf32> -> vector<8x1xf32>
    %411 = vector.broadcast %410 : vector<8x1xf32> to vector<8x8xf32>
    %412 = arith.mulf %407, %411 : vector<8x8xf32>
    %cst_193 = arith.constant 9.99999997E-7 : f32
    %413 = vector.broadcast %cst_193 : f32 to vector<8x8xf32>
    %414 = arith.addf %412, %413 : vector<8x8xf32>
    %cst_194 = arith.constant dense<0.000000e+00> : vector<8x16xf32>
    %415 = tpu.matmul %414, %401, %cst_194 {dimension_numbers = #tpu.dot_dimension_numbers<[1], [0], [0], [1], [0, 0, 1, 1], [], []>} : vector<8x8xf32>, vector<8x16xf32>, vector<8x16xf32> -> vector<8x16xf32>
    %cst_195 = arith.constant dense<0.000000e+00> : vector<8x32xf32>
    %416 = tpu.matmul %415, %395, %cst_195 {dimension_numbers = #tpu.dot_dimension_numbers<[1], [0], [0], [1], [0, 0, 1, 1], [], []>} : vector<8x16xf32>, vector<16x32xf32>, vector<8x32xf32> -> vector<8x32xf32>
    %417 = vector.broadcast %396 : vector<1x32xf32> to vector<8x32xf32>
    %418 = arith.addf %416, %417 : vector<8x32xf32>
    %419 = arith.addf %418, %0 : vector<8x32xf32>
    %c152_196 = arith.constant 152 : index
    %c0_197 = arith.constant 0 : index
    %420 = vector.load %arg2[%c152_196, %c0_197] : memref<848x128xf32, #tpu.memory_space<vmem>>, vector<1x32xf32>
    %c144_198 = arith.constant 144 : index
    %c0_199 = arith.constant 0 : index
    %421 = vector.load %arg2[%c144_198, %c0_199] : memref<848x128xf32, #tpu.memory_space<vmem>>, vector<1x32xf32>
    %c160_200 = arith.constant 160 : index
    %c0_201 = arith.constant 0 : index
    %422 = vector.load %arg2[%c160_200, %c0_201] : memref<848x128xf32, #tpu.memory_space<vmem>>, vector<32x32xf32>
    %c136_202 = arith.constant 136 : index
    %c0_203 = arith.constant 0 : index
    %423 = vector.load %arg2[%c136_202, %c0_203] : memref<848x128xf32, #tpu.memory_space<vmem>>, vector<1x32xf32>
    %cst_204 = arith.constant dense<0.000000e+00> : vector<8xf32>
    %424 = vector.multi_reduction <add>, %419, %cst_204 [1] : vector<8x32xf32> to vector<8xf32>
    %425 = vector.shape_cast %424 : vector<8xf32> to vector<8x1xf32>
    %cst_205 = arith.constant 3.200000e+01 : f32
    %426 = vector.broadcast %cst_205 : f32 to vector<8x1xf32>
    %427 = arith.divf %425, %426 : vector<8x1xf32>
    %428 = vector.broadcast %427 : vector<8x1xf32> to vector<8x32xf32>
    %429 = arith.subf %419, %428 : vector<8x32xf32>
    %430 = arith.mulf %429, %429 : vector<8x32xf32>
    %cst_206 = arith.constant dense<0.000000e+00> : vector<8xf32>
    %431 = vector.multi_reduction <add>, %430, %cst_206 [1] : vector<8x32xf32> to vector<8xf32>
    %432 = vector.shape_cast %431 : vector<8xf32> to vector<8x1xf32>
    %cst_207 = arith.constant 3.200000e+01 : f32
    %433 = vector.broadcast %cst_207 : f32 to vector<8x1xf32>
    %434 = arith.divf %432, %433 : vector<8x1xf32>
    %cst_208 = arith.constant 9.99999974E-6 : f32
    %435 = vector.broadcast %cst_208 : f32 to vector<8x1xf32>
    %436 = arith.addf %434, %435 : vector<8x1xf32>
    %437 = math.rsqrt %436 : vector<8x1xf32>
    %438 = vector.broadcast %437 : vector<8x1xf32> to vector<8x32xf32>
    %439 = arith.mulf %429, %438 : vector<8x32xf32>
    %440 = vector.broadcast %420 : vector<1x32xf32> to vector<8x32xf32>
    %441 = arith.mulf %439, %440 : vector<8x32xf32>
    %442 = vector.broadcast %421 : vector<1x32xf32> to vector<8x32xf32>
    %443 = arith.addf %441, %442 : vector<8x32xf32>
    %cst_209 = arith.constant dense<0.000000e+00> : vector<8x32xf32>
    %444 = tpu.matmul %443, %422, %cst_209 {dimension_numbers = #tpu.dot_dimension_numbers<[1], [0], [0], [1], [0, 0, 1, 1], [], []>} : vector<8x32xf32>, vector<32x32xf32>, vector<8x32xf32> -> vector<8x32xf32>
    %445 = vector.broadcast %423 : vector<1x32xf32> to vector<8x32xf32>
    %446 = arith.addf %444, %445 : vector<8x32xf32>
    %cst_210 = arith.constant 5.000000e-01 : f32
    %447 = vector.broadcast %cst_210 : f32 to vector<8x32xf32>
    %448 = arith.mulf %447, %446 : vector<8x32xf32>
    %cst_211 = arith.constant 0.707106769 : f32
    %449 = vector.broadcast %cst_211 : f32 to vector<8x32xf32>
    %450 = arith.mulf %446, %449 : vector<8x32xf32>
    %451 = math.erf %450 : vector<8x32xf32>
    %cst_212 = arith.constant 1.000000e+00 : f32
    %452 = vector.broadcast %cst_212 : f32 to vector<8x32xf32>
    %453 = arith.addf %452, %451 : vector<8x32xf32>
    %454 = arith.mulf %448, %453 : vector<8x32xf32>
    %455 = arith.addf %454, %419 : vector<8x32xf32>
    %c480_213 = arith.constant 480 : index
    %c0_214 = arith.constant 0 : index
    %456 = vector.load %arg2[%c480_213, %c0_214] : memref<848x128xf32, #tpu.memory_space<vmem>>, vector<32x32xf32>
    %c416_215 = arith.constant 416 : index
    %c0_216 = arith.constant 0 : index
    %457 = vector.load %arg2[%c416_215, %c0_216] : memref<848x128xf32, #tpu.memory_space<vmem>>, vector<32x32xf32>
    %c512_217 = arith.constant 512 : index
    %c0_218 = arith.constant 0 : index
    %458 = vector.load %arg2[%c512_217, %c0_218] : memref<848x128xf32, #tpu.memory_space<vmem>>, vector<32x32xf32>
    %c400_219 = arith.constant 400 : index
    %c0_220 = arith.constant 0 : index
    %459 = vector.load %arg2[%c400_219, %c0_220] : memref<848x128xf32, #tpu.memory_space<vmem>>, vector<8x8xf32>
    %c408_221 = arith.constant 408 : index
    %c0_222 = arith.constant 0 : index
    %460 = vector.load %arg2[%c408_221, %c0_222] : memref<848x128xf32, #tpu.memory_space<vmem>>, vector<8x8xf32>
    %c448_223 = arith.constant 448 : index
    %c0_224 = arith.constant 0 : index
    %461 = vector.load %arg2[%c448_223, %c0_224] : memref<848x128xf32, #tpu.memory_space<vmem>>, vector<32x32xf32>
    %c392_225 = arith.constant 392 : index
    %c0_226 = arith.constant 0 : index
    %462 = vector.load %arg2[%c392_225, %c0_226] : memref<848x128xf32, #tpu.memory_space<vmem>>, vector<1x32xf32>
    %cst_227 = arith.constant dense<0.000000e+00> : vector<8x32xf32>
    %463 = tpu.matmul %455, %456, %cst_227 {dimension_numbers = #tpu.dot_dimension_numbers<[1], [0], [0], [1], [0, 0, 1, 1], [], []>} : vector<8x32xf32>, vector<32x32xf32>, vector<8x32xf32> -> vector<8x32xf32>
    %cst_228 = arith.constant dense<0.000000e+00> : vector<8x32xf32>
    %464 = tpu.matmul %455, %457, %cst_228 {dimension_numbers = #tpu.dot_dimension_numbers<[1], [0], [0], [1], [0, 0, 1, 1], [], []>} : vector<8x32xf32>, vector<32x32xf32>, vector<8x32xf32> -> vector<8x32xf32>
    %cst_229 = arith.constant dense<0.000000e+00> : vector<8x32xf32>
    %465 = tpu.matmul %455, %458, %cst_229 {dimension_numbers = #tpu.dot_dimension_numbers<[1], [0], [0], [1], [0, 0, 1, 1], [], []>} : vector<8x32xf32>, vector<32x32xf32>, vector<8x32xf32> -> vector<8x32xf32>
    %cst_230 = arith.constant dense<0.000000e+00> : vector<8x32xf32>
    %466 = tpu.matmul %459, %464, %cst_230 {dimension_numbers = #tpu.dot_dimension_numbers<[1], [0], [0], [1], [0, 0, 1, 1], [], []>} : vector<8x8xf32>, vector<8x32xf32>, vector<8x32xf32> -> vector<8x32xf32>
    %cst_231 = arith.constant dense<0.000000e+00> : vector<8x32xf32>
    %467 = tpu.matmul %460, %465, %cst_231 {dimension_numbers = #tpu.dot_dimension_numbers<[1], [0], [0], [1], [0, 0, 1, 1], [], []>} : vector<8x8xf32>, vector<8x32xf32>, vector<8x32xf32> -> vector<8x32xf32>
    %468 = vector.extract_strided_slice %463 {offsets = [0, 0], sizes = [8, 8], strides = [1, 1]} : vector<8x32xf32> to vector<8x8xf32>
    %469 = vector.extract_strided_slice %466 {offsets = [0, 0], sizes = [8, 8], strides = [1, 1]} : vector<8x32xf32> to vector<8x8xf32>
    "tpu.trace_start"() <{level = 10 : i32, message = "ne,ke->nk"}> : () -> ()
    %cst_232 = arith.constant dense<0.000000e+00> : vector<8x8xf32>
    %470 = tpu.matmul %468, %469, %cst_232 {dimension_numbers = #tpu.dot_dimension_numbers<[1], [1], [0], [0], [0, 0, 1, 0], [], []>} : vector<8x8xf32>, vector<8x8xf32>, vector<8x8xf32> -> vector<8x8xf32>
    "tpu.trace_stop"() : () -> ()
    %cst_233 = arith.constant dense<0xFF800000> : vector<8xf32>
    %471 = vector.multi_reduction <maximumf>, %470, %cst_233 [1] : vector<8x8xf32> to vector<8xf32>
    %472 = vector.shape_cast %471 : vector<8xf32> to vector<8x1xf32>
    %473 = vector.broadcast %472 : vector<8x1xf32> to vector<8x8xf32>
    %474 = arith.subf %470, %473 : vector<8x8xf32>
    %475 = math.exp %474 : vector<8x8xf32>
    %cst_234 = arith.constant dense<0.000000e+00> : vector<8xf32>
    %476 = vector.multi_reduction <add>, %475, %cst_234 [1] : vector<8x8xf32> to vector<8xf32>
    %477 = vector.shape_cast %476 : vector<8xf32> to vector<8x1xf32>
    %478 = tpu.reciprocal %477 {approx = true} : vector<8x1xf32> -> vector<8x1xf32>
    %479 = vector.broadcast %478 : vector<8x1xf32> to vector<8x8xf32>
    %480 = arith.mulf %475, %479 : vector<8x8xf32>
    %cst_235 = arith.constant 9.99999997E-7 : f32
    %481 = vector.broadcast %cst_235 : f32 to vector<8x8xf32>
    %482 = arith.addf %480, %481 : vector<8x8xf32>
    %483 = vector.extract_strided_slice %467 {offsets = [0, 0], sizes = [8, 8], strides = [1, 1]} : vector<8x32xf32> to vector<8x8xf32>
    %cst_236 = arith.constant dense<0.000000e+00> : vector<8x8xf32>
    %484 = tpu.matmul %482, %483, %cst_236 {dimension_numbers = #tpu.dot_dimension_numbers<[1], [0], [0], [1], [0, 0, 1, 1], [], []>} : vector<8x8xf32>, vector<8x8xf32>, vector<8x8xf32> -> vector<8x8xf32>
    %485 = vector.extract_strided_slice %463 {offsets = [0, 8], sizes = [8, 8], strides = [1, 1]} : vector<8x32xf32> to vector<8x8xf32>
    %486 = vector.extract_strided_slice %466 {offsets = [0, 8], sizes = [8, 8], strides = [1, 1]} : vector<8x32xf32> to vector<8x8xf32>
    "tpu.trace_start"() <{level = 10 : i32, message = "ne,ke->nk"}> : () -> ()
    %cst_237 = arith.constant dense<0.000000e+00> : vector<8x8xf32>
    %487 = tpu.matmul %485, %486, %cst_237 {dimension_numbers = #tpu.dot_dimension_numbers<[1], [1], [0], [0], [0, 0, 1, 0], [], []>} : vector<8x8xf32>, vector<8x8xf32>, vector<8x8xf32> -> vector<8x8xf32>
    "tpu.trace_stop"() : () -> ()
    %cst_238 = arith.constant dense<0xFF800000> : vector<8xf32>
    %488 = vector.multi_reduction <maximumf>, %487, %cst_238 [1] : vector<8x8xf32> to vector<8xf32>
    %489 = vector.shape_cast %488 : vector<8xf32> to vector<8x1xf32>
    %490 = vector.broadcast %489 : vector<8x1xf32> to vector<8x8xf32>
    %491 = arith.subf %487, %490 : vector<8x8xf32>
    %492 = math.exp %491 : vector<8x8xf32>
    %cst_239 = arith.constant dense<0.000000e+00> : vector<8xf32>
    %493 = vector.multi_reduction <add>, %492, %cst_239 [1] : vector<8x8xf32> to vector<8xf32>
    %494 = vector.shape_cast %493 : vector<8xf32> to vector<8x1xf32>
    %495 = tpu.reciprocal %494 {approx = true} : vector<8x1xf32> -> vector<8x1xf32>
    %496 = vector.broadcast %495 : vector<8x1xf32> to vector<8x8xf32>
    %497 = arith.mulf %492, %496 : vector<8x8xf32>
    %cst_240 = arith.constant 9.99999997E-7 : f32
    %498 = vector.broadcast %cst_240 : f32 to vector<8x8xf32>
    %499 = arith.addf %497, %498 : vector<8x8xf32>
    %500 = vector.extract_strided_slice %467 {offsets = [0, 8], sizes = [8, 8], strides = [1, 1]} : vector<8x32xf32> to vector<8x8xf32>
    %cst_241 = arith.constant dense<0.000000e+00> : vector<8x8xf32>
    %501 = tpu.matmul %499, %500, %cst_241 {dimension_numbers = #tpu.dot_dimension_numbers<[1], [0], [0], [1], [0, 0, 1, 1], [], []>} : vector<8x8xf32>, vector<8x8xf32>, vector<8x8xf32> -> vector<8x8xf32>
    %502 = vector.extract_strided_slice %463 {offsets = [0, 16], sizes = [8, 8], strides = [1, 1]} : vector<8x32xf32> to vector<8x8xf32>
    %503 = vector.extract_strided_slice %466 {offsets = [0, 16], sizes = [8, 8], strides = [1, 1]} : vector<8x32xf32> to vector<8x8xf32>
    "tpu.trace_start"() <{level = 10 : i32, message = "ne,ke->nk"}> : () -> ()
    %cst_242 = arith.constant dense<0.000000e+00> : vector<8x8xf32>
    %504 = tpu.matmul %502, %503, %cst_242 {dimension_numbers = #tpu.dot_dimension_numbers<[1], [1], [0], [0], [0, 0, 1, 0], [], []>} : vector<8x8xf32>, vector<8x8xf32>, vector<8x8xf32> -> vector<8x8xf32>
    "tpu.trace_stop"() : () -> ()
    %cst_243 = arith.constant dense<0xFF800000> : vector<8xf32>
    %505 = vector.multi_reduction <maximumf>, %504, %cst_243 [1] : vector<8x8xf32> to vector<8xf32>
    %506 = vector.shape_cast %505 : vector<8xf32> to vector<8x1xf32>
    %507 = vector.broadcast %506 : vector<8x1xf32> to vector<8x8xf32>
    %508 = arith.subf %504, %507 : vector<8x8xf32>
    %509 = math.exp %508 : vector<8x8xf32>
    %cst_244 = arith.constant dense<0.000000e+00> : vector<8xf32>
    %510 = vector.multi_reduction <add>, %509, %cst_244 [1] : vector<8x8xf32> to vector<8xf32>
    %511 = vector.shape_cast %510 : vector<8xf32> to vector<8x1xf32>
    %512 = tpu.reciprocal %511 {approx = true} : vector<8x1xf32> -> vector<8x1xf32>
    %513 = vector.broadcast %512 : vector<8x1xf32> to vector<8x8xf32>
    %514 = arith.mulf %509, %513 : vector<8x8xf32>
    %cst_245 = arith.constant 9.99999997E-7 : f32
    %515 = vector.broadcast %cst_245 : f32 to vector<8x8xf32>
    %516 = arith.addf %514, %515 : vector<8x8xf32>
    %517 = vector.extract_strided_slice %467 {offsets = [0, 16], sizes = [8, 8], strides = [1, 1]} : vector<8x32xf32> to vector<8x8xf32>
    %cst_246 = arith.constant dense<0.000000e+00> : vector<8x8xf32>
    %518 = tpu.matmul %516, %517, %cst_246 {dimension_numbers = #tpu.dot_dimension_numbers<[1], [0], [0], [1], [0, 0, 1, 1], [], []>} : vector<8x8xf32>, vector<8x8xf32>, vector<8x8xf32> -> vector<8x8xf32>
    %519 = vector.extract_strided_slice %463 {offsets = [0, 24], sizes = [8, 8], strides = [1, 1]} : vector<8x32xf32> to vector<8x8xf32>
    %520 = vector.extract_strided_slice %466 {offsets = [0, 24], sizes = [8, 8], strides = [1, 1]} : vector<8x32xf32> to vector<8x8xf32>
    "tpu.trace_start"() <{level = 10 : i32, message = "ne,ke->nk"}> : () -> ()
    %cst_247 = arith.constant dense<0.000000e+00> : vector<8x8xf32>
    %521 = tpu.matmul %519, %520, %cst_247 {dimension_numbers = #tpu.dot_dimension_numbers<[1], [1], [0], [0], [0, 0, 1, 0], [], []>} : vector<8x8xf32>, vector<8x8xf32>, vector<8x8xf32> -> vector<8x8xf32>
    "tpu.trace_stop"() : () -> ()
    %cst_248 = arith.constant dense<0xFF800000> : vector<8xf32>
    %522 = vector.multi_reduction <maximumf>, %521, %cst_248 [1] : vector<8x8xf32> to vector<8xf32>
    %523 = vector.shape_cast %522 : vector<8xf32> to vector<8x1xf32>
    %524 = vector.broadcast %523 : vector<8x1xf32> to vector<8x8xf32>
    %525 = arith.subf %521, %524 : vector<8x8xf32>
    %526 = math.exp %525 : vector<8x8xf32>
    %cst_249 = arith.constant dense<0.000000e+00> : vector<8xf32>
    %527 = vector.multi_reduction <add>, %526, %cst_249 [1] : vector<8x8xf32> to vector<8xf32>
    %528 = vector.shape_cast %527 : vector<8xf32> to vector<8x1xf32>
    %529 = tpu.reciprocal %528 {approx = true} : vector<8x1xf32> -> vector<8x1xf32>
    %530 = vector.broadcast %529 : vector<8x1xf32> to vector<8x8xf32>
    %531 = arith.mulf %526, %530 : vector<8x8xf32>
    %cst_250 = arith.constant 9.99999997E-7 : f32
    %532 = vector.broadcast %cst_250 : f32 to vector<8x8xf32>
    %533 = arith.addf %531, %532 : vector<8x8xf32>
    %534 = vector.extract_strided_slice %467 {offsets = [0, 24], sizes = [8, 8], strides = [1, 1]} : vector<8x32xf32> to vector<8x8xf32>
    %cst_251 = arith.constant dense<0.000000e+00> : vector<8x8xf32>
    %535 = tpu.matmul %533, %534, %cst_251 {dimension_numbers = #tpu.dot_dimension_numbers<[1], [0], [0], [1], [0, 0, 1, 1], [], []>} : vector<8x8xf32>, vector<8x8xf32>, vector<8x8xf32> -> vector<8x8xf32>
    %536 = tpu.concatenate %484, %501, %518, %535 in 1 : vector<8x8xf32>, vector<8x8xf32>, vector<8x8xf32>, vector<8x8xf32> -> vector<8x32xf32>
    %cst_252 = arith.constant dense<0.000000e+00> : vector<8x32xf32>
    %537 = tpu.matmul %536, %461, %cst_252 {dimension_numbers = #tpu.dot_dimension_numbers<[1], [0], [0], [1], [0, 0, 1, 1], [], []>} : vector<8x32xf32>, vector<32x32xf32>, vector<8x32xf32> -> vector<8x32xf32>
    %538 = vector.broadcast %462 : vector<1x32xf32> to vector<8x32xf32>
    %539 = arith.addf %537, %538 : vector<8x32xf32>
    %540 = arith.addf %539, %455 : vector<8x32xf32>
    %c560_253 = arith.constant 560 : index
    %c0_254 = arith.constant 0 : index
    %541 = vector.load %arg2[%c560_253, %c0_254] : memref<848x128xf32, #tpu.memory_space<vmem>>, vector<1x32xf32>
    %c552_255 = arith.constant 552 : index
    %c0_256 = arith.constant 0 : index
    %542 = vector.load %arg2[%c552_255, %c0_256] : memref<848x128xf32, #tpu.memory_space<vmem>>, vector<1x32xf32>
    %c568_257 = arith.constant 568 : index
    %c0_258 = arith.constant 0 : index
    %543 = vector.load %arg2[%c568_257, %c0_258] : memref<848x128xf32, #tpu.memory_space<vmem>>, vector<32x32xf32>
    %c544_259 = arith.constant 544 : index
    %c0_260 = arith.constant 0 : index
    %544 = vector.load %arg2[%c544_259, %c0_260] : memref<848x128xf32, #tpu.memory_space<vmem>>, vector<1x32xf32>
    %cst_261 = arith.constant dense<0.000000e+00> : vector<8xf32>
    %545 = vector.multi_reduction <add>, %540, %cst_261 [1] : vector<8x32xf32> to vector<8xf32>
    %546 = vector.shape_cast %545 : vector<8xf32> to vector<8x1xf32>
    %cst_262 = arith.constant 3.200000e+01 : f32
    %547 = vector.broadcast %cst_262 : f32 to vector<8x1xf32>
    %548 = arith.divf %546, %547 : vector<8x1xf32>
    %549 = vector.broadcast %548 : vector<8x1xf32> to vector<8x32xf32>
    %550 = arith.subf %540, %549 : vector<8x32xf32>
    %551 = arith.mulf %550, %550 : vector<8x32xf32>
    %cst_263 = arith.constant dense<0.000000e+00> : vector<8xf32>
    %552 = vector.multi_reduction <add>, %551, %cst_263 [1] : vector<8x32xf32> to vector<8xf32>
    %553 = vector.shape_cast %552 : vector<8xf32> to vector<8x1xf32>
    %cst_264 = arith.constant 3.200000e+01 : f32
    %554 = vector.broadcast %cst_264 : f32 to vector<8x1xf32>
    %555 = arith.divf %553, %554 : vector<8x1xf32>
    %cst_265 = arith.constant 9.99999974E-6 : f32
    %556 = vector.broadcast %cst_265 : f32 to vector<8x1xf32>
    %557 = arith.addf %555, %556 : vector<8x1xf32>
    %558 = math.rsqrt %557 : vector<8x1xf32>
    %559 = vector.broadcast %558 : vector<8x1xf32> to vector<8x32xf32>
    %560 = arith.mulf %550, %559 : vector<8x32xf32>
    %561 = vector.broadcast %541 : vector<1x32xf32> to vector<8x32xf32>
    %562 = arith.mulf %560, %561 : vector<8x32xf32>
    %563 = vector.broadcast %542 : vector<1x32xf32> to vector<8x32xf32>
    %564 = arith.addf %562, %563 : vector<8x32xf32>
    %cst_266 = arith.constant dense<0.000000e+00> : vector<8x32xf32>
    %565 = tpu.matmul %564, %543, %cst_266 {dimension_numbers = #tpu.dot_dimension_numbers<[1], [0], [0], [1], [0, 0, 1, 1], [], []>} : vector<8x32xf32>, vector<32x32xf32>, vector<8x32xf32> -> vector<8x32xf32>
    %566 = vector.broadcast %544 : vector<1x32xf32> to vector<8x32xf32>
    %567 = arith.addf %565, %566 : vector<8x32xf32>
    %cst_267 = arith.constant 5.000000e-01 : f32
    %568 = vector.broadcast %cst_267 : f32 to vector<8x32xf32>
    %569 = arith.mulf %568, %567 : vector<8x32xf32>
    %cst_268 = arith.constant 0.707106769 : f32
    %570 = vector.broadcast %cst_268 : f32 to vector<8x32xf32>
    %571 = arith.mulf %567, %570 : vector<8x32xf32>
    %572 = math.erf %571 : vector<8x32xf32>
    %cst_269 = arith.constant 1.000000e+00 : f32
    %573 = vector.broadcast %cst_269 : f32 to vector<8x32xf32>
    %574 = arith.addf %573, %572 : vector<8x32xf32>
    %575 = arith.mulf %569, %574 : vector<8x32xf32>
    %576 = arith.addf %575, %540 : vector<8x32xf32>
    %c688_270 = arith.constant 688 : index
    %c0_271 = arith.constant 0 : index
    %577 = vector.load %arg2[%c688_270, %c0_271] : memref<848x128xf32, #tpu.memory_space<vmem>>, vector<32x32xf32>
    %c624_272 = arith.constant 624 : index
    %c0_273 = arith.constant 0 : index
    %578 = vector.load %arg2[%c624_272, %c0_273] : memref<848x128xf32, #tpu.memory_space<vmem>>, vector<32x32xf32>
    %c720_274 = arith.constant 720 : index
    %c0_275 = arith.constant 0 : index
    %579 = vector.load %arg2[%c720_274, %c0_275] : memref<848x128xf32, #tpu.memory_space<vmem>>, vector<32x32xf32>
    %c608_276 = arith.constant 608 : index
    %c0_277 = arith.constant 0 : index
    %580 = vector.load %arg2[%c608_276, %c0_277] : memref<848x128xf32, #tpu.memory_space<vmem>>, vector<8x8xf32>
    %c616_278 = arith.constant 616 : index
    %c0_279 = arith.constant 0 : index
    %581 = vector.load %arg2[%c616_278, %c0_279] : memref<848x128xf32, #tpu.memory_space<vmem>>, vector<8x8xf32>
    %c656_280 = arith.constant 656 : index
    %c0_281 = arith.constant 0 : index
    %582 = vector.load %arg2[%c656_280, %c0_281] : memref<848x128xf32, #tpu.memory_space<vmem>>, vector<32x32xf32>
    %c600_282 = arith.constant 600 : index
    %c0_283 = arith.constant 0 : index
    %583 = vector.load %arg2[%c600_282, %c0_283] : memref<848x128xf32, #tpu.memory_space<vmem>>, vector<1x32xf32>
    %cst_284 = arith.constant dense<0.000000e+00> : vector<8x32xf32>
    %584 = tpu.matmul %576, %577, %cst_284 {dimension_numbers = #tpu.dot_dimension_numbers<[1], [0], [0], [1], [0, 0, 1, 1], [], []>} : vector<8x32xf32>, vector<32x32xf32>, vector<8x32xf32> -> vector<8x32xf32>
    %cst_285 = arith.constant dense<0.000000e+00> : vector<8x32xf32>
    %585 = tpu.matmul %576, %578, %cst_285 {dimension_numbers = #tpu.dot_dimension_numbers<[1], [0], [0], [1], [0, 0, 1, 1], [], []>} : vector<8x32xf32>, vector<32x32xf32>, vector<8x32xf32> -> vector<8x32xf32>
    %cst_286 = arith.constant dense<0.000000e+00> : vector<8x32xf32>
    %586 = tpu.matmul %576, %579, %cst_286 {dimension_numbers = #tpu.dot_dimension_numbers<[1], [0], [0], [1], [0, 0, 1, 1], [], []>} : vector<8x32xf32>, vector<32x32xf32>, vector<8x32xf32> -> vector<8x32xf32>
    %cst_287 = arith.constant dense<0.000000e+00> : vector<8x32xf32>
    %587 = tpu.matmul %580, %585, %cst_287 {dimension_numbers = #tpu.dot_dimension_numbers<[1], [0], [0], [1], [0, 0, 1, 1], [], []>} : vector<8x8xf32>, vector<8x32xf32>, vector<8x32xf32> -> vector<8x32xf32>
    %cst_288 = arith.constant dense<0.000000e+00> : vector<8x32xf32>
    %588 = tpu.matmul %581, %586, %cst_288 {dimension_numbers = #tpu.dot_dimension_numbers<[1], [0], [0], [1], [0, 0, 1, 1], [], []>} : vector<8x8xf32>, vector<8x32xf32>, vector<8x32xf32> -> vector<8x32xf32>
    %589 = vector.extract_strided_slice %584 {offsets = [0, 0], sizes = [8, 8], strides = [1, 1]} : vector<8x32xf32> to vector<8x8xf32>
    %590 = vector.extract_strided_slice %587 {offsets = [0, 0], sizes = [8, 8], strides = [1, 1]} : vector<8x32xf32> to vector<8x8xf32>
    "tpu.trace_start"() <{level = 10 : i32, message = "ne,ke->nk"}> : () -> ()
    %cst_289 = arith.constant dense<0.000000e+00> : vector<8x8xf32>
    %591 = tpu.matmul %589, %590, %cst_289 {dimension_numbers = #tpu.dot_dimension_numbers<[1], [1], [0], [0], [0, 0, 1, 0], [], []>} : vector<8x8xf32>, vector<8x8xf32>, vector<8x8xf32> -> vector<8x8xf32>
    "tpu.trace_stop"() : () -> ()
    %cst_290 = arith.constant dense<0xFF800000> : vector<8xf32>
    %592 = vector.multi_reduction <maximumf>, %591, %cst_290 [1] : vector<8x8xf32> to vector<8xf32>
    %593 = vector.shape_cast %592 : vector<8xf32> to vector<8x1xf32>
    %594 = vector.broadcast %593 : vector<8x1xf32> to vector<8x8xf32>
    %595 = arith.subf %591, %594 : vector<8x8xf32>
    %596 = math.exp %595 : vector<8x8xf32>
    %cst_291 = arith.constant dense<0.000000e+00> : vector<8xf32>
    %597 = vector.multi_reduction <add>, %596, %cst_291 [1] : vector<8x8xf32> to vector<8xf32>
    %598 = vector.shape_cast %597 : vector<8xf32> to vector<8x1xf32>
    %599 = tpu.reciprocal %598 {approx = true} : vector<8x1xf32> -> vector<8x1xf32>
    %600 = vector.broadcast %599 : vector<8x1xf32> to vector<8x8xf32>
    %601 = arith.mulf %596, %600 : vector<8x8xf32>
    %cst_292 = arith.constant 9.99999997E-7 : f32
    %602 = vector.broadcast %cst_292 : f32 to vector<8x8xf32>
    %603 = arith.addf %601, %602 : vector<8x8xf32>
    %604 = vector.extract_strided_slice %588 {offsets = [0, 0], sizes = [8, 8], strides = [1, 1]} : vector<8x32xf32> to vector<8x8xf32>
    %cst_293 = arith.constant dense<0.000000e+00> : vector<8x8xf32>
    %605 = tpu.matmul %603, %604, %cst_293 {dimension_numbers = #tpu.dot_dimension_numbers<[1], [0], [0], [1], [0, 0, 1, 1], [], []>} : vector<8x8xf32>, vector<8x8xf32>, vector<8x8xf32> -> vector<8x8xf32>
    %606 = vector.extract_strided_slice %584 {offsets = [0, 8], sizes = [8, 8], strides = [1, 1]} : vector<8x32xf32> to vector<8x8xf32>
    %607 = vector.extract_strided_slice %587 {offsets = [0, 8], sizes = [8, 8], strides = [1, 1]} : vector<8x32xf32> to vector<8x8xf32>
    "tpu.trace_start"() <{level = 10 : i32, message = "ne,ke->nk"}> : () -> ()
    %cst_294 = arith.constant dense<0.000000e+00> : vector<8x8xf32>
    %608 = tpu.matmul %606, %607, %cst_294 {dimension_numbers = #tpu.dot_dimension_numbers<[1], [1], [0], [0], [0, 0, 1, 0], [], []>} : vector<8x8xf32>, vector<8x8xf32>, vector<8x8xf32> -> vector<8x8xf32>
    "tpu.trace_stop"() : () -> ()
    %cst_295 = arith.constant dense<0xFF800000> : vector<8xf32>
    %609 = vector.multi_reduction <maximumf>, %608, %cst_295 [1] : vector<8x8xf32> to vector<8xf32>
    %610 = vector.shape_cast %609 : vector<8xf32> to vector<8x1xf32>
    %611 = vector.broadcast %610 : vector<8x1xf32> to vector<8x8xf32>
    %612 = arith.subf %608, %611 : vector<8x8xf32>
    %613 = math.exp %612 : vector<8x8xf32>
    %cst_296 = arith.constant dense<0.000000e+00> : vector<8xf32>
    %614 = vector.multi_reduction <add>, %613, %cst_296 [1] : vector<8x8xf32> to vector<8xf32>
    %615 = vector.shape_cast %614 : vector<8xf32> to vector<8x1xf32>
    %616 = tpu.reciprocal %615 {approx = true} : vector<8x1xf32> -> vector<8x1xf32>
    %617 = vector.broadcast %616 : vector<8x1xf32> to vector<8x8xf32>
    %618 = arith.mulf %613, %617 : vector<8x8xf32>
    %cst_297 = arith.constant 9.99999997E-7 : f32
    %619 = vector.broadcast %cst_297 : f32 to vector<8x8xf32>
    %620 = arith.addf %618, %619 : vector<8x8xf32>
    %621 = vector.extract_strided_slice %588 {offsets = [0, 8], sizes = [8, 8], strides = [1, 1]} : vector<8x32xf32> to vector<8x8xf32>
    %cst_298 = arith.constant dense<0.000000e+00> : vector<8x8xf32>
    %622 = tpu.matmul %620, %621, %cst_298 {dimension_numbers = #tpu.dot_dimension_numbers<[1], [0], [0], [1], [0, 0, 1, 1], [], []>} : vector<8x8xf32>, vector<8x8xf32>, vector<8x8xf32> -> vector<8x8xf32>
    %623 = vector.extract_strided_slice %584 {offsets = [0, 16], sizes = [8, 8], strides = [1, 1]} : vector<8x32xf32> to vector<8x8xf32>
    %624 = vector.extract_strided_slice %587 {offsets = [0, 16], sizes = [8, 8], strides = [1, 1]} : vector<8x32xf32> to vector<8x8xf32>
    "tpu.trace_start"() <{level = 10 : i32, message = "ne,ke->nk"}> : () -> ()
    %cst_299 = arith.constant dense<0.000000e+00> : vector<8x8xf32>
    %625 = tpu.matmul %623, %624, %cst_299 {dimension_numbers = #tpu.dot_dimension_numbers<[1], [1], [0], [0], [0, 0, 1, 0], [], []>} : vector<8x8xf32>, vector<8x8xf32>, vector<8x8xf32> -> vector<8x8xf32>
    "tpu.trace_stop"() : () -> ()
    %cst_300 = arith.constant dense<0xFF800000> : vector<8xf32>
    %626 = vector.multi_reduction <maximumf>, %625, %cst_300 [1] : vector<8x8xf32> to vector<8xf32>
    %627 = vector.shape_cast %626 : vector<8xf32> to vector<8x1xf32>
    %628 = vector.broadcast %627 : vector<8x1xf32> to vector<8x8xf32>
    %629 = arith.subf %625, %628 : vector<8x8xf32>
    %630 = math.exp %629 : vector<8x8xf32>
    %cst_301 = arith.constant dense<0.000000e+00> : vector<8xf32>
    %631 = vector.multi_reduction <add>, %630, %cst_301 [1] : vector<8x8xf32> to vector<8xf32>
    %632 = vector.shape_cast %631 : vector<8xf32> to vector<8x1xf32>
    %633 = tpu.reciprocal %632 {approx = true} : vector<8x1xf32> -> vector<8x1xf32>
    %634 = vector.broadcast %633 : vector<8x1xf32> to vector<8x8xf32>
    %635 = arith.mulf %630, %634 : vector<8x8xf32>
    %cst_302 = arith.constant 9.99999997E-7 : f32
    %636 = vector.broadcast %cst_302 : f32 to vector<8x8xf32>
    %637 = arith.addf %635, %636 : vector<8x8xf32>
    %638 = vector.extract_strided_slice %588 {offsets = [0, 16], sizes = [8, 8], strides = [1, 1]} : vector<8x32xf32> to vector<8x8xf32>
    %cst_303 = arith.constant dense<0.000000e+00> : vector<8x8xf32>
    %639 = tpu.matmul %637, %638, %cst_303 {dimension_numbers = #tpu.dot_dimension_numbers<[1], [0], [0], [1], [0, 0, 1, 1], [], []>} : vector<8x8xf32>, vector<8x8xf32>, vector<8x8xf32> -> vector<8x8xf32>
    %640 = vector.extract_strided_slice %584 {offsets = [0, 24], sizes = [8, 8], strides = [1, 1]} : vector<8x32xf32> to vector<8x8xf32>
    %641 = vector.extract_strided_slice %587 {offsets = [0, 24], sizes = [8, 8], strides = [1, 1]} : vector<8x32xf32> to vector<8x8xf32>
    "tpu.trace_start"() <{level = 10 : i32, message = "ne,ke->nk"}> : () -> ()
    %cst_304 = arith.constant dense<0.000000e+00> : vector<8x8xf32>
    %642 = tpu.matmul %640, %641, %cst_304 {dimension_numbers = #tpu.dot_dimension_numbers<[1], [1], [0], [0], [0, 0, 1, 0], [], []>} : vector<8x8xf32>, vector<8x8xf32>, vector<8x8xf32> -> vector<8x8xf32>
    "tpu.trace_stop"() : () -> ()
    %cst_305 = arith.constant dense<0xFF800000> : vector<8xf32>
    %643 = vector.multi_reduction <maximumf>, %642, %cst_305 [1] : vector<8x8xf32> to vector<8xf32>
    %644 = vector.shape_cast %643 : vector<8xf32> to vector<8x1xf32>
    %645 = vector.broadcast %644 : vector<8x1xf32> to vector<8x8xf32>
    %646 = arith.subf %642, %645 : vector<8x8xf32>
    %647 = math.exp %646 : vector<8x8xf32>
    %cst_306 = arith.constant dense<0.000000e+00> : vector<8xf32>
    %648 = vector.multi_reduction <add>, %647, %cst_306 [1] : vector<8x8xf32> to vector<8xf32>
    %649 = vector.shape_cast %648 : vector<8xf32> to vector<8x1xf32>
    %650 = tpu.reciprocal %649 {approx = true} : vector<8x1xf32> -> vector<8x1xf32>
    %651 = vector.broadcast %650 : vector<8x1xf32> to vector<8x8xf32>
    %652 = arith.mulf %647, %651 : vector<8x8xf32>
    %cst_307 = arith.constant 9.99999997E-7 : f32
    %653 = vector.broadcast %cst_307 : f32 to vector<8x8xf32>
    %654 = arith.addf %652, %653 : vector<8x8xf32>
    %655 = vector.extract_strided_slice %588 {offsets = [0, 24], sizes = [8, 8], strides = [1, 1]} : vector<8x32xf32> to vector<8x8xf32>
    %cst_308 = arith.constant dense<0.000000e+00> : vector<8x8xf32>
    %656 = tpu.matmul %654, %655, %cst_308 {dimension_numbers = #tpu.dot_dimension_numbers<[1], [0], [0], [1], [0, 0, 1, 1], [], []>} : vector<8x8xf32>, vector<8x8xf32>, vector<8x8xf32> -> vector<8x8xf32>
    %657 = tpu.concatenate %605, %622, %639, %656 in 1 : vector<8x8xf32>, vector<8x8xf32>, vector<8x8xf32>, vector<8x8xf32> -> vector<8x32xf32>
    %cst_309 = arith.constant dense<0.000000e+00> : vector<8x32xf32>
    %658 = tpu.matmul %657, %582, %cst_309 {dimension_numbers = #tpu.dot_dimension_numbers<[1], [0], [0], [1], [0, 0, 1, 1], [], []>} : vector<8x32xf32>, vector<32x32xf32>, vector<8x32xf32> -> vector<8x32xf32>
    %659 = vector.broadcast %583 : vector<1x32xf32> to vector<8x32xf32>
    %660 = arith.addf %658, %659 : vector<8x32xf32>
    %661 = arith.addf %660, %576 : vector<8x32xf32>
    %c768_310 = arith.constant 768 : index
    %c0_311 = arith.constant 0 : index
    %662 = vector.load %arg2[%c768_310, %c0_311] : memref<848x128xf32, #tpu.memory_space<vmem>>, vector<1x32xf32>
    %c760_312 = arith.constant 760 : index
    %c0_313 = arith.constant 0 : index
    %663 = vector.load %arg2[%c760_312, %c0_313] : memref<848x128xf32, #tpu.memory_space<vmem>>, vector<1x32xf32>
    %c776_314 = arith.constant 776 : index
    %c0_315 = arith.constant 0 : index
    %664 = vector.load %arg2[%c776_314, %c0_315] : memref<848x128xf32, #tpu.memory_space<vmem>>, vector<32x32xf32>
    %c752_316 = arith.constant 752 : index
    %c0_317 = arith.constant 0 : index
    %665 = vector.load %arg2[%c752_316, %c0_317] : memref<848x128xf32, #tpu.memory_space<vmem>>, vector<1x32xf32>
    %cst_318 = arith.constant dense<0.000000e+00> : vector<8xf32>
    %666 = vector.multi_reduction <add>, %661, %cst_318 [1] : vector<8x32xf32> to vector<8xf32>
    %667 = vector.shape_cast %666 : vector<8xf32> to vector<8x1xf32>
    %cst_319 = arith.constant 3.200000e+01 : f32
    %668 = vector.broadcast %cst_319 : f32 to vector<8x1xf32>
    %669 = arith.divf %667, %668 : vector<8x1xf32>
    %670 = vector.broadcast %669 : vector<8x1xf32> to vector<8x32xf32>
    %671 = arith.subf %661, %670 : vector<8x32xf32>
    %672 = arith.mulf %671, %671 : vector<8x32xf32>
    %cst_320 = arith.constant dense<0.000000e+00> : vector<8xf32>
    %673 = vector.multi_reduction <add>, %672, %cst_320 [1] : vector<8x32xf32> to vector<8xf32>
    %674 = vector.shape_cast %673 : vector<8xf32> to vector<8x1xf32>
    %cst_321 = arith.constant 3.200000e+01 : f32
    %675 = vector.broadcast %cst_321 : f32 to vector<8x1xf32>
    %676 = arith.divf %674, %675 : vector<8x1xf32>
    %cst_322 = arith.constant 9.99999974E-6 : f32
    %677 = vector.broadcast %cst_322 : f32 to vector<8x1xf32>
    %678 = arith.addf %676, %677 : vector<8x1xf32>
    %679 = math.rsqrt %678 : vector<8x1xf32>
    %680 = vector.broadcast %679 : vector<8x1xf32> to vector<8x32xf32>
    %681 = arith.mulf %671, %680 : vector<8x32xf32>
    %682 = vector.broadcast %662 : vector<1x32xf32> to vector<8x32xf32>
    %683 = arith.mulf %681, %682 : vector<8x32xf32>
    %684 = vector.broadcast %663 : vector<1x32xf32> to vector<8x32xf32>
    %685 = arith.addf %683, %684 : vector<8x32xf32>
    %cst_323 = arith.constant dense<0.000000e+00> : vector<8x32xf32>
    %686 = tpu.matmul %685, %664, %cst_323 {dimension_numbers = #tpu.dot_dimension_numbers<[1], [0], [0], [1], [0, 0, 1, 1], [], []>} : vector<8x32xf32>, vector<32x32xf32>, vector<8x32xf32> -> vector<8x32xf32>
    %687 = vector.broadcast %665 : vector<1x32xf32> to vector<8x32xf32>
    %688 = arith.addf %686, %687 : vector<8x32xf32>
    %cst_324 = arith.constant 5.000000e-01 : f32
    %689 = vector.broadcast %cst_324 : f32 to vector<8x32xf32>
    %690 = arith.mulf %689, %688 : vector<8x32xf32>
    %cst_325 = arith.constant 0.707106769 : f32
    %691 = vector.broadcast %cst_325 : f32 to vector<8x32xf32>
    %692 = arith.mulf %688, %691 : vector<8x32xf32>
    %693 = math.erf %692 : vector<8x32xf32>
    %cst_326 = arith.constant 1.000000e+00 : f32
    %694 = vector.broadcast %cst_326 : f32 to vector<8x32xf32>
    %695 = arith.addf %694, %693 : vector<8x32xf32>
    %696 = arith.mulf %690, %695 : vector<8x32xf32>
    %697 = arith.addf %696, %661 : vector<8x32xf32>
    %c264_327 = arith.constant 264 : index
    %c0_328 = arith.constant 0 : index
    %698 = vector.load %arg2[%c264_327, %c0_328] : memref<848x128xf32, #tpu.memory_space<vmem>>, vector<32x16xf32>
    %c216_329 = arith.constant 216 : index
    %c0_330 = arith.constant 0 : index
    %699 = vector.load %arg2[%c216_329, %c0_330] : memref<848x128xf32, #tpu.memory_space<vmem>>, vector<32x16xf32>
    %c296_331 = arith.constant 296 : index
    %c0_332 = arith.constant 0 : index
    %700 = vector.load %arg2[%c296_331, %c0_332] : memref<848x128xf32, #tpu.memory_space<vmem>>, vector<32x16xf32>
    %c200_333 = arith.constant 200 : index
    %c0_334 = arith.constant 0 : index
    %701 = vector.load %arg2[%c200_333, %c0_334] : memref<848x128xf32, #tpu.memory_space<vmem>>, vector<8x8xf32>
    %c208_335 = arith.constant 208 : index
    %c0_336 = arith.constant 0 : index
    %702 = vector.load %arg2[%c208_335, %c0_336] : memref<848x128xf32, #tpu.memory_space<vmem>>, vector<8x8xf32>
    %c248_337 = arith.constant 248 : index
    %c0_338 = arith.constant 0 : index
    %703 = vector.load %arg2[%c248_337, %c0_338] : memref<848x128xf32, #tpu.memory_space<vmem>>, vector<16x32xf32>
    %c192_339 = arith.constant 192 : index
    %c0_340 = arith.constant 0 : index
    %704 = vector.load %arg2[%c192_339, %c0_340] : memref<848x128xf32, #tpu.memory_space<vmem>>, vector<1x32xf32>
    %cst_341 = arith.constant dense<0.000000e+00> : vector<8x16xf32>
    %705 = tpu.matmul %389, %698, %cst_341 {dimension_numbers = #tpu.dot_dimension_numbers<[1], [0], [0], [1], [0, 0, 1, 1], [], []>} : vector<8x32xf32>, vector<32x16xf32>, vector<8x16xf32> -> vector<8x16xf32>
    %cst_342 = arith.constant dense<0.000000e+00> : vector<8x16xf32>
    %706 = tpu.matmul %697, %699, %cst_342 {dimension_numbers = #tpu.dot_dimension_numbers<[1], [0], [0], [1], [0, 0, 1, 1], [], []>} : vector<8x32xf32>, vector<32x16xf32>, vector<8x16xf32> -> vector<8x16xf32>
    %cst_343 = arith.constant dense<0.000000e+00> : vector<8x16xf32>
    %707 = tpu.matmul %697, %700, %cst_343 {dimension_numbers = #tpu.dot_dimension_numbers<[1], [0], [0], [1], [0, 0, 1, 1], [], []>} : vector<8x32xf32>, vector<32x16xf32>, vector<8x16xf32> -> vector<8x16xf32>
    %cst_344 = arith.constant dense<0.000000e+00> : vector<8x16xf32>
    %708 = tpu.matmul %701, %706, %cst_344 {dimension_numbers = #tpu.dot_dimension_numbers<[1], [0], [0], [1], [0, 0, 1, 1], [], []>} : vector<8x8xf32>, vector<8x16xf32>, vector<8x16xf32> -> vector<8x16xf32>
    %cst_345 = arith.constant dense<0.000000e+00> : vector<8x16xf32>
    %709 = tpu.matmul %702, %707, %cst_345 {dimension_numbers = #tpu.dot_dimension_numbers<[1], [0], [0], [1], [0, 0, 1, 1], [], []>} : vector<8x8xf32>, vector<8x16xf32>, vector<8x16xf32> -> vector<8x16xf32>
    "tpu.trace_start"() <{level = 10 : i32, message = "ne,ke->nk"}> : () -> ()
    %cst_346 = arith.constant dense<0.000000e+00> : vector<8x8xf32>
    %710 = tpu.matmul %705, %708, %cst_346 {dimension_numbers = #tpu.dot_dimension_numbers<[1], [1], [0], [0], [0, 0, 1, 0], [], []>} : vector<8x16xf32>, vector<8x16xf32>, vector<8x8xf32> -> vector<8x8xf32>
    "tpu.trace_stop"() : () -> ()
    %cst_347 = arith.constant dense<0xFF800000> : vector<8xf32>
    %711 = vector.multi_reduction <maximumf>, %710, %cst_347 [1] : vector<8x8xf32> to vector<8xf32>
    %712 = vector.shape_cast %711 : vector<8xf32> to vector<8x1xf32>
    %713 = vector.broadcast %712 : vector<8x1xf32> to vector<8x8xf32>
    %714 = arith.subf %710, %713 : vector<8x8xf32>
    %715 = math.exp %714 : vector<8x8xf32>
    %cst_348 = arith.constant dense<0.000000e+00> : vector<8xf32>
    %716 = vector.multi_reduction <add>, %715, %cst_348 [1] : vector<8x8xf32> to vector<8xf32>
    %717 = vector.shape_cast %716 : vector<8xf32> to vector<8x1xf32>
    %718 = tpu.reciprocal %717 {approx = true} : vector<8x1xf32> -> vector<8x1xf32>
    %719 = vector.broadcast %718 : vector<8x1xf32> to vector<8x8xf32>
    %720 = arith.mulf %715, %719 : vector<8x8xf32>
    %cst_349 = arith.constant 9.99999997E-7 : f32
    %721 = vector.broadcast %cst_349 : f32 to vector<8x8xf32>
    %722 = arith.addf %720, %721 : vector<8x8xf32>
    %cst_350 = arith.constant dense<0.000000e+00> : vector<8x16xf32>
    %723 = tpu.matmul %722, %709, %cst_350 {dimension_numbers = #tpu.dot_dimension_numbers<[1], [0], [0], [1], [0, 0, 1, 1], [], []>} : vector<8x8xf32>, vector<8x16xf32>, vector<8x16xf32> -> vector<8x16xf32>
    %cst_351 = arith.constant dense<0.000000e+00> : vector<8x32xf32>
    %724 = tpu.matmul %723, %703, %cst_351 {dimension_numbers = #tpu.dot_dimension_numbers<[1], [0], [0], [1], [0, 0, 1, 1], [], []>} : vector<8x16xf32>, vector<16x32xf32>, vector<8x32xf32> -> vector<8x32xf32>
    %725 = vector.broadcast %704 : vector<1x32xf32> to vector<8x32xf32>
    %726 = arith.addf %724, %725 : vector<8x32xf32>
    %c344_352 = arith.constant 344 : index
    %c0_353 = arith.constant 0 : index
    %727 = vector.load %arg2[%c344_352, %c0_353] : memref<848x128xf32, #tpu.memory_space<vmem>>, vector<1x32xf32>
    %c336_354 = arith.constant 336 : index
    %c0_355 = arith.constant 0 : index
    %728 = vector.load %arg2[%c336_354, %c0_355] : memref<848x128xf32, #tpu.memory_space<vmem>>, vector<1x32xf32>
    %c352_356 = arith.constant 352 : index
    %c0_357 = arith.constant 0 : index
    %729 = vector.load %arg2[%c352_356, %c0_357] : memref<848x128xf32, #tpu.memory_space<vmem>>, vector<32x32xf32>
    %c328_358 = arith.constant 328 : index
    %c0_359 = arith.constant 0 : index
    %730 = vector.load %arg2[%c328_358, %c0_359] : memref<848x128xf32, #tpu.memory_space<vmem>>, vector<1x32xf32>
    %cst_360 = arith.constant dense<0.000000e+00> : vector<8xf32>
    %731 = vector.multi_reduction <add>, %726, %cst_360 [1] : vector<8x32xf32> to vector<8xf32>
    %732 = vector.shape_cast %731 : vector<8xf32> to vector<8x1xf32>
    %cst_361 = arith.constant 3.200000e+01 : f32
    %733 = vector.broadcast %cst_361 : f32 to vector<8x1xf32>
    %734 = arith.divf %732, %733 : vector<8x1xf32>
    %735 = vector.broadcast %734 : vector<8x1xf32> to vector<8x32xf32>
    %736 = arith.subf %726, %735 : vector<8x32xf32>
    %737 = arith.mulf %736, %736 : vector<8x32xf32>
    %cst_362 = arith.constant dense<0.000000e+00> : vector<8xf32>
    %738 = vector.multi_reduction <add>, %737, %cst_362 [1] : vector<8x32xf32> to vector<8xf32>
    %739 = vector.shape_cast %738 : vector<8xf32> to vector<8x1xf32>
    %cst_363 = arith.constant 3.200000e+01 : f32
    %740 = vector.broadcast %cst_363 : f32 to vector<8x1xf32>
    %741 = arith.divf %739, %740 : vector<8x1xf32>
    %cst_364 = arith.constant 9.99999974E-6 : f32
    %742 = vector.broadcast %cst_364 : f32 to vector<8x1xf32>
    %743 = arith.addf %741, %742 : vector<8x1xf32>
    %744 = math.rsqrt %743 : vector<8x1xf32>
    %745 = vector.broadcast %744 : vector<8x1xf32> to vector<8x32xf32>
    %746 = arith.mulf %736, %745 : vector<8x32xf32>
    %747 = vector.broadcast %727 : vector<1x32xf32> to vector<8x32xf32>
    %748 = arith.mulf %746, %747 : vector<8x32xf32>
    %749 = vector.broadcast %728 : vector<1x32xf32> to vector<8x32xf32>
    %750 = arith.addf %748, %749 : vector<8x32xf32>
    %cst_365 = arith.constant dense<0.000000e+00> : vector<8x32xf32>
    %751 = tpu.matmul %750, %729, %cst_365 {dimension_numbers = #tpu.dot_dimension_numbers<[1], [0], [0], [1], [0, 0, 1, 1], [], []>} : vector<8x32xf32>, vector<32x32xf32>, vector<8x32xf32> -> vector<8x32xf32>
    %752 = vector.broadcast %730 : vector<1x32xf32> to vector<8x32xf32>
    %753 = arith.addf %751, %752 : vector<8x32xf32>
    %cst_366 = arith.constant 5.000000e-01 : f32
    %754 = vector.broadcast %cst_366 : f32 to vector<8x32xf32>
    %755 = arith.mulf %754, %753 : vector<8x32xf32>
    %cst_367 = arith.constant 0.707106769 : f32
    %756 = vector.broadcast %cst_367 : f32 to vector<8x32xf32>
    %757 = arith.mulf %753, %756 : vector<8x32xf32>
    %758 = math.erf %757 : vector<8x32xf32>
    %cst_368 = arith.constant 1.000000e+00 : f32
    %759 = vector.broadcast %cst_368 : f32 to vector<8x32xf32>
    %760 = arith.addf %759, %758 : vector<8x32xf32>
    %761 = arith.mulf %755, %760 : vector<8x32xf32>
    %762 = arith.addf %726, %761 : vector<8x32xf32>
    %cst_369 = arith.constant dense<0.000000e+00> : vector<8x128xf32>
    %763 = tpu.matmul %762, %1, %cst_369 {dimension_numbers = #tpu.dot_dimension_numbers<[1], [0], [0], [1], [0, 0, 1, 1], [], []>} : vector<8x32xf32>, vector<32x128xf32>, vector<8x128xf32> -> vector<8x128xf32>
    %764 = vector.broadcast %2 : vector<1x128xf32> to vector<8x128xf32>
    %765 = arith.addf %763, %764 : vector<8x128xf32>
    %c1_370 = arith.constant 1 : index
    %c0_371 = arith.constant 0 : index
    %c0_372 = arith.constant 0 : index
    %766 = vector.load %arg3[%c1_370, %c0_371, %c0_372] : memref<2x8x128xf32, #tpu.memory_space<vmem>>, vector<1x8x128xf32>
    %767 = vector.shape_cast %766 : vector<1x8x128xf32> to vector<8x128xf32>
    %768 = vector.shape_cast %765 : vector<8x128xf32> to vector<1x8x128xf32>
    tpu.vector_store %arg3[%c1_370, %c0_371, %c0_372], %768 {strides = array<i32>} : memref<2x8x128xf32, #tpu.memory_space<vmem>>, vector<1x8x128xf32>,
    return
  }
}

</mosaic_0001>

<bundles_post_ra>
// kernel: tpu_custom_call.1
= control target key start
LH: loop header
LB: loop body
LE: loop exit
PB: predicated region body
PF: predicated region fallthrough
CT: control target
= control target key end

     0   :  { %8 = vsyncpa [#allocation3], 0  ;;  %s10344_s0 = inlined_call_operand.hbm [shape: f32[2,16,32], index: 0, kind: input, shape index: {}]   ;;  %s10345_s1 = inlined_call_operand.hbm [shape: f32[2,8,32], index: 1, kind: input, shape index: {}]   ;;  %s10346_s2 = inlined_call_operand.hbm [shape: f32[848,128], index: 2, kind: input, shape index: {}]   ;;  %s10347_s3 = inlined_call_operand.hbm [shape: f32[2,8,128], index: 3, kind: output, shape index: {}]  }
   0x1   :  { %9 = vsyncpa [#allocation6], 0 }
   0x2   :  { %10 = vsyncpa [#allocation4], 0  ;;  %s9595_s12 = smov [#allocation5]   ;;  %s9596_s14 = smov [#allocation2]  }
   0x3   :  { %s28_s13 = sshll.u32 %s9595_s12, 4  ;;  %s16_s15 = sshll.u32 %s9596_s14, 4  ;;  %s29_s13 = int_to_ptr.vmem [resolvable:$true] %s28_s13  ;;  %s17_s15 = int_to_ptr.vmem [resolvable:$true] %s16_s15 }
   0x4   :  { %s9517_s16 = scalar_lea.vmem %s29_s13, 256  ;;  %p9522_p1 = scmp.lt.s32.totalorder %s29_s13, %s29_s13 }
   0x5   :  { %p9518_p0 = scmp.ne.s32.totalorder %s29_s13, %s9517_s16  ;;  %p9523_p2 = scmp.lt.s32.totalorder %s9517_s16, %s9517_s16 }
   0x7   :  { %p9524_p3 = por %p9523_p2, %p9522_p1 }
   0x9   :  { %p9525_p4 = pnand %p9524_p3, %p9518_p0 }
   0xb   :  { %9528 = shalt.err (!%p9525_p4)
}
   0xc   :  { %s9597_s17 = smov 128   ;;  %s9598_s18 = smov 8  }
   0xd   :  { %34 = dma.hbm_to_vmem [thread:$0]  %s10345_s1, 256, %s29_s13, [#allocation6], %s9597_s17, %s9597_s17, %s9598_s18  }
   0xe   :  { %s9537_s21 = scalar_lea.vmem %s17_s15, 512  ;;  %p9542_p6 = scmp.lt.s32.totalorder %s17_s15, %s17_s15 }
   0xf   :  { %p9538_p5 = scmp.ne.s32.totalorder %s17_s15, %s9537_s21  ;;  %p9543_p7 = scmp.lt.s32.totalorder %s9537_s21, %s9537_s21 }
  0x11   :  { %p9544_p8 = por %p9543_p7, %p9542_p6 }
  0x13   :  { %p9545_p9 = pnand %p9544_p8, %p9538_p5 }
  0x15   :  { %9548 = shalt.err (!%p9545_p9)
}
  0x16   :  { %22 = dma.hbm_to_vmem [thread:$0]  %s10344_s0, 512, %s17_s15, [#allocation3], %s9597_s17, %s9597_s17, %s9598_s18  }
  0x17   :  { %s9599_s24 = smov [#allocation7]  }
  0x18   :  { %s40_s25 = sshll.u32 %s9599_s24, 4  ;;  %s41_s25 = int_to_ptr.vmem [resolvable:$true] %s40_s25 }
  0x19   :  { %s9557_s26 = scalar_lea.vmem %s41_s25, 13568  ;;  %p9562_p11 = scmp.lt.s32.totalorder %s41_s25, %s41_s25 }
  0x1a   :  { %p9558_p10 = scmp.ne.s32.totalorder %s41_s25, %s9557_s26  ;;  %p9563_p12 = scmp.lt.s32.totalorder %s9557_s26, %s9557_s26 }
  0x1c   :  { %p9564_p13 = por %p9563_p12, %p9562_p11 }
  0x1e   :  { %p9565_p0 = pnand %p9564_p13, %p9558_p10 }
  0x20   :  { %9568 = shalt.err (!%p9565_p0)
}
  0x21   :  { %46 = dma.hbm_to_vmem [thread:$0]  %s10346_s2, 13568, %s41_s25, [#allocation6], %s9597_s17, %s9597_s17, %s9598_s18  }
  0x22   :  { %9589 = dma.done.wait [#allocation3], 512  }
  0x23   :  { %9590 = vsyncadd [#allocation3], 4294966784 }
  0x24   :  { %9591 = dma.done.wait [#allocation6], 13824  }
  0x25   :  { %9592 = vsyncadd [#allocation6], 4294953472  ;;  %v9600_v0 = vmov 0.0   ;;  %vm82_vm0 = vcmask 261120   ;;  %v72_v1 = vld [vmem:[#allocation7 + $0x30] sm:$0xff]  ;;  %v71_v2 = vld [vmem:[#allocation7 + $0x28] sm:$0xff] }
  0x26   :  { %8644 = vmatprep.subr.mxu0 %v9600_v0  ;;  %8655 = vmatprep.subr.mxu1 %v72_v1  ;;  %v62_v3 = vld [vmem:[#allocation2] sm:$0xff]  ;;  %v70_v4 = vld [vmem:[#allocation7 + $0x20] sm:$0xff]  ;;  %v67_v6 = vld [vmem:[#allocation7 + $0x58] sm:$0xff]  ;;  %vm9601_vm1 = vmmov 0   ;;  %vm312_vm2 = vcmask 130048   ;;  %vm535_vm3 = vcmask 64512  }
  0x27   :  { %8656 = vmatpush3.msra.mxu1 %v72_v1  ;;  %8663 = vmatprep.mubr.msk.f32.mxu1 %vm82_vm0, %v62_v3  ;;  %v68_v5 = vld [vmem:[#allocation7 + $0x60] sm:$0xff]  ;;  %v69_v7 = vld [vmem:[#allocation7 + $0x18] sm:$0xff]  ;;  %v66_v9 = vld [vmem:[#allocation7 + $0x50] sm:$0xff]  ;;  %s9602_s0 = smov 120   ;;  %s9603_s2 = smov 112   ;;  %vm1865_vm4 = vcmask 195584  }
  0x28   :  { %8657 = vmatprep.subr.mxu1 %v71_v2  ;;  %8645 = vmatpush3.msra.mxu0 %v68_v5  ;;  %v63_v8 = vld [vmem:[#allocation2 + $0x8] sm:$0xff]  ;;  %v65_v10 = vld [vmem:[#allocation7 + $0x48] sm:$0xff]  ;;  %v9657_v11 = vld [vmem:[#allocation7 + $0x180] sm:$0xff]  ;;  %s9604_s28 = smov 104   ;;  %s9605_s29 = smov 16  }
  0x29   :  { %8658 = vmatpush3.msra.mxu1 %v71_v2  ;;  %8646 = vmatprep.subr.mxu0 %v9600_v0  ;;  %v76_v12 = vld [vmem:[#allocation7 + $0x80] sm:$0xff]  ;;  %v75_v13 = vld [vmem:[#allocation7 + $0x78] sm:$0xff]  ;;  %v74_v14 = vld [vmem:[#allocation7 + $0x70] sm:$0xff]  ;;  %s9606_s30 = smov 24   ;;  %s9607_s4 = smov [#allocation8]  }
  0x2a   :  { %8659 = vmatprep.subr.mxu1 %v70_v4  ;;  %8647 = vmatpush3.msra.mxu0 %v67_v6  ;;  %v73_v15 = vld [vmem:[#allocation7 + $0x68] sm:$0xff]  ;;  %v78_v25 = vld [vmem:[#allocation7 + $0x10] sm:$0xff]  ;;  %v80_v36 = vld [vmem:[#allocation7 + $0x40] sm:$0xff]  ;;  %s8154_s5 = sshll.u32 %s9607_s4, 4  ;;  %s8155_s5 = int_to_ptr.vmem [resolvable:$true] %s8154_s5 }
  0x2b   :  { %8660 = vmatpush3.msra.mxu1 %v70_v4  ;;  %8648 = vmatprep.subr.mxu0 %v9600_v0  ;;  %v77_v17 = vld [vmem:[#allocation7 + $0x8] sm:$0xff]  ;;  %v79_v41 = vld [vmem:[#allocation7 + $0x38] sm:$0xff]  ;;  %v8177_v44 = vld [vmem:[#allocation7] ss:$0 sm:$0xff]  ;;  %s9569_s6 = scalar_lea.vmem %s8155_s5, 256  ;;  %p9574_p2 = scmp.lt.s32.totalorder %s8155_s5, %s8155_s5 }
  0x2c   :  { %8661 = vmatprep.subr.mxu1 %v69_v7  ;;  %8649 = vmatpush3.msra.mxu0 %v66_v9  ;;  %v704_v55 = vld [vmem:[#allocation7 + $0xb8] sm:$0xff]  ;;  %v703_v56 = vld [vmem:[#allocation7 + $0xb0] sm:$0xff]  ;;  %v702_v57 = vld [vmem:[#allocation7 + $0xa8] sm:$0xff]  ;;  %p9570_p1 = scmp.ne.s32.totalorder %s8155_s5, %s9569_s6  ;;  %p9575_p3 = scmp.lt.s32.totalorder %s9569_s6, %s9569_s6 }
  0x2d   :  { %8662 = vmatpush3.msra.mxu1 %v69_v7  ;;  %8650 = vmatprep.subr.mxu0 %v9600_v0  ;;  %v701_v58 = vld [vmem:[#allocation7 + $0xa0] sm:$0xff]  ;;  %v8179_v63 = vld [vmem:[#allocation7 + $0x98] ss:$0 sm:$0xff]  ;;  %v8180_v2 = vld [vmem:[#allocation7 + $0x90] ss:$0 sm:$0xff] }
  0x2e   :  { %8664 = vmatmul.mubr.msk.f32.vlgmr.msra.gmra.mxu1 %vm82_vm0, %v63_v8  ;;  %8677 = vmatprep.subr.mxu1 %v9600_v0  ;;  %v816_v5 = vld [vmem:[#allocation7 + $0x1f8] sm:$0xff]  ;;  %v815_v7 = vld [vmem:[#allocation7 + $0x1f0] sm:$0xff]  ;;  %v814_v9 = vld [vmem:[#allocation7 + $0x1e8] sm:$0xff]  ;;  %p9576_p4 = por %p9575_p3, %p9574_p2 }
  0x2f   :  { %8681 = vmatprep.mubr.msk.f32.mxu1 %vm9601_vm1, %v9600_v0  ;;  %8651 = vmatpush3.msra.mxu0 %v65_v10  ;;  %v820_v6 = vld [vmem:[#allocation7 + $0x1b8] sm:$0xff]  ;;  %v818_v10 = vld [vmem:[#allocation7 + $0x1a8] sm:$0xff] }
  0x30   :  { %8652 = vmatprep.mubr.msk.f32.mxu0 %vm9601_vm1, %v9600_v0  ;;  %8666 = vmatprep.subr.mxu0 %v76_v12  ;;  %p9577_p5 = pnand %p9576_p4, %p9570_p1 }
  0x31   :  { %8653 = vmatmul.mubr.msk.f32.vlgmr.msra.gmra.mxu0 %vm82_vm0, %v9657_v11 }
  0x32   :  { %8667 = vmatpush3.msra.mxu0 %v76_v12  ;;  %8674 = vmatprep.mubr.msk.f32.mxu0 %vm82_vm0, %v62_v3  ;;  %v817_v12 = vld [vmem:[#allocation7 + $0x1a0] sm:$0xff] }
  0x33   :  { %8668 = vmatprep.subr.mxu0 %v75_v13 }
  0x34   :  { %8669 = vmatpush3.msra.mxu0 %v75_v13  ;;  %v8181_v13 = vld [vmem:[#allocation7 + $0x88] ss:$0 sm:$0xff] }
  0x35   :  { %8670 = vmatprep.subr.mxu0 %v74_v14 }
  0x36   :  { %8671 = vmatpush3.msra.mxu0 %v74_v14 }
  0x37   :  { %8672 = vmatprep.subr.mxu0 %v73_v15 }
  0x38   :  { %8673 = vmatpush3.msra.mxu0 %v73_v15 }
  0x39   :  { %8675 = vmatmul.mubr.msk.f32.vlgmr.msra.gmra.mxu0 %vm82_vm0, %v63_v8  ;;  %8691 = vmatprep.subr.mxu0 %v9600_v0  ;;  %v819_v8 = vld [vmem:[#allocation7 + $0x1b0] sm:$0xff] }
  0x3a   :  { %8693 = vmatprep.mubr.msk.f32.mxu0 %vm9601_vm1, %v9600_v0 }
  0xee   :  { %v8665_v16 = vpop.f32.mrf.mxu1 }
  0xef   :  { %8678 = vmatpush3.msra.mxu1 %v8665_v16 }
  0xf0   :  { %v228_v18 = vpop.f32.mrf.mxu1  ;;  %8679 = vmatprep.subr.mxu1 %v9600_v0 }
  0xf1   :  { %8680 = vmatpush3.msra.mxu1 %v228_v18  ;;  %v152_v19 = vpop.f32.mrf.mxu0 }
  0xf2   :  { %8682 = vmatmul.mubr.msk.f32.vlgmr.msra.gmra.mxu1 %vm312_vm2, %v77_v17  ;;  %8684 = vmatprep.subr.mxu1 %v9600_v0 }
  0xf3   :  { %8688 = vmatprep.mubr.msk.f32.mxu1 %vm9601_vm1, %v9600_v0  ;;  %v8654_v20 = vpop.f32.mrf.mxu0 }
  0xf9   :  { %v8676_v21 = vpop.f32.mrf.mxu0 }
  0xfa   :  { %8685 = vmatpush3.msra.mxu1 %v8676_v21 }
  0xfb   :  { %v303_v22 = vpop.f32.mrf.mxu0  ;;  %8686 = vmatprep.subr.mxu1 %v9600_v0 }
  0xfc   :  { %8687 = vmatpush3.msra.mxu1 %v303_v22 }
  0xfd   :  { %8696 = vmatprep.subr.mxu1 %v9600_v0  ;;  %8689 = vmatmul.mubr.msk.f32.vlgmr.msra.gmra.mxu1 %vm312_vm2, %v78_v25  ;;  %v822_v25 = vld [vmem:[#allocation7 + $0x208] sm:$0xff] }
  0xfe   :  { %8698 = vmatprep.mubr.msk.f32.mxu1 %vm9601_vm1, %v9600_v0 }
 0x1b2   :  { %v382_v23 = vpop.f32.mrf.mxu1 }
 0x1b3   :  { %8692 = vmatpush3.xpose.msk.msra.mxu0 %vm312_vm2, %v382_v23  ;;  %v824_v23 = vld [vmem:[#allocation7 + $0x218] sm:$0xff] }
 0x1b4   :  { %v8683_v24 = vpop.f32.mrf.mxu1  ;;  %8701 = vmatprep.subr.mxu0 %v9600_v0 }
 0x1b5   :  { %v823_v24 = vld [vmem:[#allocation7 + $0x210] sm:$0xff] }
 0x1b6   :  { %8694 = vmatmul.mubr.msk.f32.vlgmr.msra.gmra.mxu0 %vm312_vm2, %v152_v19 }
 0x1b7   :  { %8705 = vmatprep.mubr.msk.f32.mxu0 %vm9601_vm1, %v9600_v0  ;;  %8702 = vmatpush3.msra.mxu0 %v80_v36  ;;  %v826_v36 = vld [vmem:[#allocation7 + $0x198] sm:$0xff] }
 0x1b8   :  { %8703 = vmatprep.subr.mxu0 %v9600_v0 }
 0x1b9   :  { %8704 = vmatpush3.msra.mxu0 %v79_v41 }
 0x1ba   :  { %8719 = vmatprep.subr.mxu0 %v9600_v0 }
 0x1bd   :  { %v455_v34 = vpop.f32.mrf.mxu1 }
 0x1be   :  { %8697 = vmatpush3.msra.mxu1 %v455_v34 }
 0x1bf   :  { %v8690_v35 = vpop.f32.mrf.mxu1  ;;  %8708 = vmatprep.subr.mxu1 %v9600_v0 }
 0x276   :  { %v531_v26 = vpop.f32.mrf.mxu0 }
 0x277   :  { %v536_v27 = vsel %vm535_vm3, %v531_v26, -inf }
 0x278   :  { %537 = vmax.xlane.f32.xlu0 %v536_v27  ;;  %v8695_v28 = vpop.f32.mrf.mxu0  ;;  %v825_v27 = vld [vmem:[#allocation7 + $0x190] sm:$0xff] }
 0x301   :  { %v538_v29 = vpop.xlane.xlu0 %537 }
 0x302   :  { %v539_v30 = vsub.f32 %v531_v26, %v538_v29  ;;  %v821_v26 = vld [vmem:[#allocation7 + $0x200] sm:$0xff] }
 0x304   :  { %v540_v31 = vmul.f32 1.442695, %v539_v30 }
 0x306   :  { %9391 = vpow2.f32 %v540_v31 }
 0x313   :  { %v9392_v32 = vpop.eup %9391 }
 0x314   :  { %v542_v33 = vsel %vm535_vm3, %v9392_v32, 0.0 }
 0x315   :  { %543 = vadd.xlane.f32.xlu0 %v542_v33 }
 0x39e   :  { %v544_v37 = vpop.xlane.xlu0 %543 }
 0x39f   :  { %9393 = vrcp.f32 %v544_v37 }
 0x3ac   :  { %v9394_v38 = vpop.eup %9393 }
 0x3ad   :  { %v546_v39 = vmul.f32 %v9394_v38, %v9392_v32 }
 0x3af   :  { %v547_v40 = vadd.f32 1e-06, %v546_v39 }
 0x3b1   :  { %8699 = vmatmul.mubr.msk.f32.vlgmr.msra.gmra.mxu1 %vm535_vm3, %v547_v40 }
 0x3b2   :  { %8716 = vmatprep.mubr.msk.f32.mxu1 %vm9601_vm1, %v9600_v0  ;;  %8709 = vmatpush3.msra.mxu1 %v704_v55 }
 0x3b3   :  { %8710 = vmatprep.subr.mxu1 %v9600_v0 }
 0x3b4   :  { %8711 = vmatpush3.msra.mxu1 %v703_v56 }
 0x3b5   :  { %8712 = vmatprep.subr.mxu1 %v9600_v0 }
 0x3b6   :  { %8713 = vmatpush3.msra.mxu1 %v702_v57 }
 0x3b7   :  { %8714 = vmatprep.subr.mxu1 %v9600_v0 }
 0x3b8   :  { %8715 = vmatpush3.msra.mxu1 %v701_v58 }
 0x3b9   :  { %8730 = vmatprep.subr.mxu1 %v9600_v0 }
 0x471   :  { %v617_v42 = vpop.f32.mrf.mxu1 }
 0x472   :  { %8706 = vmatmul.mubr.msk.f32.vlgmr.msra.gmra.mxu0 %vm312_vm2, %v617_v42 }
 0x473   :  { %v8700_v43 = vpop.f32.mrf.mxu1  ;;  %8727 = vmatprep.mubr.msk.f32.mxu0 %vm9601_vm1, %v9600_v0  ;;  %8720 = vmatpush3.msra.mxu0 %v816_v5 }
 0x474   :  { %8721 = vmatprep.subr.mxu0 %v9600_v0 }
 0x475   :  { %8722 = vmatpush3.msra.mxu0 %v815_v7 }
 0x476   :  { %8723 = vmatprep.subr.mxu0 %v9600_v0 }
 0x477   :  { %8724 = vmatpush3.msra.mxu0 %v814_v9 }
 0x478   :  { %8725 = vmatprep.subr.mxu0 %v9600_v0 }
 0x532   :  { %v694_v45 = vpop.f32.mrf.mxu0 }
 0x533   :  { %v695_v46 = vadd.f32 %v8177_v44, %v694_v45 }
 0x534   :  { %v8707_v47 = vpop.f32.mrf.mxu0 }
 0x535   :  { %v9693_v48 = vadd.f32 %v695_v46, %v9657_v11  ;;  %v813_v11 = vld [vmem:[#allocation7 + $0x1e0] sm:$0xff] }
 0x536   :  { %8726 = vmatpush3.msra.mxu0 %v813_v11 }
 0x537   :  { %v706_v49 = vsel %vm82_vm0, %v9693_v48, 0.0  ;;  %8741 = vmatprep.subr.mxu0 %v9600_v0 }
 0x538   :  { %707 = vadd.xlane.f32.xlu1 %v706_v49 }
 0x5c1   :  { %v708_v50 = vpop.xlane.xlu1 %707 }
 0x5c2   :  { %v710_v51 = vmul.f32 0.03125, %v708_v50 }
 0x5c4   :  { %v711_v52 = vsub.f32 %v9693_v48, %v710_v51 }
 0x5c6   :  { %v712_v53 = vmul.f32 %v711_v52, %v711_v52 }
 0x5c8   :  { %v713_v54 = vsel %vm82_vm0, %v712_v53, 0.0 }
 0x5c9   :  { %714 = vadd.xlane.f32.xlu1 %v713_v54 }
 0x652   :  { %v715_v59 = vpop.xlane.xlu1 %714 }
 0x653   :  { %v716_v60 = vmul.f32 0.03125, %v715_v59 }
 0x655   :  { %v717_v61 = vadd.f32 1e-05, %v716_v60 }
 0x657   :  { %9395 = vrsqrt.f32 %v717_v61 }
 0x664   :  { %v9396_v62 = vpop.eup %9395 }
 0x665   :  { %v719_v1 = vmul.f32 %v9396_v62, %v711_v52 }
 0x667   :  { %v724_v3 = vmul.f32 %v8179_v63, %v719_v1 }
 0x669   :  { %v729_v4 = vadd.f32 %v8180_v2, %v724_v3 }
 0x66b   :  { %8717 = vmatmul.mubr.msk.f32.vlgmr.msra.gmra.mxu1 %vm82_vm0, %v729_v4 }
 0x66c   :  { %8738 = vmatprep.mubr.msk.f32.mxu1 %vm9601_vm1, %v9600_v0  ;;  %8731 = vmatpush3.msra.mxu1 %v820_v6 }
 0x66d   :  { %8732 = vmatprep.subr.mxu1 %v9600_v0 }
 0x66e   :  { %8733 = vmatpush3.msra.mxu1 %v819_v8 }
 0x66f   :  { %8734 = vmatprep.subr.mxu1 %v9600_v0 }
 0x670   :  { %8735 = vmatpush3.msra.mxu1 %v818_v10 }
 0x671   :  { %8736 = vmatprep.subr.mxu1 %v9600_v0 }
 0x672   :  { %8737 = vmatpush3.msra.mxu1 %v817_v12 }
 0x673   :  { %8752 = vmatprep.subr.mxu1 %v9600_v0 }
 0x72b   :  { %v803_v14 = vpop.f32.mrf.mxu1 }
 0x72c   :  { %v804_v15 = vadd.f32 %v8181_v13, %v803_v14 }
 0x72d   :  { %v8718_v16 = vpop.f32.mrf.mxu1 }
 0x72e   :  { %v808_v17 = vmul.f32 0.70710677, %v804_v15  ;;  %v807_v19 = vmul.f32 0.5, %v804_v15 }
 0x730   :  { %9397 = verf.f32 %v808_v17 }
 0x73d   :  { %v9398_v18 = vpop.eup %9397 }
 0x73e   :  { %v810_v20 = vadd.f32 1.0, %v9398_v18 }
 0x740   :  { %v811_v21 = vmul.f32 %v810_v20, %v807_v19 }
 0x742   :  { %v9715_v22 = vadd.f32 %v811_v21, %v9693_v48 }
 0x744   :  { %8728 = vmatmul.mubr.msk.f32.vlgmr.msra.gmra.mxu0 %vm82_vm0, %v9715_v22  ;;  %8739 = vmatmul.mubr.msk.f32.vlgmr.msra.gmra.mxu1 %vm82_vm0, %v9715_v22 }
 0x745   :  { %8742 = vmatpush3.msra.mxu0 %v824_v23  ;;  %8749 = vmatprep.mubr.msk.f32.mxu0 %vm9601_vm1, %v9600_v0 }
 0x746   :  { %8743 = vmatprep.subr.mxu0 %v9600_v0  ;;  %8754 = vmatprep.mubr.msk.f32.mxu1 %vm9601_vm1, %v9600_v0 }
 0x747   :  { %8744 = vmatpush3.msra.mxu0 %v823_v24 }
 0x748   :  { %8745 = vmatprep.subr.mxu0 %v9600_v0 }
 0x749   :  { %8746 = vmatpush3.msra.mxu0 %v822_v25 }
 0x74a   :  { %8747 = vmatprep.subr.mxu0 %v9600_v0 }
 0x74b   :  { %8748 = vmatpush3.msra.mxu0 %v821_v26 }
 0x74c   :  { %8750 = vmatmul.mubr.msk.f32.vlgmr.msra.gmra.mxu0 %vm82_vm0, %v9715_v22  ;;  %8757 = vmatprep.subr.mxu0 %v9600_v0 }
 0x74d   :  { %8759 = vmatprep.mubr.msk.f32.mxu0 %vm9601_vm1, %v9600_v0 }
 0x804   :  { %v901_v28 = vpop.f32.mrf.mxu0  ;;  %v971_v29 = vpop.f32.mrf.mxu1 }
 0x805   :  { %1352 = vrot.lane.b32.xlu1 %v901_v28, %s9602_s0  ;;  %8753 = vmatpush3.msra.mxu1 %v971_v29 }
 0x806   :  { %v8729_v30 = vpop.f32.mrf.mxu0  ;;  %v8740_v31 = vpop.f32.mrf.mxu1  ;;  %8755 = vmatmul.mubr.msk.f32.vlgmr.msra.gmra.mxu1 %vm535_vm3, %v825_v27  ;;  %8762 = vmatprep.subr.mxu1 %v9600_v0 }
 0x807   :  { %8764 = vmatprep.mubr.msk.f32.mxu1 %vm9601_vm1, %v9600_v0 }
 0x80c   :  { %v1041_v32 = vpop.f32.mrf.mxu0 }
 0x80d   :  { %8758 = vmatpush3.msra.mxu0 %v1041_v32 }
 0x80e   :  { %v8751_v33 = vpop.f32.mrf.mxu0  ;;  %8767 = vmatprep.subr.mxu0 %v9600_v0  ;;  %8760 = vmatmul.mubr.msk.f32.vlgmr.msra.gmra.mxu0 %vm535_vm3, %v826_v36  ;;  %v830_v36 = vld [vmem:[#allocation7 + $0x1d8] sm:$0xff] }
 0x80f   :  { %8769 = vmatprep.mubr.msk.f32.mxu0 %vm9601_vm1, %v9600_v0 }
 0x877   :  { %v1353_v37 = vpop.permute.xlu1 %1352 }
 0x8c6   :  { %v1114_v34 = vpop.f32.mrf.mxu1 }
 0x8c7   :  { %1521 = vrot.lane.b32.xlu1 %v1114_v34, %s9603_s2  ;;  %1354 = vrot.lane.b32.xlu0 %v1114_v34, %s9602_s0 }
 0x8c8   :  { %8763 = vmatpush3.xpose.msk.msra.mxu1 %vm535_vm3, %v1114_v34  ;;  %v8756_v35 = vpop.f32.mrf.mxu1 }
 0x8c9   :  { %8772 = vmatprep.subr.mxu1 %v9600_v0 }
 0x8cb   :  { %8765 = vmatmul.mubr.msk.f32.vlgmr.msra.gmra.mxu1 %vm535_vm3, %v901_v28  ;;  %1519 = vrot.lane.b32.xlu1 %v901_v28, %s9603_s2 }
 0x8cc   :  { %1687 = vrot.lane.b32.xlu0 %v1114_v34, %s9604_s28  ;;  %8774 = vmatprep.mubr.msk.f32.mxu1 %vm9601_vm1, %v9600_v0 }
 0x8ce   :  { %v1187_v58 = vpop.f32.mrf.mxu0 }
 0x8cf   :  { %1685 = vrot.lane.b32.xlu1 %v901_v28, %s9604_s28  ;;  %8768 = vmatpush3.msra.mxu0 %v1187_v58 }
 0x8d0   :  { %v8761_v59 = vpop.f32.mrf.mxu0  ;;  %8777 = vmatprep.subr.mxu0 %v9600_v0 }
 0x939   :  { %v1522_v38 = vpop.permute.xlu1 %1521  ;;  %v1355_v39 = vpop.permute.xlu0 %1354 }
 0x93a   :  { %8773 = vmatpush3.xpose.msk.msra.mxu1 %vm535_vm3, %v1355_v39 }
 0x93b   :  { %8782 = vmatprep.subr.mxu1 %v9600_v0 }
 0x93d   :  { %8775 = vmatmul.mubr.msk.f32.vlgmr.msra.gmra.mxu1 %vm535_vm3, %v1353_v37  ;;  %v1520_v40 = vpop.permute.xlu1 %1519  ;;  %v829_v37 = vld [vmem:[#allocation7 + $0x1d0] sm:$0xff] }
 0x93e   :  { %8783 = vmatpush3.xpose.msk.msra.mxu1 %vm535_vm3, %v1522_v38  ;;  %8784 = vmatprep.mubr.msk.f32.mxu1 %vm9601_vm1, %v9600_v0  ;;  %v1688_v41 = vpop.permute.xlu0 %1687  ;;  %v828_v38 = vld [vmem:[#allocation7 + $0x1c8] sm:$0xff] }
 0x93f   :  { %8792 = vmatprep.subr.mxu1 %v9600_v0 }
 0x941   :  { %8785 = vmatmul.mubr.msk.f32.vlgmr.msra.gmra.mxu1 %vm535_vm3, %v1520_v40  ;;  %v1686_v42 = vpop.permute.xlu1 %1685 }
 0x942   :  { %8793 = vmatpush3.xpose.msk.msra.mxu1 %vm535_vm3, %v1688_v41  ;;  %8794 = vmatprep.mubr.msk.f32.mxu1 %vm9601_vm1, %v9600_v0 }
 0x943   :  { %8802 = vmatprep.subr.mxu1 %v9600_v0 }
 0x945   :  { %8795 = vmatmul.mubr.msk.f32.vlgmr.msra.gmra.mxu1 %vm535_vm3, %v1686_v42 }
 0x946   :  { %8810 = vmatprep.mubr.msk.f32.mxu1 %vm9601_vm1, %v9600_v0  ;;  %8803 = vmatpush3.msra.mxu1 %v830_v36 }
 0x947   :  { %8804 = vmatprep.subr.mxu1 %v9600_v0 }
 0x948   :  { %8805 = vmatpush3.msra.mxu1 %v829_v37 }
 0x949   :  { %8806 = vmatprep.subr.mxu1 %v9600_v0 }
 0x94a   :  { %8807 = vmatpush3.msra.mxu1 %v828_v38 }
 0x94b   :  { %8808 = vmatprep.subr.mxu1 %v9600_v0 }
 0x98b   :  { %v1263_v43 = vpop.f32.mrf.mxu1 }
 0x98c   :  { %v1267_v44 = vsel %vm535_vm3, %v1263_v43, -inf }
 0x98d   :  { %1268 = vmax.xlane.f32.xlu0 %v1267_v44  ;;  %v8766_v45 = vpop.f32.mrf.mxu1 }
 0x9fd   :  { %v1426_v46 = vpop.f32.mrf.mxu1 }
 0x9fe   :  { %v1430_v47 = vsel %vm535_vm3, %v1426_v46, -inf }
 0x9ff   :  { %1431 = vmax.xlane.f32.xlu1 %v1430_v47  ;;  %v8776_v48 = vpop.f32.mrf.mxu1 }
 0xa01   :  { %v1593_v49 = vpop.f32.mrf.mxu1 }
 0xa02   :  { %v1597_v50 = vsel %vm535_vm3, %v1593_v49, -inf }
 0xa03   :  { %1598 = vmax.xlane.f32.xlu0 %v1597_v50  ;;  %v8786_v51 = vpop.f32.mrf.mxu1 }
 0xa05   :  { %v1759_v52 = vpop.f32.mrf.mxu1 }
 0xa06   :  { %v1763_v53 = vsel %vm535_vm3, %v1759_v52, -inf }
 0xa07   :  { %1764 = vmax.xlane.f32.xlu0 %v1763_v53  ;;  %v8796_v54 = vpop.f32.mrf.mxu1 }
 0xa16   :  { %v1269_v55 = vpop.xlane.xlu0 %1268 }
 0xa17   :  { %v1270_v56 = vsub.f32 %v1263_v43, %v1269_v55  ;;  %v827_v43 = vld [vmem:[#allocation7 + $0x1c0] sm:$0xff] }
 0xa18   :  { %8809 = vmatpush3.msra.mxu1 %v827_v43 }
 0xa19   :  { %v1271_v57 = vmul.f32 1.442695, %v1270_v56  ;;  %8824 = vmatprep.subr.mxu1 %v9600_v0 }
 0xa1b   :  { %9399 = vpow2.f32 %v1271_v57 }
 0xa28   :  { %v9400_v60 = vpop.eup %9399 }
 0xa29   :  { %v1273_v61 = vsel %vm535_vm3, %v9400_v60, 0.0 }
 0xa2a   :  { %1274 = vadd.xlane.f32.xlu0 %v1273_v61 }
 0xa88   :  { %v1432_v62 = vpop.xlane.xlu1 %1431 }
 0xa89   :  { %v1433_v63 = vsub.f32 %v1426_v46, %v1432_v62 }
 0xa8b   :  { %v1434_v1 = vmul.f32 1.442695, %v1433_v63  ;;  %v1950_v63 = vld [vmem:[#allocation7 + $0x250] sm:$0xff] }
 0xa8c   :  { %v1599_v2 = vpop.xlane.xlu0 %1598 }
 0xa8d   :  { %9401 = vpow2.f32 %v1434_v1  ;;  %v1600_v3 = vsub.f32 %v1593_v49, %v1599_v2  ;;  %v1949_v1 = vld [vmem:[#allocation7 + $0x248] sm:$0xff]  ;;  %v1948_v2 = vld [vmem:[#allocation7 + $0x240] sm:$0xff] }
 0xa8f   :  { %v1601_v4 = vmul.f32 1.442695, %v1600_v3 }
 0xa90   :  { %v1765_v9 = vpop.xlane.xlu0 %1764 }
 0xa91   :  { %9403 = vpow2.f32 %v1601_v4  ;;  %v1766_v11 = vsub.f32 %v1759_v52, %v1765_v9  ;;  %v8200_v52 = vld [vmem:[#allocation7 + $0x188] ss:$0 sm:$0xff] }
 0xa92   :  { %v8203_v9 = vld [vmem:[#allocation7 + $0x228] ss:$0 sm:$0xff] }
 0xa93   :  { %v1767_v12 = vmul.f32 1.442695, %v1766_v11 }
 0xa9a   :  { %v9402_v5 = vpop.eup %9401 }
 0xa9b   :  { %v1436_v6 = vsel %vm535_vm3, %v9402_v5, 0.0 }
 0xa9c   :  { %1437 = vadd.xlane.f32.xlu1 %v1436_v6 }
 0xa9e   :  { %v9404_v7 = vpop.eup %9403 }
 0xa9f   :  { %v1603_v8 = vsel %vm535_vm3, %v9404_v7, 0.0 }
 0xaa0   :  { %1604 = vadd.xlane.f32.xlu0 %v1603_v8 }
 0xaad   :  { %1609 = vrot.lane.b32.xlu1 %v1187_v58, %s9603_s2 }
 0xab3   :  { %v1275_v10 = vpop.xlane.xlu0 %1274 }
 0xab4   :  { %9405 = vrcp.f32 %v1275_v10 }
 0xab5   :  { %9407 = vpow2.f32 %v1767_v12  ;;  %v2061_v12 = vld [vmem:[#allocation7 + $0x2c8] sm:$0xff] }
 0xab6   :  { %1443 = vrot.lane.b32.xlu0 %v1187_v58, %s9602_s0 }
 0xac1   :  { %v9406_v13 = vpop.eup %9405 }
 0xac2   :  { %v1277_v14 = vmul.f32 %v9406_v13, %v9400_v60  ;;  %v9408_v16 = vpop.eup %9407  ;;  %v2065_v13 = vld [vmem:[#allocation7 + $0x288] sm:$0xff] }
 0xac3   :  { %v1769_v17 = vsel %vm535_vm3, %v9408_v16, 0.0 }
 0xac4   :  { %v1278_v15 = vadd.f32 1e-06, %v1277_v14  ;;  %v2060_v14 = vld [vmem:[#allocation7 + $0x2c0] sm:$0xff] }
 0xac6   :  { %8770 = vmatmul.mubr.msk.f32.vlgmr.msra.gmra.mxu0 %vm535_vm3, %v1278_v15  ;;  %v2064_v15 = vld [vmem:[#allocation7 + $0x280] sm:$0xff] }
 0xac7   :  { %8779 = vmatprep.mubr.msk.f32.mxu0 %vm9601_vm1, %v9600_v0 }
 0xad1   :  { %1770 = vadd.xlane.f32.xlu1 %v1769_v17  ;;  %v2063_v17 = vld [vmem:[#allocation7 + $0x278] sm:$0xff] }
 0xae2   :  { %1775 = vrot.lane.b32.xlu1 %v1187_v58, %s9604_s28 }
 0xb25   :  { %v1438_v18 = vpop.xlane.xlu1 %1437 }
 0xb26   :  { %9409 = vrcp.f32 %v1438_v18  ;;  %v2058_v18 = vld [vmem:[#allocation7 + $0x2b0] sm:$0xff] }
 0xb29   :  { %v1605_v19 = vpop.xlane.xlu0 %1604  ;;  %v1610_v26 = vpop.permute.xlu1 %1609 }
 0xb2a   :  { %9411 = vrcp.f32 %v1605_v19  ;;  %v2062_v19 = vld [vmem:[#allocation7 + $0x270] sm:$0xff] }
 0xb2d   :  { %v1444_v20 = vpop.permute.xlu0 %1443 }
 0xb2e   :  { %8778 = vmatpush3.msra.mxu0 %v1444_v20  ;;  %v8204_v20 = vld [vmem:[#allocation7 + $0x220] ss:$0 sm:$0xff] }
 0xb2f   :  { %8787 = vmatprep.subr.mxu0 %v9600_v0 }
 0xb33   :  { %v9410_v21 = vpop.eup %9409 }
 0xb34   :  { %v1440_v23 = vmul.f32 %v9410_v21, %v9402_v5 }
 0xb36   :  { %v1441_v24 = vadd.f32 1e-06, %v1440_v23 }
 0xb37   :  { %v9412_v25 = vpop.eup %9411 }
 0xb38   :  { %8780 = vmatmul.mubr.msk.f32.vlgmr.msra.gmra.mxu0 %vm535_vm3, %v1441_v24  ;;  %v1607_v27 = vmul.f32 %v9412_v25, %v9404_v7  ;;  %v8202_v7 = vld [vmem:[#allocation7 + $0x230] ss:$0 sm:$0xff] }
 0xb39   :  { %8788 = vmatpush3.msra.mxu0 %v1610_v26  ;;  %8789 = vmatprep.mubr.msk.f32.mxu0 %vm9601_vm1, %v9600_v0 }
 0xb3a   :  { %v1608_v28 = vadd.f32 1e-06, %v1607_v27  ;;  %8797 = vmatprep.subr.mxu0 %v9600_v0 }
 0xb3c   :  { %8790 = vmatmul.mubr.msk.f32.vlgmr.msra.gmra.mxu0 %vm535_vm3, %v1608_v28 }
 0xb3d   :  { %8799 = vmatprep.mubr.msk.f32.mxu0 %vm9601_vm1, %v9600_v0 }
 0xb5a   :  { %v1771_v29 = vpop.xlane.xlu1 %1770 }
 0xb5b   :  { %9413 = vrcp.f32 %v1771_v29 }
 0xb5e   :  { %v1776_v30 = vpop.permute.xlu1 %1775 }
 0xb5f   :  { %8798 = vmatpush3.msra.mxu0 %v1776_v30 }
 0xb60   :  { %8813 = vmatprep.subr.mxu0 %v9600_v0 }
 0xb68   :  { %v9414_v31 = vpop.eup %9413 }
 0xb69   :  { %v1773_v32 = vmul.f32 %v9414_v31, %v9408_v16  ;;  %v2059_v16 = vld [vmem:[#allocation7 + $0x2b8] sm:$0xff]  ;;  %v2069_v31 = vld [vmem:[#allocation7 + $0x2e8] sm:$0xff] }
 0xb6b   :  { %v1774_v33 = vadd.f32 1e-06, %v1773_v32  ;;  %v2068_v32 = vld [vmem:[#allocation7 + $0x2e0] sm:$0xff] }
 0xb6d   :  { %8800 = vmatmul.mubr.msk.f32.vlgmr.msra.gmra.mxu0 %vm535_vm3, %v1774_v33  ;;  %v2067_v33 = vld [vmem:[#allocation7 + $0x2d8] sm:$0xff] }
 0xb6e   :  { %8821 = vmatprep.mubr.msk.f32.mxu0 %vm9601_vm1, %v9600_v0  ;;  %8814 = vmatpush3.msra.mxu0 %v1950_v63 }
 0xb6f   :  { %8815 = vmatprep.subr.mxu0 %v9600_v0 }
 0xb70   :  { %8816 = vmatpush3.msra.mxu0 %v1949_v1 }
 0xb71   :  { %8817 = vmatprep.subr.mxu0 %v9600_v0 }
 0xb72   :  { %8818 = vmatpush3.msra.mxu0 %v1948_v2 }
 0xb73   :  { %8819 = vmatprep.subr.mxu0 %v9600_v0 }
 0xb86   :  { %v1348_v34 = vpop.f32.mrf.mxu0 }
 0xb88   :  { %v8771_v35 = vpop.f32.mrf.mxu0 }
 0xb89   :  { %v2070_v35 = vld [vmem:[#allocation7 + $0x260] sm:$0xff] }
 0xbf8   :  { %v1515_v39 = vpop.f32.mrf.mxu0 }
 0xbf9   :  { %1852 = vrot.lane.b32.xlu1 %v1515_v39, %s9598_s18 }
 0xbfa   :  { %v8781_v40 = vpop.f32.mrf.mxu0 }
 0xbfc   :  { %v1681_v41 = vpop.f32.mrf.mxu0 }
 0xbfd   :  { %1856 = vrot.lane.b32.xlu0 %v1681_v41, %s9605_s29 }
 0xbfe   :  { %v8791_v42 = vpop.f32.mrf.mxu0 }
 0xc2d   :  { %v1847_v44 = vpop.f32.mrf.mxu0 }
 0xc2e   :  { %1860 = vrot.lane.b32.xlu1 %v1847_v44, %s9606_s30  ;;  %v2071_v44 = vld [vmem:[#allocation7 + $0x268] sm:$0xff] }
 0xc2f   :  { %v8801_v45 = vpop.f32.mrf.mxu0 }
 0xc6b   :  { %v1853_v46 = vpop.permute.xlu1 %1852 }
 0xc6c   :  { %v1863_v48 = vsel %vm535_vm3, %v1348_v34, %v1853_v46  ;;  %v2066_v34 = vld [vmem:[#allocation7 + $0x2d0] sm:$0xff] }
 0xc6f   :  { %v1857_v47 = vpop.permute.xlu0 %1856 }
 0xc70   :  { %v1864_v49 = vsel %vm312_vm2, %v1863_v48, %v1857_v47 }
 0xca0   :  { %v1861_v50 = vpop.permute.xlu1 %1860 }
 0xca1   :  { %v1866_v51 = vsel %vm1865_vm4, %v1864_v49, %v1861_v50 }
 0xca2   :  { %8811 = vmatmul.mubr.msk.f32.vlgmr.msra.gmra.mxu1 %vm82_vm0, %v1866_v51 }
 0xca3   :  { %8832 = vmatprep.mubr.msk.f32.mxu1 %vm9601_vm1, %v9600_v0  ;;  %8825 = vmatpush3.msra.mxu1 %v2061_v12 }
 0xca4   :  { %8826 = vmatprep.subr.mxu1 %v9600_v0 }
 0xca5   :  { %8827 = vmatpush3.msra.mxu1 %v2060_v14 }
 0xca6   :  { %8828 = vmatprep.subr.mxu1 %v9600_v0 }
 0xca7   :  { %8829 = vmatpush3.msra.mxu1 %v2059_v16 }
 0xca8   :  { %8830 = vmatprep.subr.mxu1 %v9600_v0 }
 0xca9   :  { %8831 = vmatpush3.msra.mxu1 %v2058_v18 }
 0xcaa   :  { %8846 = vmatprep.subr.mxu1 %v9600_v0 }
 0xd62   :  { %v1940_v53 = vpop.f32.mrf.mxu1 }
 0xd63   :  { %v1941_v54 = vadd.f32 %v8200_v52, %v1940_v53 }
 0xd64   :  { %v8812_v55 = vpop.f32.mrf.mxu1 }
 0xd65   :  { %v9808_v56 = vadd.f32 %v1941_v54, %v9715_v22  ;;  %v1947_v22 = vld [vmem:[#allocation7 + $0x238] sm:$0xff] }
 0xd66   :  { %8820 = vmatpush3.msra.mxu0 %v1947_v22 }
 0xd67   :  { %v1952_v57 = vsel %vm82_vm0, %v9808_v56, 0.0  ;;  %8835 = vmatprep.subr.mxu0 %v9600_v0 }
 0xd68   :  { %1953 = vadd.xlane.f32.xlu0 %v1952_v57 }
 0xdf1   :  { %v1954_v58 = vpop.xlane.xlu0 %1953 }
 0xdf2   :  { %v1955_v59 = vmul.f32 0.03125, %v1954_v58 }
 0xdf4   :  { %v1956_v60 = vsub.f32 %v9808_v56, %v1955_v59 }
 0xdf6   :  { %v1957_v61 = vmul.f32 %v1956_v60, %v1956_v60 }
 0xdf8   :  { %v1958_v62 = vsel %vm82_vm0, %v1957_v61, 0.0 }
 0xdf9   :  { %1959 = vadd.xlane.f32.xlu1 %v1958_v62 }
 0xe82   :  { %v1960_v3 = vpop.xlane.xlu1 %1959 }
 0xe83   :  { %v1961_v4 = vmul.f32 0.03125, %v1960_v3 }
 0xe85   :  { %v1962_v5 = vadd.f32 1e-05, %v1961_v4 }
 0xe87   :  { %9415 = vrsqrt.f32 %v1962_v5 }
 0xe94   :  { %v9416_v6 = vpop.eup %9415 }
 0xe95   :  { %v1964_v8 = vmul.f32 %v9416_v6, %v1956_v60 }
 0xe97   :  { %v1969_v10 = vmul.f32 %v8202_v7, %v1964_v8 }
 0xe99   :  { %v1974_v11 = vadd.f32 %v8203_v9, %v1969_v10 }
 0xe9b   :  { %8822 = vmatmul.mubr.msk.f32.vlgmr.msra.gmra.mxu0 %vm82_vm0, %v1974_v11 }
 0xe9c   :  { %8843 = vmatprep.mubr.msk.f32.mxu0 %vm9601_vm1, %v9600_v0  ;;  %8836 = vmatpush3.msra.mxu0 %v2065_v13 }
 0xe9d   :  { %8837 = vmatprep.subr.mxu0 %v9600_v0 }
 0xe9e   :  { %8838 = vmatpush3.msra.mxu0 %v2064_v15 }
 0xe9f   :  { %8839 = vmatprep.subr.mxu0 %v9600_v0 }
 0xea0   :  { %8840 = vmatpush3.msra.mxu0 %v2063_v17 }
 0xea1   :  { %8841 = vmatprep.subr.mxu0 %v9600_v0 }
 0xea2   :  { %8842 = vmatpush3.msra.mxu0 %v2062_v19 }
 0xea3   :  { %8857 = vmatprep.subr.mxu0 %v9600_v0 }
 0xf5b   :  { %v2048_v21 = vpop.f32.mrf.mxu0 }
 0xf5c   :  { %v2049_v23 = vadd.f32 %v8204_v20, %v2048_v21 }
 0xf5d   :  { %v8823_v24 = vpop.f32.mrf.mxu0 }
 0xf5e   :  { %v2053_v25 = vmul.f32 0.70710677, %v2049_v23  ;;  %v2052_v27 = vmul.f32 0.5, %v2049_v23 }
 0xf60   :  { %9417 = verf.f32 %v2053_v25 }
 0xf6d   :  { %v9418_v26 = vpop.eup %9417 }
 0xf6e   :  { %v2055_v28 = vadd.f32 1.0, %v9418_v26 }
 0xf70   :  { %v2056_v29 = vmul.f32 %v2055_v28, %v2052_v27 }
 0xf72   :  { %v9830_v30 = vadd.f32 %v2056_v29, %v9808_v56 }
 0xf74   :  { %8833 = vmatmul.mubr.msk.f32.vlgmr.msra.gmra.mxu1 %vm82_vm0, %v9830_v30  ;;  %8844 = vmatmul.mubr.msk.f32.vlgmr.msra.gmra.mxu0 %vm82_vm0, %v9830_v30 }
 0xf75   :  { %8847 = vmatpush3.msra.mxu1 %v2069_v31  ;;  %8854 = vmatprep.mubr.msk.f32.mxu1 %vm9601_vm1, %v9600_v0 }
 0xf76   :  { %8848 = vmatprep.subr.mxu1 %v9600_v0  ;;  %8859 = vmatprep.mubr.msk.f32.mxu0 %vm9601_vm1, %v9600_v0 }
 0xf77   :  { %8849 = vmatpush3.msra.mxu1 %v2068_v32 }
 0xf78   :  { %8850 = vmatprep.subr.mxu1 %v9600_v0 }
 0xf79   :  { %8851 = vmatpush3.msra.mxu1 %v2067_v33 }
 0xf7a   :  { %8852 = vmatprep.subr.mxu1 %v9600_v0 }
 0xf7b   :  { %8853 = vmatpush3.msra.mxu1 %v2066_v34 }
 0xf7c   :  { %8855 = vmatmul.mubr.msk.f32.vlgmr.msra.gmra.mxu1 %vm82_vm0, %v9830_v30  ;;  %8867 = vmatprep.subr.mxu1 %v9600_v0 }
 0xf7d   :  { %8869 = vmatprep.mubr.msk.f32.mxu1 %vm9601_vm1, %v9600_v0 }
0x1034   :  { %v2146_v36 = vpop.f32.mrf.mxu1  ;;  %v2216_v37 = vpop.f32.mrf.mxu0 }
0x1035   :  { %8858 = vmatpush3.msra.mxu0 %v2216_v37  ;;  %2597 = vrot.lane.b32.xlu1 %v2146_v36, %s9602_s0 }
0x1036   :  { %v8834_v38 = vpop.f32.mrf.mxu1  ;;  %v8845_v39 = vpop.f32.mrf.mxu0  ;;  %8860 = vmatmul.mubr.msk.f32.vlgmr.msra.gmra.mxu0 %vm535_vm3, %v2070_v35  ;;  %8862 = vmatprep.subr.mxu0 %v9600_v0 }
0x1037   :  { %8864 = vmatprep.mubr.msk.f32.mxu0 %vm9601_vm1, %v9600_v0 }
0x1039   :  { %2764 = vrot.lane.b32.xlu1 %v2146_v36, %s9603_s2 }
0x103c   :  { %v2286_v40 = vpop.f32.mrf.mxu1 }
0x103d   :  { %8863 = vmatpush3.msra.mxu0 %v2286_v40  ;;  %2930 = vrot.lane.b32.xlu1 %v2146_v36, %s9604_s28 }
0x103e   :  { %v8856_v41 = vpop.f32.mrf.mxu1  ;;  %8872 = vmatprep.subr.mxu0 %v9600_v0  ;;  %8865 = vmatmul.mubr.msk.f32.vlgmr.msra.gmra.mxu0 %vm535_vm3, %v2071_v44  ;;  %v2075_v44 = vld [vmem:[#allocation7 + $0x2a8] sm:$0xff] }
0x103f   :  { %8874 = vmatprep.mubr.msk.f32.mxu0 %vm9601_vm1, %v9600_v0 }
0x10a7   :  { %v2598_v45 = vpop.permute.xlu1 %2597 }
0x10ab   :  { %v2765_v48 = vpop.permute.xlu1 %2764 }
0x10af   :  { %v2931_v50 = vpop.permute.xlu1 %2930 }
0x10f6   :  { %v2359_v42 = vpop.f32.mrf.mxu0 }
0x10f7   :  { %2599 = vrot.lane.b32.xlu0 %v2359_v42, %s9602_s0  ;;  %8868 = vmatpush3.xpose.msk.msra.mxu1 %vm535_vm3, %v2359_v42 }
0x10f8   :  { %v8861_v43 = vpop.f32.mrf.mxu0  ;;  %8877 = vmatprep.subr.mxu1 %v9600_v0 }
0x10fa   :  { %8870 = vmatmul.mubr.msk.f32.vlgmr.msra.gmra.mxu1 %vm535_vm3, %v2146_v36 }
0x10fb   :  { %2766 = vrot.lane.b32.xlu0 %v2359_v42, %s9603_s2  ;;  %8879 = vmatprep.mubr.msk.f32.mxu1 %vm9601_vm1, %v9600_v0 }
0x10fe   :  { %v2432_v22 = vpop.f32.mrf.mxu0 }
0x10ff   :  { %2932 = vrot.lane.b32.xlu0 %v2359_v42, %s9604_s28  ;;  %8873 = vmatpush3.msra.mxu0 %v2432_v22 }
0x1100   :  { %v8866_v3 = vpop.f32.mrf.mxu0  ;;  %8882 = vmatprep.subr.mxu0 %v9600_v0 }
0x1169   :  { %v2600_v46 = vpop.permute.xlu0 %2599 }
0x116a   :  { %8878 = vmatpush3.xpose.msk.msra.mxu1 %vm535_vm3, %v2600_v46  ;;  %v2073_v46 = vld [vmem:[#allocation7 + $0x298] sm:$0xff] }
0x116b   :  { %8887 = vmatprep.subr.mxu1 %v9600_v0 }
0x116d   :  { %v2767_v47 = vpop.permute.xlu0 %2766  ;;  %8880 = vmatmul.mubr.msk.f32.vlgmr.msra.gmra.mxu1 %vm535_vm3, %v2598_v45  ;;  %v2074_v45 = vld [vmem:[#allocation7 + $0x2a0] sm:$0xff] }
0x116e   :  { %8888 = vmatpush3.xpose.msk.msra.mxu1 %vm535_vm3, %v2767_v47  ;;  %8889 = vmatprep.mubr.msk.f32.mxu1 %vm9601_vm1, %v9600_v0 }
0x116f   :  { %8897 = vmatprep.subr.mxu1 %v9600_v0 }
0x1171   :  { %v2933_v49 = vpop.permute.xlu0 %2932  ;;  %8890 = vmatmul.mubr.msk.f32.vlgmr.msra.gmra.mxu1 %vm535_vm3, %v2765_v48 }
0x1172   :  { %8898 = vmatpush3.xpose.msk.msra.mxu1 %vm535_vm3, %v2933_v49  ;;  %8899 = vmatprep.mubr.msk.f32.mxu1 %vm9601_vm1, %v9600_v0 }
0x1173   :  { %8907 = vmatprep.subr.mxu1 %v9600_v0 }
0x1175   :  { %8900 = vmatmul.mubr.msk.f32.vlgmr.msra.gmra.mxu1 %vm535_vm3, %v2931_v50 }
0x1176   :  { %8915 = vmatprep.mubr.msk.f32.mxu1 %vm9601_vm1, %v9600_v0  ;;  %8908 = vmatpush3.msra.mxu1 %v2075_v44 }
0x1177   :  { %8909 = vmatprep.subr.mxu1 %v9600_v0 }
0x1178   :  { %8910 = vmatpush3.msra.mxu1 %v2074_v45 }
0x1179   :  { %8911 = vmatprep.subr.mxu1 %v9600_v0 }
0x117a   :  { %8912 = vmatpush3.msra.mxu1 %v2073_v46  ;;  %v3314_v46 = vld [vmem:[#allocation7 + $0xc8] sm:$0xff] }
0x117b   :  { %8913 = vmatprep.subr.mxu1 %v9600_v0 }
0x11ba   :  { %v2508_v51 = vpop.f32.mrf.mxu1 }
0x11bb   :  { %v2512_v52 = vsel %vm535_vm3, %v2508_v51, -inf }
0x11bc   :  { %2513 = vmax.xlane.f32.xlu0 %v2512_v52  ;;  %v8871_v53 = vpop.f32.mrf.mxu1 }
0x122d   :  { %v2671_v54 = vpop.f32.mrf.mxu1 }
0x122e   :  { %v2675_v55 = vsel %vm535_vm3, %v2671_v54, -inf }
0x122f   :  { %2676 = vmax.xlane.f32.xlu1 %v2675_v55  ;;  %v8881_v56 = vpop.f32.mrf.mxu1 }
0x1231   :  { %v2838_v57 = vpop.f32.mrf.mxu1 }
0x1232   :  { %v2842_v58 = vsel %vm535_vm3, %v2838_v57, -inf }
0x1233   :  { %2843 = vmax.xlane.f32.xlu0 %v2842_v58  ;;  %v8891_v59 = vpop.f32.mrf.mxu1 }
0x1235   :  { %v3004_v60 = vpop.f32.mrf.mxu1 }
0x1236   :  { %v3008_v61 = vsel %vm535_vm3, %v3004_v60, -inf }
0x1237   :  { %3009 = vmax.xlane.f32.xlu0 %v3008_v61  ;;  %v8901_v62 = vpop.f32.mrf.mxu1 }
0x1245   :  { %v2514_v63 = vpop.xlane.xlu0 %2513 }
0x1246   :  { %v2515_v1 = vsub.f32 %v2508_v51, %v2514_v63  ;;  %v2072_v51 = vld [vmem:[#allocation7 + $0x290] sm:$0xff] }
0x1247   :  { %8914 = vmatpush3.msra.mxu1 %v2072_v51 }
0x1248   :  { %v2516_v2 = vmul.f32 1.442695, %v2515_v1  ;;  %8929 = vmatprep.subr.mxu1 %v9600_v0 }
0x124a   :  { %9419 = vpow2.f32 %v2516_v2 }
0x1257   :  { %v9420_v4 = vpop.eup %9419 }
0x1258   :  { %v2518_v5 = vsel %vm535_vm3, %v9420_v4, 0.0 }
0x1259   :  { %2519 = vadd.xlane.f32.xlu0 %v2518_v5 }
0x12b8   :  { %v2677_v6 = vpop.xlane.xlu1 %2676 }
0x12b9   :  { %v2678_v7 = vsub.f32 %v2671_v54, %v2677_v6 }
0x12bb   :  { %v2679_v8 = vmul.f32 1.442695, %v2678_v7  ;;  %v3194_v7 = vld [vmem:[#allocation7 + $0x320] sm:$0xff] }
0x12bc   :  { %v2844_v9 = vpop.xlane.xlu0 %2843 }
0x12bd   :  { %9421 = vpow2.f32 %v2679_v8  ;;  %v2845_v10 = vsub.f32 %v2838_v57, %v2844_v9  ;;  %v3193_v8 = vld [vmem:[#allocation7 + $0x318] sm:$0xff]  ;;  %v3192_v9 = vld [vmem:[#allocation7 + $0x310] sm:$0xff] }
0x12bf   :  { %v2846_v11 = vmul.f32 1.442695, %v2845_v10 }
0x12c0   :  { %v3010_v16 = vpop.xlane.xlu0 %3009 }
0x12c1   :  { %9423 = vpow2.f32 %v2846_v11  ;;  %v3011_v18 = vsub.f32 %v3004_v60, %v3010_v16  ;;  %v8223_v60 = vld [vmem:[#allocation7 + $0x258] ss:$0 sm:$0xff] }
0x12c2   :  { %v8226_v16 = vld [vmem:[#allocation7 + $0x2f8] ss:$0 sm:$0xff] }
0x12c3   :  { %v3012_v19 = vmul.f32 1.442695, %v3011_v18 }
0x12ca   :  { %v9422_v12 = vpop.eup %9421 }
0x12cb   :  { %v2681_v13 = vsel %vm535_vm3, %v9422_v12, 0.0 }
0x12cc   :  { %2682 = vadd.xlane.f32.xlu1 %v2681_v13 }
0x12ce   :  { %v9424_v14 = vpop.eup %9423 }
0x12cf   :  { %v2848_v15 = vsel %vm535_vm3, %v9424_v14, 0.0 }
0x12d0   :  { %2849 = vadd.xlane.f32.xlu0 %v2848_v15 }
0x12dd   :  { %2854 = vrot.lane.b32.xlu1 %v2432_v22, %s9603_s2 }
0x12e2   :  { %v2520_v17 = vpop.xlane.xlu0 %2519 }
0x12e3   :  { %9425 = vrcp.f32 %v2520_v17 }
0x12e4   :  { %9427 = vpow2.f32 %v3012_v19  ;;  %v3305_v19 = vld [vmem:[#allocation7 + $0x120] sm:$0xff] }
0x12e6   :  { %2688 = vrot.lane.b32.xlu0 %v2432_v22, %s9602_s0 }
0x12f0   :  { %v9426_v20 = vpop.eup %9425 }
0x12f1   :  { %v2522_v21 = vmul.f32 %v9426_v20, %v9420_v4  ;;  %v9428_v24 = vpop.eup %9427  ;;  %v3304_v20 = vld [vmem:[#allocation7 + $0x118] sm:$0xff] }
0x12f2   :  { %v3014_v25 = vsel %vm535_vm3, %v9428_v24, 0.0 }
0x12f3   :  { %v2523_v23 = vadd.f32 1e-06, %v2522_v21  ;;  %v3303_v21 = vld [vmem:[#allocation7 + $0x110] sm:$0xff] }
0x12f5   :  { %8875 = vmatmul.mubr.msk.f32.vlgmr.msra.gmra.mxu0 %vm535_vm3, %v2523_v23  ;;  %v3302_v23 = vld [vmem:[#allocation7 + $0x108] sm:$0xff] }
0x12f6   :  { %8884 = vmatprep.mubr.msk.f32.mxu0 %vm9601_vm1, %v9600_v0 }
0x1301   :  { %3015 = vadd.xlane.f32.xlu1 %v3014_v25  ;;  %v3309_v25 = vld [vmem:[#allocation7 + $0xf0] sm:$0xff] }
0x1312   :  { %3020 = vrot.lane.b32.xlu1 %v2432_v22, %s9604_s28 }
0x1355   :  { %v2683_v26 = vpop.xlane.xlu1 %2682 }
0x1356   :  { %9429 = vrcp.f32 %v2683_v26  ;;  %v3313_v26 = vld [vmem:[#allocation7 + $0x140] sm:$0xff] }
0x1359   :  { %v2850_v27 = vpop.xlane.xlu0 %2849  ;;  %v2855_v34 = vpop.permute.xlu1 %2854 }
0x135a   :  { %9431 = vrcp.f32 %v2850_v27  ;;  %v3308_v27 = vld [vmem:[#allocation7 + $0xe8] sm:$0xff] }
0x135d   :  { %v2689_v28 = vpop.permute.xlu0 %2688 }
0x135e   :  { %8883 = vmatpush3.msra.mxu0 %v2689_v28  ;;  %v3312_v28 = vld [vmem:[#allocation7 + $0x138] sm:$0xff] }
0x135f   :  { %8892 = vmatprep.subr.mxu0 %v9600_v0 }
0x1363   :  { %v9430_v29 = vpop.eup %9429 }
0x1364   :  { %v2685_v31 = vmul.f32 %v9430_v29, %v9422_v12  ;;  %v3307_v29 = vld [vmem:[#allocation7 + $0xe0] sm:$0xff] }
0x1366   :  { %v2686_v32 = vadd.f32 1e-06, %v2685_v31  ;;  %v3311_v31 = vld [vmem:[#allocation7 + $0x130] sm:$0xff] }
0x1367   :  { %v9432_v33 = vpop.eup %9431 }
0x1368   :  { %8885 = vmatmul.mubr.msk.f32.vlgmr.msra.gmra.mxu0 %vm535_vm3, %v2686_v32  ;;  %v2852_v35 = vmul.f32 %v9432_v33, %v9424_v14  ;;  %v8225_v14 = vld [vmem:[#allocation7 + $0x300] ss:$0 sm:$0xff]  ;;  %v3306_v32 = vld [vmem:[#allocation7 + $0xd8] sm:$0xff]  ;;  %v3310_v33 = vld [vmem:[#allocation7 + $0x128] sm:$0xff] }
0x1369   :  { %8893 = vmatpush3.msra.mxu0 %v2855_v34  ;;  %8894 = vmatprep.mubr.msk.f32.mxu0 %vm9601_vm1, %v9600_v0  ;;  %v8227_v34 = vld [vmem:[#allocation7 + $0x2f0] ss:$0 sm:$0xff] }
0x136a   :  { %v2853_v36 = vadd.f32 1e-06, %v2852_v35  ;;  %8902 = vmatprep.subr.mxu0 %v9600_v0 }
0x136c   :  { %8895 = vmatmul.mubr.msk.f32.vlgmr.msra.gmra.mxu0 %vm535_vm3, %v2853_v36 }
0x136d   :  { %8904 = vmatprep.mubr.msk.f32.mxu0 %vm9601_vm1, %v9600_v0 }
0x138a   :  { %v3016_v37 = vpop.xlane.xlu1 %3015 }
0x138b   :  { %9433 = vrcp.f32 %v3016_v37 }
0x138e   :  { %v3021_v38 = vpop.permute.xlu1 %3020 }
0x138f   :  { %8903 = vmatpush3.msra.mxu0 %v3021_v38 }
0x1390   :  { %8918 = vmatprep.subr.mxu0 %v9600_v0 }
0x1398   :  { %v9434_v39 = vpop.eup %9433 }
0x1399   :  { %v3018_v40 = vmul.f32 %v9434_v39, %v9428_v24  ;;  %v64_v24 = vld [vmem:[#allocation5] sm:$0xff] }
0x139b   :  { %v3019_v41 = vadd.f32 1e-06, %v3018_v40 }
0x139d   :  { %8905 = vmatmul.mubr.msk.f32.vlgmr.msra.gmra.mxu0 %vm535_vm3, %v3019_v41 }
0x139e   :  { %8926 = vmatprep.mubr.msk.f32.mxu0 %vm9601_vm1, %v9600_v0  ;;  %8919 = vmatpush3.msra.mxu0 %v3194_v7 }
0x139f   :  { %8920 = vmatprep.subr.mxu0 %v9600_v0 }
0x13a0   :  { %8921 = vmatpush3.msra.mxu0 %v3193_v8  ;;  %v8237_v8 = vld [vmem:[#allocation7 + $0xc0] ss:$0 sm:$0xff] }
0x13a1   :  { %8922 = vmatprep.subr.mxu0 %v9600_v0 }
0x13a2   :  { %8923 = vmatpush3.msra.mxu0 %v3192_v9 }
0x13a3   :  { %8924 = vmatprep.subr.mxu0 %v9600_v0 }
0x13b5   :  { %v2593_v42 = vpop.f32.mrf.mxu0 }
0x13b7   :  { %v8876_v43 = vpop.f32.mrf.mxu0 }
0x1428   :  { %v2760_v47 = vpop.f32.mrf.mxu0 }
0x1429   :  { %3097 = vrot.lane.b32.xlu1 %v2760_v47, %s9598_s18 }
0x142a   :  { %v8886_v48 = vpop.f32.mrf.mxu0 }
0x142c   :  { %v2926_v49 = vpop.f32.mrf.mxu0 }
0x142d   :  { %3101 = vrot.lane.b32.xlu0 %v2926_v49, %s9605_s29 }
0x142e   :  { %v8896_v50 = vpop.f32.mrf.mxu0 }
0x145d   :  { %v3092_v52 = vpop.f32.mrf.mxu0 }
0x145e   :  { %3105 = vrot.lane.b32.xlu1 %v3092_v52, %s9606_s30 }
0x145f   :  { %v8906_v53 = vpop.f32.mrf.mxu0 }
0x1460   :  { %v3315_v53 = vld [vmem:[#allocation7 + $0xd0] sm:$0xff] }
0x149b   :  { %v3098_v54 = vpop.permute.xlu1 %3097 }
0x149c   :  { %v3108_v56 = vsel %vm535_vm3, %v2593_v42, %v3098_v54 }
0x149f   :  { %v3102_v55 = vpop.permute.xlu0 %3101 }
0x14a0   :  { %v3109_v57 = vsel %vm312_vm2, %v3108_v56, %v3102_v55 }
0x14d0   :  { %v3106_v58 = vpop.permute.xlu1 %3105 }
0x14d1   :  { %v3110_v59 = vsel %vm1865_vm4, %v3109_v57, %v3106_v58 }
0x14d2   :  { %8916 = vmatmul.mubr.msk.f32.vlgmr.msra.gmra.mxu1 %vm82_vm0, %v3110_v59 }
0x14d3   :  { %8937 = vmatprep.mubr.msk.f32.mxu1 %vm9601_vm1, %v9600_v0  ;;  %8930 = vmatpush3.msra.mxu1 %v3305_v19  ;;  %v3922_v19 = vld [vmem:[#allocation7 + $0x168] sm:$0xff] }
0x14d4   :  { %8931 = vmatprep.subr.mxu1 %v9600_v0 }
0x14d5   :  { %8932 = vmatpush3.msra.mxu1 %v3304_v20  ;;  %v3921_v20 = vld [vmem:[#allocation7 + $0x160] sm:$0xff] }
0x14d6   :  { %8933 = vmatprep.subr.mxu1 %v9600_v0 }
0x14d7   :  { %8934 = vmatpush3.msra.mxu1 %v3303_v21 }
0x14d8   :  { %8935 = vmatprep.subr.mxu1 %v9600_v0 }
0x14d9   :  { %8936 = vmatpush3.msra.mxu1 %v3302_v23 }
0x14da   :  { %8951 = vmatprep.subr.mxu1 %v9600_v0  ;;  %8938 = vmatmul.mubr.msk.f32.vlgmr.msra.gmra.mxu1 %vm82_vm0, %v64_v24 }
0x14db   :  { %8952 = vmatpush3.msra.mxu1 %v3313_v26  ;;  %8959 = vmatprep.mubr.msk.f32.mxu1 %vm9601_vm1, %v9600_v0  ;;  %v8239_v26 = vld [vmem:[#allocation7 + $0x158] ss:$0 sm:$0xff] }
0x14dc   :  { %8953 = vmatprep.subr.mxu1 %v9600_v0 }
0x14dd   :  { %8954 = vmatpush3.msra.mxu1 %v3312_v28  ;;  %v8240_v28 = vld [vmem:[#allocation7 + $0x150] ss:$0 sm:$0xff] }
0x14de   :  { %8955 = vmatprep.subr.mxu1 %v9600_v0 }
0x14df   :  { %8956 = vmatpush3.msra.mxu1 %v3311_v31 }
0x14e0   :  { %8957 = vmatprep.subr.mxu1 %v9600_v0 }
0x14e1   :  { %8958 = vmatpush3.msra.mxu1 %v3310_v33  ;;  %v59_v33 = vld [vmem:[#allocation7 + $0x340] sm:$0xff] }
0x14e2   :  { %8972 = vmatprep.subr.mxu1 %v9600_v0 }
0x1592   :  { %v3184_v61 = vpop.f32.mrf.mxu1 }
0x1593   :  { %v3185_v62 = vadd.f32 %v8223_v60, %v3184_v61 }
0x1594   :  { %v8917_v63 = vpop.f32.mrf.mxu1 }
0x1595   :  { %v9923_v1 = vadd.f32 %v3185_v62, %v9830_v30  ;;  %v3191_v30 = vld [vmem:[#allocation7 + $0x308] sm:$0xff] }
0x1596   :  { %8925 = vmatpush3.msra.mxu0 %v3191_v30 }
0x1597   :  { %v3196_v2 = vsel %vm82_vm0, %v9923_v1, 0.0  ;;  %8940 = vmatprep.subr.mxu0 %v9600_v0 }
0x1598   :  { %3197 = vadd.xlane.f32.xlu0 %v3196_v2 }
0x159a   :  { %v3388_v44 = vpop.f32.mrf.mxu1 }
0x159c   :  { %v8939_v45 = vpop.f32.mrf.mxu1 }
0x1621   :  { %v3198_v22 = vpop.xlane.xlu0 %3197 }
0x1622   :  { %v3199_v3 = vmul.f32 0.03125, %v3198_v22 }
0x1624   :  { %v3200_v4 = vsub.f32 %v9923_v1, %v3199_v3 }
0x1626   :  { %v3201_v5 = vmul.f32 %v3200_v4, %v3200_v4 }
0x1628   :  { %v3202_v6 = vsel %vm82_vm0, %v3201_v5, 0.0  ;;  %v3316_v5 = vld [vmem:[#allocation7 + $0xf8] sm:$0xff] }
0x1629   :  { %3203 = vadd.xlane.f32.xlu1 %v3202_v6 }
0x16b2   :  { %v3204_v10 = vpop.xlane.xlu1 %3203 }
0x16b3   :  { %v3205_v11 = vmul.f32 0.03125, %v3204_v10 }
0x16b5   :  { %v3206_v12 = vadd.f32 1e-05, %v3205_v11 }
0x16b7   :  { %9435 = vrsqrt.f32 %v3206_v12 }
0x16c4   :  { %v9436_v13 = vpop.eup %9435 }
0x16c5   :  { %v3208_v15 = vmul.f32 %v9436_v13, %v3200_v4 }
0x16c7   :  { %v3213_v17 = vmul.f32 %v8225_v14, %v3208_v15 }
0x16c9   :  { %v3218_v18 = vadd.f32 %v8226_v16, %v3213_v17  ;;  %v3924_v17 = vld [vmem:[#allocation7 + $0x178] sm:$0xff] }
0x16cb   :  { %8927 = vmatmul.mubr.msk.f32.vlgmr.msra.gmra.mxu0 %vm82_vm0, %v3218_v18  ;;  %v3923_v18 = vld [vmem:[#allocation7 + $0x170] sm:$0xff] }
0x16cc   :  { %8948 = vmatprep.mubr.msk.f32.mxu0 %vm9601_vm1, %v9600_v0  ;;  %8941 = vmatpush3.msra.mxu0 %v3309_v25 }
0x16cd   :  { %8942 = vmatprep.subr.mxu0 %v9600_v0 }
0x16ce   :  { %8943 = vmatpush3.msra.mxu0 %v3308_v27 }
0x16cf   :  { %8944 = vmatprep.subr.mxu0 %v9600_v0 }
0x16d0   :  { %8945 = vmatpush3.msra.mxu0 %v3307_v29 }
0x16d1   :  { %8946 = vmatprep.subr.mxu0 %v9600_v0 }
0x16d2   :  { %8947 = vmatpush3.msra.mxu0 %v3306_v32  ;;  %v60_v32 = vld [vmem:[#allocation7 + $0x348] sm:$0xff] }
0x16d3   :  { %8962 = vmatprep.subr.mxu0 %v9600_v0 }
0x178b   :  { %v3292_v35 = vpop.f32.mrf.mxu0 }
0x178c   :  { %v3293_v36 = vadd.f32 %v8227_v34, %v3292_v35  ;;  %v58_v34 = vld [vmem:[#allocation7 + $0x338] sm:$0xff]  ;;  %v57_v35 = vld [vmem:[#allocation7 + $0x330] sm:$0xff] }
0x178d   :  { %v8928_v37 = vpop.f32.mrf.mxu0 }
0x178e   :  { %v3297_v38 = vmul.f32 0.70710677, %v3293_v36  ;;  %v3296_v40 = vmul.f32 0.5, %v3293_v36  ;;  %v4122_v36 = vld [vmem:[#allocation7 + $0x30] sm:$0xff]  ;;  %v8241_v37 = vld [vmem:[#allocation7 + $0x148] ss:$0 sm:$0xff] }
0x1790   :  { %9437 = verf.f32 %v3297_v38 }
0x179d   :  { %v9438_v39 = vpop.eup %9437 }
0x179e   :  { %v3299_v41 = vadd.f32 1.0, %v9438_v39 }
0x17a0   :  { %v3300_v42 = vmul.f32 %v3299_v41, %v3296_v40 }
0x17a2   :  { %v3301_v43 = vadd.f32 %v3300_v42, %v9923_v1  ;;  %v3317_v1 = vld [vmem:[#allocation7 + $0x100] sm:$0xff] }
0x17a4   :  { %8949 = vmatmul.mubr.msk.f32.vlgmr.msra.gmra.mxu0 %vm82_vm0, %v3301_v43  ;;  %8960 = vmatmul.mubr.msk.f32.vlgmr.msra.gmra.mxu1 %vm82_vm0, %v3301_v43 }
0x17a5   :  { %8964 = vmatprep.mubr.msk.f32.mxu0 %vm9601_vm1, %v9600_v0  ;;  %8974 = vmatprep.mubr.msk.f32.mxu1 %vm9601_vm1, %v9600_v0 }
0x1864   :  { %v3461_v47 = vpop.f32.mrf.mxu0  ;;  %v3531_v48 = vpop.f32.mrf.mxu1 }
0x1865   :  { %8963 = vmatpush3.msra.mxu0 %v3461_v47  ;;  %v4111_v47 = vld [vmem:[#allocation2 + $0x10] sm:$0xff] }
0x1866   :  { %v8950_v49 = vpop.f32.mrf.mxu0  ;;  %v8961_v50 = vpop.f32.mrf.mxu1  ;;  %8965 = vmatmul.mubr.msk.f32.vlgmr.msra.gmra.mxu0 %vm535_vm3, %v3314_v46  ;;  %8967 = vmatprep.subr.mxu0 %v9600_v0 }
0x1867   :  { %8968 = vmatpush3.msra.mxu0 %v3531_v48  ;;  %8969 = vmatprep.mubr.msk.f32.mxu0 %vm9601_vm1, %v9600_v0  ;;  %v4121_v48 = vld [vmem:[#allocation7 + $0x28] sm:$0xff]  ;;  %v4120_v49 = vld [vmem:[#allocation7 + $0x20] sm:$0xff]  ;;  %v4119_v50 = vld [vmem:[#allocation7 + $0x18] sm:$0xff] }
0x1868   :  { %8977 = vmatprep.subr.mxu0 %v9600_v0 }
0x186a   :  { %8970 = vmatmul.mubr.msk.f32.vlgmr.msra.gmra.mxu0 %vm535_vm3, %v3315_v53  ;;  %v4117_v53 = vld [vmem:[#allocation7 + $0x58] sm:$0xff] }
0x186b   :  { %8979 = vmatprep.mubr.msk.f32.mxu0 %vm9601_vm1, %v9600_v0 }
0x1926   :  { %v3604_v51 = vpop.f32.mrf.mxu0 }
0x1927   :  { %8973 = vmatpush3.xpose.msk.msra.mxu1 %vm312_vm2, %v3604_v51  ;;  %v4112_v51 = vld [vmem:[#allocation2 + $0x18] sm:$0xff] }
0x1928   :  { %v8966_v52 = vpop.f32.mrf.mxu0  ;;  %8982 = vmatprep.subr.mxu1 %v9600_v0 }
0x1929   :  { %v4118_v52 = vld [vmem:[#allocation7 + $0x60] sm:$0xff] }
0x192a   :  { %8975 = vmatmul.mubr.msk.f32.vlgmr.msra.gmra.mxu1 %vm312_vm2, %v3388_v44  ;;  %v3677_v62 = vpop.f32.mrf.mxu0 }
0x192b   :  { %8986 = vmatprep.mubr.msk.f32.mxu1 %vm9601_vm1, %v9600_v0  ;;  %8978 = vmatpush3.msra.mxu0 %v3677_v62 }
0x192c   :  { %v8971_v63 = vpop.f32.mrf.mxu0  ;;  %8989 = vmatprep.subr.mxu0 %v9600_v0  ;;  %8983 = vmatpush3.msra.mxu1 %v3317_v1 }
0x192d   :  { %8984 = vmatprep.subr.mxu1 %v9600_v0 }
0x192e   :  { %8985 = vmatpush3.msra.mxu1 %v3316_v5 }
0x192f   :  { %9000 = vmatprep.subr.mxu1 %v9600_v0 }
0x19ea   :  { %v3753_v54 = vpop.f32.mrf.mxu1 }
0x19eb   :  { %v3757_v55 = vsel %vm535_vm3, %v3753_v54, -inf }
0x19ec   :  { %3758 = vmax.xlane.f32.xlu0 %v3757_v55  ;;  %v8976_v56 = vpop.f32.mrf.mxu1  ;;  %v4115_v55 = vld [vmem:[#allocation7 + $0x48] sm:$0xff] }
0x19ed   :  { %v4126_v56 = vld [vmem:[#allocation7 + $0x80] sm:$0xff] }
0x1a75   :  { %v3759_v57 = vpop.xlane.xlu0 %3758 }
0x1a76   :  { %v3760_v58 = vsub.f32 %v3753_v54, %v3759_v57  ;;  %v4116_v54 = vld [vmem:[#allocation7 + $0x50] sm:$0xff]  ;;  %v4125_v57 = vld [vmem:[#allocation7 + $0x78] sm:$0xff] }
0x1a78   :  { %v3761_v59 = vmul.f32 1.442695, %v3760_v58  ;;  %v10003_v58 = vld [vmem:[#allocation7 + $0x180] sm:$0xff] }
0x1a7a   :  { %9439 = vpow2.f32 %v3761_v59  ;;  %v4124_v59 = vld [vmem:[#allocation7 + $0x70] sm:$0xff] }
0x1a87   :  { %v9440_v60 = vpop.eup %9439 }
0x1a88   :  { %v3763_v61 = vsel %vm535_vm3, %v9440_v60, 0.0 }
0x1a89   :  { %3764 = vadd.xlane.f32.xlu0 %v3763_v61  ;;  %v8243_v61 = vld [vmem:[#allocation7 + $0x328] ss:$0 sm:$0xff] }
0x1b12   :  { %v3765_v2 = vpop.xlane.xlu0 %3764 }
0x1b13   :  { %9441 = vrcp.f32 %v3765_v2 }
0x1b20   :  { %v9442_v22 = vpop.eup %9441 }
0x1b21   :  { %v3767_v3 = vmul.f32 %v9442_v22, %v9440_v60  ;;  %v4123_v60 = vld [vmem:[#allocation7 + $0x68] sm:$0xff] }
0x1b22   :  { %v4127_v22 = vld [vmem:[#allocation7 + $0x8] sm:$0xff] }
0x1b23   :  { %v3768_v4 = vadd.f32 1e-06, %v3767_v3 }
0x1b25   :  { %8980 = vmatmul.mubr.msk.f32.vlgmr.msra.gmra.mxu0 %vm535_vm3, %v3768_v4 }
0x1b26   :  { %8997 = vmatprep.mubr.msk.f32.mxu0 %vm9601_vm1, %v9600_v0  ;;  %8990 = vmatpush3.msra.mxu0 %v3924_v17 }
0x1b27   :  { %8991 = vmatprep.subr.mxu0 %v9600_v0 }
0x1b28   :  { %8992 = vmatpush3.msra.mxu0 %v3923_v18 }
0x1b29   :  { %8993 = vmatprep.subr.mxu0 %v9600_v0 }
0x1b2a   :  { %8994 = vmatpush3.msra.mxu0 %v3922_v19 }
0x1b2b   :  { %8995 = vmatprep.subr.mxu0 %v9600_v0 }
0x1b2c   :  { %8996 = vmatpush3.msra.mxu0 %v3921_v20  ;;  %v4130_v20 = vld [vmem:[#allocation7 + $0x40] sm:$0xff] }
0x1b2d   :  { %9011 = vmatprep.subr.mxu0 %v9600_v0 }
0x1be5   :  { %v3838_v6 = vpop.f32.mrf.mxu0 }
0x1be6   :  { %8987 = vmatmul.mubr.msk.f32.vlgmr.msra.gmra.mxu1 %vm312_vm2, %v3838_v6 }
0x1be7   :  { %v8981_v7 = vpop.f32.mrf.mxu0  ;;  %9008 = vmatprep.mubr.msk.f32.mxu1 %vm9601_vm1, %v9600_v0  ;;  %9001 = vmatpush3.msra.mxu1 %v60_v32 }
0x1be8   :  { %9002 = vmatprep.subr.mxu1 %v9600_v0 }
0x1be9   :  { %9003 = vmatpush3.msra.mxu1 %v59_v33 }
0x1bea   :  { %9004 = vmatprep.subr.mxu1 %v9600_v0 }
0x1beb   :  { %9005 = vmatpush3.msra.mxu1 %v58_v34 }
0x1bec   :  { %9006 = vmatprep.subr.mxu1 %v9600_v0 }
0x1bed   :  { %9007 = vmatpush3.msra.mxu1 %v57_v35 }
0x1bee   :  { %9022 = vmatprep.subr.mxu1 %v4122_v36 }
0x1ca6   :  { %v3915_v9 = vpop.f32.mrf.mxu1 }
0x1ca7   :  { %v3916_v30 = vadd.f32 %v8237_v8, %v3915_v9 }
0x1ca8   :  { %v8988_v10 = vpop.f32.mrf.mxu1 }
0x1ca9   :  { %v3926_v11 = vsel %vm82_vm0, %v3916_v30, 0.0 }
0x1caa   :  { %3927 = vadd.xlane.f32.xlu0 %v3926_v11 }
0x1d33   :  { %v3928_v12 = vpop.xlane.xlu0 %3927 }
0x1d34   :  { %v3929_v13 = vmul.f32 0.03125, %v3928_v12 }
0x1d36   :  { %v3930_v14 = vsub.f32 %v3916_v30, %v3929_v13 }
0x1d38   :  { %v3931_v15 = vmul.f32 %v3930_v14, %v3930_v14 }
0x1d3a   :  { %v3932_v16 = vsel %vm82_vm0, %v3931_v15, 0.0 }
0x1d3b   :  { %3933 = vadd.xlane.f32.xlu1 %v3932_v16 }
0x1dc4   :  { %v3934_v21 = vpop.xlane.xlu1 %3933 }
0x1dc5   :  { %v3935_v23 = vmul.f32 0.03125, %v3934_v21 }
0x1dc7   :  { %v3936_v24 = vadd.f32 1e-05, %v3935_v23 }
0x1dc9   :  { %9443 = vrsqrt.f32 %v3936_v24 }
0x1dd6   :  { %v9444_v25 = vpop.eup %9443 }
0x1dd7   :  { %v3938_v27 = vmul.f32 %v9444_v25, %v3930_v14 }
0x1dd9   :  { %v3943_v29 = vmul.f32 %v8239_v26, %v3938_v27  ;;  %v4129_v26 = vld [vmem:[#allocation7 + $0x38] sm:$0xff] }
0x1ddb   :  { %v3948_v31 = vadd.f32 %v8240_v28, %v3943_v29  ;;  %v8255_v29 = vld [vmem:[#allocation7] ss:$0 sm:$0xff] }
0x1ddd   :  { %8998 = vmatmul.mubr.msk.f32.vlgmr.msra.gmra.mxu0 %vm82_vm0, %v3948_v31 }
0x1dde   :  { %9019 = vmatprep.mubr.msk.f32.mxu0 %vm9601_vm1, %v9600_v0  ;;  %9012 = vmatpush3.msra.mxu0 %v4118_v52 }
0x1ddf   :  { %9013 = vmatprep.subr.mxu0 %v9600_v0 }
0x1de0   :  { %9014 = vmatpush3.msra.mxu0 %v4117_v53 }
0x1de1   :  { %9015 = vmatprep.subr.mxu0 %v9600_v0 }
0x1de2   :  { %9016 = vmatpush3.msra.mxu0 %v4116_v54  ;;  %v4859_v54 = vld [vmem:[#allocation7 + $0x1f8] sm:$0xff] }
0x1de3   :  { %9017 = vmatprep.subr.mxu0 %v9600_v0 }
0x1de4   :  { %9018 = vmatpush3.msra.mxu0 %v4115_v55  ;;  %v4863_v55 = vld [vmem:[#allocation7 + $0x1b8] sm:$0xff] }
0x1de5   :  { %9020 = vmatmul.mubr.msk.f32.vlgmr.msra.gmra.mxu0 %vm82_vm0, %v10003_v58  ;;  %9033 = vmatprep.subr.mxu0 %v4126_v56 }
0x1de6   :  { %9034 = vmatpush3.msra.mxu0 %v4126_v56  ;;  %9041 = vmatprep.mubr.msk.f32.mxu0 %vm82_vm0, %v4111_v47  ;;  %v4858_v56 = vld [vmem:[#allocation7 + $0x1f0] sm:$0xff] }
0x1de7   :  { %9035 = vmatprep.subr.mxu0 %v4125_v57 }
0x1de8   :  { %9036 = vmatpush3.msra.mxu0 %v4125_v57  ;;  %v4862_v57 = vld [vmem:[#allocation7 + $0x1b0] sm:$0xff] }
0x1de9   :  { %9037 = vmatprep.subr.mxu0 %v4124_v59 }
0x1dea   :  { %9038 = vmatpush3.msra.mxu0 %v4124_v59  ;;  %v4861_v59 = vld [vmem:[#allocation7 + $0x1a8] sm:$0xff] }
0x1deb   :  { %9039 = vmatprep.subr.mxu0 %v4123_v60 }
0x1dec   :  { %9040 = vmatpush3.msra.mxu0 %v4123_v60  ;;  %v4856_v60 = vld [vmem:[#allocation7 + $0x1e0] sm:$0xff] }
0x1ded   :  { %9042 = vmatmul.mubr.msk.f32.vlgmr.msra.gmra.mxu0 %vm82_vm0, %v4112_v51  ;;  %9058 = vmatprep.subr.mxu0 %v9600_v0 }
0x1dee   :  { %9060 = vmatprep.mubr.msk.f32.mxu0 %vm9601_vm1, %v9600_v0 }
0x1e9d   :  { %v4022_v38 = vpop.f32.mrf.mxu0 }
0x1e9e   :  { %v4023_v39 = vadd.f32 %v8241_v37, %v4022_v38 }
0x1e9f   :  { %v8999_v40 = vpop.f32.mrf.mxu0 }
0x1ea0   :  { %v4027_v41 = vmul.f32 0.70710677, %v4023_v39  ;;  %v4026_v43 = vmul.f32 0.5, %v4023_v39 }
0x1ea2   :  { %9445 = verf.f32 %v4027_v41  ;;  %v4748_v41 = vld [vmem:[#allocation7 + $0xb8] sm:$0xff] }
0x1ea5   :  { %v4198_v4 = vpop.f32.mrf.mxu0 }
0x1ea7   :  { %v9021_v5 = vpop.f32.mrf.mxu0 }
0x1ead   :  { %v9043_v6 = vpop.f32.mrf.mxu0 }
0x1eaf   :  { %v9446_v42 = vpop.eup %9445  ;;  %v4349_v7 = vpop.f32.mrf.mxu0 }
0x1eb0   :  { %v4029_v44 = vadd.f32 1.0, %v9446_v42  ;;  %v4747_v42 = vld [vmem:[#allocation7 + $0xb0] sm:$0xff] }
0x1eb2   :  { %v4030_v45 = vmul.f32 %v4029_v44, %v4026_v43  ;;  %v4746_v43 = vld [vmem:[#allocation7 + $0xa8] sm:$0xff]  ;;  %v4745_v44 = vld [vmem:[#allocation7 + $0xa0] sm:$0xff] }
0x1eb4   :  { %v4031_v46 = vadd.f32 %v4030_v45, %v3916_v30  ;;  %v4128_v30 = vld [vmem:[#allocation7 + $0x10] sm:$0xff] }
0x1eb6   :  { %9009 = vmatmul.mubr.msk.f32.vlgmr.msra.gmra.mxu1 %vm82_vm0, %v4031_v46 }
0x1eb7   :  { %9023 = vmatpush3.msra.mxu1 %v4122_v36  ;;  %9030 = vmatprep.mubr.msk.f32.mxu1 %vm82_vm0, %v4111_v47 }
0x1eb8   :  { %9024 = vmatprep.subr.mxu1 %v4121_v48 }
0x1eb9   :  { %9025 = vmatpush3.msra.mxu1 %v4121_v48 }
0x1eba   :  { %9026 = vmatprep.subr.mxu1 %v4120_v49 }
0x1ebb   :  { %9027 = vmatpush3.msra.mxu1 %v4120_v49  ;;  %v8257_v49 = vld [vmem:[#allocation7 + $0x98] ss:$0 sm:$0xff] }
0x1ebc   :  { %9028 = vmatprep.subr.mxu1 %v4119_v50 }
0x1ebd   :  { %9029 = vmatpush3.msra.mxu1 %v4119_v50 }
0x1ebe   :  { %9031 = vmatmul.mubr.msk.f32.vlgmr.msra.gmra.mxu1 %vm82_vm0, %v4112_v51  ;;  %9044 = vmatprep.subr.mxu1 %v9600_v0  ;;  %v8258_v51 = vld [vmem:[#allocation7 + $0x90] ss:$0 sm:$0xff] }
0x1ebf   :  { %9048 = vmatprep.mubr.msk.f32.mxu1 %vm9601_vm1, %v9600_v0 }
0x1f76   :  { %v4105_v62 = vpop.f32.mrf.mxu1 }
0x1f77   :  { %v4106_v63 = vadd.f32 %v8243_v61, %v4105_v62  ;;  %v4860_v61 = vld [vmem:[#allocation7 + $0x1a0] sm:$0xff]  ;;  %v8259_v62 = vld [vmem:[#allocation7 + $0x88] ss:$0 sm:$0xff] }
0x1f78   :  { %v9010_v1 = vpop.f32.mrf.mxu1 }
0x1f79   :  { %4109 = vst [vmem:[#allocation8] sm:$0xff] %v4106_v63 }
0x1f7e   :  { %v9032_v2 = vpop.f32.mrf.mxu1 }
0x1f7f   :  { %9045 = vmatpush3.msra.mxu1 %v9032_v2 }
0x1f80   :  { %v4274_v3 = vpop.f32.mrf.mxu1  ;;  %9046 = vmatprep.subr.mxu1 %v9600_v0 }
0x1f81   :  { %9047 = vmatpush3.msra.mxu1 %v4274_v3 }
0x1f82   :  { %9049 = vmatmul.mubr.msk.f32.vlgmr.msra.gmra.mxu1 %vm312_vm2, %v4127_v22  ;;  %9051 = vmatprep.subr.mxu1 %v9600_v0 }
0x1f83   :  { %9055 = vmatprep.mubr.msk.f32.mxu1 %vm9601_vm1, %v9600_v0  ;;  %9052 = vmatpush3.msra.mxu1 %v9043_v6 }
0x1f84   :  { %9053 = vmatprep.subr.mxu1 %v9600_v0 }
0x1f85   :  { %9054 = vmatpush3.msra.mxu1 %v4349_v7 }
0x1f86   :  { %9063 = vmatprep.subr.mxu1 %v9600_v0  ;;  %9056 = vmatmul.mubr.msk.f32.vlgmr.msra.gmra.mxu1 %vm312_vm2, %v4128_v30  ;;  %v4865_v30 = vld [vmem:[#allocation7 + $0x208] sm:$0xff] }
0x1f87   :  { %9065 = vmatprep.mubr.msk.f32.mxu1 %vm9601_vm1, %v9600_v0 }
0x2042   :  { %v4427_v8 = vpop.f32.mrf.mxu1 }
0x2043   :  { %9059 = vmatpush3.xpose.msk.msra.mxu0 %vm312_vm2, %v4427_v8  ;;  %v4867_v8 = vld [vmem:[#allocation7 + $0x218] sm:$0xff] }
0x2044   :  { %v9050_v9 = vpop.f32.mrf.mxu1  ;;  %9068 = vmatprep.subr.mxu0 %v9600_v0 }
0x2045   :  { %v4866_v9 = vld [vmem:[#allocation7 + $0x210] sm:$0xff] }
0x2046   :  { %9061 = vmatmul.mubr.msk.f32.vlgmr.msra.gmra.mxu0 %vm312_vm2, %v4198_v4  ;;  %v4500_v18 = vpop.f32.mrf.mxu1 }
0x2047   :  { %9072 = vmatprep.mubr.msk.f32.mxu0 %vm9601_vm1, %v9600_v0  ;;  %9064 = vmatpush3.msra.mxu1 %v4500_v18 }
0x2048   :  { %v9057_v19 = vpop.f32.mrf.mxu1  ;;  %9075 = vmatprep.subr.mxu1 %v9600_v0  ;;  %9069 = vmatpush3.msra.mxu0 %v4130_v20  ;;  %v4869_v20 = vld [vmem:[#allocation7 + $0x198] sm:$0xff] }
0x2049   :  { %9070 = vmatprep.subr.mxu0 %v9600_v0 }
0x204a   :  { %9071 = vmatpush3.msra.mxu0 %v4129_v26 }
0x204b   :  { %9086 = vmatprep.subr.mxu0 %v9600_v0 }
0x2106   :  { %v4576_v10 = vpop.f32.mrf.mxu0 }
0x2107   :  { %v4580_v11 = vsel %vm535_vm3, %v4576_v10, -inf }
0x2108   :  { %4581 = vmax.xlane.f32.xlu0 %v4580_v11  ;;  %v9062_v12 = vpop.f32.mrf.mxu0  ;;  %v4868_v11 = vld [vmem:[#allocation7 + $0x190] sm:$0xff] }
0x2191   :  { %v4582_v13 = vpop.xlane.xlu0 %4581 }
0x2192   :  { %v4583_v14 = vsub.f32 %v4576_v10, %v4582_v13  ;;  %v4864_v10 = vld [vmem:[#allocation7 + $0x200] sm:$0xff] }
0x2194   :  { %v4584_v15 = vmul.f32 1.442695, %v4583_v14 }
0x2196   :  { %9447 = vpow2.f32 %v4584_v15 }
0x21a3   :  { %v9448_v16 = vpop.eup %9447 }
0x21a4   :  { %v4586_v17 = vsel %vm535_vm3, %v9448_v16, 0.0 }
0x21a5   :  { %4587 = vadd.xlane.f32.xlu1 %v4586_v17 }
0x222e   :  { %v4588_v21 = vpop.xlane.xlu1 %4587 }
0x222f   :  { %9449 = vrcp.f32 %v4588_v21 }
0x223c   :  { %v9450_v23 = vpop.eup %9449 }
0x223d   :  { %v4590_v24 = vmul.f32 %v9450_v23, %v9448_v16 }
0x223f   :  { %v4591_v25 = vadd.f32 1e-06, %v4590_v24 }
0x2241   :  { %9066 = vmatmul.mubr.msk.f32.vlgmr.msra.gmra.mxu1 %vm535_vm3, %v4591_v25 }
0x2242   :  { %9083 = vmatprep.mubr.msk.f32.mxu1 %vm9601_vm1, %v9600_v0  ;;  %9076 = vmatpush3.msra.mxu1 %v4748_v41 }
0x2243   :  { %9077 = vmatprep.subr.mxu1 %v9600_v0 }
0x2244   :  { %9078 = vmatpush3.msra.mxu1 %v4747_v42 }
0x2245   :  { %9079 = vmatprep.subr.mxu1 %v9600_v0 }
0x2246   :  { %9080 = vmatpush3.msra.mxu1 %v4746_v43 }
0x2247   :  { %9081 = vmatprep.subr.mxu1 %v9600_v0 }
0x2248   :  { %9082 = vmatpush3.msra.mxu1 %v4745_v44 }
0x2249   :  { %9097 = vmatprep.subr.mxu1 %v9600_v0 }
0x2301   :  { %v4661_v27 = vpop.f32.mrf.mxu1 }
0x2302   :  { %9073 = vmatmul.mubr.msk.f32.vlgmr.msra.gmra.mxu0 %vm312_vm2, %v4661_v27 }
0x2303   :  { %v9067_v28 = vpop.f32.mrf.mxu1  ;;  %9094 = vmatprep.mubr.msk.f32.mxu0 %vm9601_vm1, %v9600_v0  ;;  %9087 = vmatpush3.msra.mxu0 %v4859_v54 }
0x2304   :  { %9088 = vmatprep.subr.mxu0 %v9600_v0 }
0x2305   :  { %9089 = vmatpush3.msra.mxu0 %v4858_v56 }
0x2306   :  { %9090 = vmatprep.subr.mxu0 %v9600_v0 }
0x23c2   :  { %v4738_v31 = vpop.f32.mrf.mxu0 }
0x23c3   :  { %v4739_v32 = vadd.f32 %v8255_v29, %v4738_v31 }
0x23c4   :  { %v9074_v33 = vpop.f32.mrf.mxu0 }
0x23c5   :  { %v10039_v34 = vadd.f32 %v10003_v58, %v4739_v32  ;;  %v4857_v58 = vld [vmem:[#allocation7 + $0x1e8] sm:$0xff] }
0x23c6   :  { %9091 = vmatpush3.msra.mxu0 %v4857_v58 }
0x23c7   :  { %v4750_v35 = vsel %vm82_vm0, %v10039_v34, 0.0  ;;  %9092 = vmatprep.subr.mxu0 %v9600_v0 }
0x23c8   :  { %4751 = vadd.xlane.f32.xlu0 %v4750_v35  ;;  %9093 = vmatpush3.msra.mxu0 %v4856_v60 }
0x23c9   :  { %9108 = vmatprep.subr.mxu0 %v9600_v0 }
0x2451   :  { %v4752_v36 = vpop.xlane.xlu0 %4751 }
0x2452   :  { %v4753_v37 = vmul.f32 0.03125, %v4752_v36 }
0x2454   :  { %v4754_v38 = vsub.f32 %v10039_v34, %v4753_v37 }
0x2456   :  { %v4755_v39 = vmul.f32 %v4754_v38, %v4754_v38 }
0x2458   :  { %v4756_v40 = vsel %vm82_vm0, %v4755_v39, 0.0 }
0x2459   :  { %4757 = vadd.xlane.f32.xlu1 %v4756_v40 }
0x24e2   :  { %v4758_v45 = vpop.xlane.xlu1 %4757 }
0x24e3   :  { %v4759_v46 = vmul.f32 0.03125, %v4758_v45 }
0x24e5   :  { %v4760_v47 = vadd.f32 1e-05, %v4759_v46 }
0x24e7   :  { %9451 = vrsqrt.f32 %v4760_v47 }
0x24f4   :  { %v9452_v48 = vpop.eup %9451 }
0x24f5   :  { %v4762_v50 = vmul.f32 %v9452_v48, %v4754_v38 }
0x24f7   :  { %v4767_v52 = vmul.f32 %v8257_v49, %v4762_v50 }
0x24f9   :  { %v4772_v53 = vadd.f32 %v8258_v51, %v4767_v52 }
0x24fb   :  { %9084 = vmatmul.mubr.msk.f32.vlgmr.msra.gmra.mxu1 %vm82_vm0, %v4772_v53 }
0x24fc   :  { %9105 = vmatprep.mubr.msk.f32.mxu1 %vm9601_vm1, %v9600_v0  ;;  %9098 = vmatpush3.msra.mxu1 %v4863_v55 }
0x24fd   :  { %9099 = vmatprep.subr.mxu1 %v9600_v0 }
0x24fe   :  { %9100 = vmatpush3.msra.mxu1 %v4862_v57 }
0x24ff   :  { %9101 = vmatprep.subr.mxu1 %v9600_v0 }
0x2500   :  { %9102 = vmatpush3.msra.mxu1 %v4861_v59 }
0x2501   :  { %9103 = vmatprep.subr.mxu1 %v9600_v0 }
0x2502   :  { %9104 = vmatpush3.msra.mxu1 %v4860_v61 }
0x2503   :  { %9119 = vmatprep.subr.mxu1 %v9600_v0 }
0x25bb   :  { %v4846_v63 = vpop.f32.mrf.mxu1 }
0x25bc   :  { %v4847_v1 = vadd.f32 %v8259_v62, %v4846_v63 }
0x25bd   :  { %v9085_v2 = vpop.f32.mrf.mxu1 }
0x25be   :  { %v4851_v22 = vmul.f32 0.70710677, %v4847_v1  ;;  %v4850_v4 = vmul.f32 0.5, %v4847_v1 }
0x25c0   :  { %9453 = verf.f32 %v4851_v22 }
0x25cd   :  { %v9454_v3 = vpop.eup %9453 }
0x25ce   :  { %v4853_v5 = vadd.f32 1.0, %v9454_v3 }
0x25d0   :  { %v4854_v6 = vmul.f32 %v4853_v5, %v4850_v4 }
0x25d2   :  { %v10061_v7 = vadd.f32 %v4854_v6, %v10039_v34 }
0x25d4   :  { %9095 = vmatmul.mubr.msk.f32.vlgmr.msra.gmra.mxu0 %vm82_vm0, %v10061_v7  ;;  %9106 = vmatmul.mubr.msk.f32.vlgmr.msra.gmra.mxu1 %vm82_vm0, %v10061_v7 }
0x25d5   :  { %9109 = vmatpush3.msra.mxu0 %v4867_v8  ;;  %9116 = vmatprep.mubr.msk.f32.mxu0 %vm9601_vm1, %v9600_v0 }
0x25d6   :  { %9110 = vmatprep.subr.mxu0 %v9600_v0  ;;  %9121 = vmatprep.mubr.msk.f32.mxu1 %vm9601_vm1, %v9600_v0 }
0x25d7   :  { %9111 = vmatpush3.msra.mxu0 %v4866_v9 }
0x25d8   :  { %9112 = vmatprep.subr.mxu0 %v9600_v0 }
0x25d9   :  { %9113 = vmatpush3.msra.mxu0 %v4865_v30 }
0x25da   :  { %9114 = vmatprep.subr.mxu0 %v9600_v0 }
0x25db   :  { %9115 = vmatpush3.msra.mxu0 %v4864_v10 }
0x25dc   :  { %9117 = vmatmul.mubr.msk.f32.vlgmr.msra.gmra.mxu0 %vm82_vm0, %v10061_v7  ;;  %9124 = vmatprep.subr.mxu0 %v9600_v0 }
0x25dd   :  { %9126 = vmatprep.mubr.msk.f32.mxu0 %vm9601_vm1, %v9600_v0 }
0x2694   :  { %v4944_v12 = vpop.f32.mrf.mxu0  ;;  %v5014_v13 = vpop.f32.mrf.mxu1 }
0x2695   :  { %5395 = vrot.lane.b32.xlu1 %v4944_v12, %s9602_s0  ;;  %9120 = vmatpush3.msra.mxu1 %v5014_v13 }
0x2696   :  { %v9096_v14 = vpop.f32.mrf.mxu0  ;;  %v9107_v15 = vpop.f32.mrf.mxu1  ;;  %9122 = vmatmul.mubr.msk.f32.vlgmr.msra.gmra.mxu1 %vm535_vm3, %v4868_v11  ;;  %9129 = vmatprep.subr.mxu1 %v9600_v0 }
0x2697   :  { %9131 = vmatprep.mubr.msk.f32.mxu1 %vm9601_vm1, %v9600_v0 }
0x269c   :  { %v5084_v16 = vpop.f32.mrf.mxu0 }
0x269d   :  { %9125 = vmatpush3.msra.mxu0 %v5084_v16 }
0x269e   :  { %v9118_v17 = vpop.f32.mrf.mxu0  ;;  %9134 = vmatprep.subr.mxu0 %v9600_v0  ;;  %9127 = vmatmul.mubr.msk.f32.vlgmr.msra.gmra.mxu0 %vm535_vm3, %v4869_v20  ;;  %v4873_v20 = vld [vmem:[#allocation7 + $0x1d8] sm:$0xff] }
0x269f   :  { %9136 = vmatprep.mubr.msk.f32.mxu0 %vm9601_vm1, %v9600_v0 }
0x2707   :  { %v5396_v21 = vpop.permute.xlu1 %5395 }
0x2756   :  { %v5157_v18 = vpop.f32.mrf.mxu1 }
0x2757   :  { %5564 = vrot.lane.b32.xlu1 %v5157_v18, %s9603_s2  ;;  %5397 = vrot.lane.b32.xlu0 %v5157_v18, %s9602_s0 }
0x2758   :  { %9130 = vmatpush3.xpose.msk.msra.mxu1 %vm535_vm3, %v5157_v18  ;;  %v9123_v19 = vpop.f32.mrf.mxu1 }
0x2759   :  { %9139 = vmatprep.subr.mxu1 %v9600_v0 }
0x275b   :  { %9132 = vmatmul.mubr.msk.f32.vlgmr.msra.gmra.mxu1 %vm535_vm3, %v4944_v12  ;;  %5562 = vrot.lane.b32.xlu1 %v4944_v12, %s9603_s2 }
0x275c   :  { %5730 = vrot.lane.b32.xlu0 %v5157_v18, %s9604_s28  ;;  %9141 = vmatprep.mubr.msk.f32.mxu1 %vm9601_vm1, %v9600_v0 }
0x275e   :  { %v5230_v44 = vpop.f32.mrf.mxu0 }
0x275f   :  { %5728 = vrot.lane.b32.xlu1 %v4944_v12, %s9604_s28  ;;  %9135 = vmatpush3.msra.mxu0 %v5230_v44 }
0x2760   :  { %v9128_v45 = vpop.f32.mrf.mxu0  ;;  %9144 = vmatprep.subr.mxu0 %v9600_v0 }
0x27c9   :  { %v5565_v23 = vpop.permute.xlu1 %5564  ;;  %v5398_v24 = vpop.permute.xlu0 %5397 }
0x27ca   :  { %9140 = vmatpush3.xpose.msk.msra.mxu1 %vm535_vm3, %v5398_v24 }
0x27cb   :  { %9149 = vmatprep.subr.mxu1 %v9600_v0 }
0x27cd   :  { %9142 = vmatmul.mubr.msk.f32.vlgmr.msra.gmra.mxu1 %vm535_vm3, %v5396_v21  ;;  %v5563_v25 = vpop.permute.xlu1 %5562  ;;  %v4872_v21 = vld [vmem:[#allocation7 + $0x1d0] sm:$0xff] }
0x27ce   :  { %9150 = vmatpush3.xpose.msk.msra.mxu1 %vm535_vm3, %v5565_v23  ;;  %9151 = vmatprep.mubr.msk.f32.mxu1 %vm9601_vm1, %v9600_v0  ;;  %v5731_v26 = vpop.permute.xlu0 %5730  ;;  %v4871_v23 = vld [vmem:[#allocation7 + $0x1c8] sm:$0xff] }
0x27cf   :  { %9159 = vmatprep.subr.mxu1 %v9600_v0 }
0x27d1   :  { %9152 = vmatmul.mubr.msk.f32.vlgmr.msra.gmra.mxu1 %vm535_vm3, %v5563_v25  ;;  %v5729_v27 = vpop.permute.xlu1 %5728 }
0x27d2   :  { %9160 = vmatpush3.xpose.msk.msra.mxu1 %vm535_vm3, %v5731_v26  ;;  %9161 = vmatprep.mubr.msk.f32.mxu1 %vm9601_vm1, %v9600_v0 }
0x27d3   :  { %9169 = vmatprep.subr.mxu1 %v9600_v0 }
0x27d5   :  { %9162 = vmatmul.mubr.msk.f32.vlgmr.msra.gmra.mxu1 %vm535_vm3, %v5729_v27 }
0x27d6   :  { %9177 = vmatprep.mubr.msk.f32.mxu1 %vm9601_vm1, %v9600_v0  ;;  %9170 = vmatpush3.msra.mxu1 %v4873_v20 }
0x27d7   :  { %9171 = vmatprep.subr.mxu1 %v9600_v0 }
0x27d8   :  { %9172 = vmatpush3.msra.mxu1 %v4872_v21 }
0x27d9   :  { %9173 = vmatprep.subr.mxu1 %v9600_v0 }
0x27da   :  { %9174 = vmatpush3.msra.mxu1 %v4871_v23 }
0x27db   :  { %9175 = vmatprep.subr.mxu1 %v9600_v0 }
0x281b   :  { %v5306_v28 = vpop.f32.mrf.mxu1 }
0x281c   :  { %v5310_v29 = vsel %vm535_vm3, %v5306_v28, -inf }
0x281d   :  { %5311 = vmax.xlane.f32.xlu0 %v5310_v29  ;;  %v9133_v31 = vpop.f32.mrf.mxu1 }
0x288d   :  { %v5469_v32 = vpop.f32.mrf.mxu1 }
0x288e   :  { %v5473_v33 = vsel %vm535_vm3, %v5469_v32, -inf }
0x288f   :  { %5474 = vmax.xlane.f32.xlu1 %v5473_v33  ;;  %v9143_v34 = vpop.f32.mrf.mxu1 }
0x2891   :  { %v5636_v35 = vpop.f32.mrf.mxu1 }
0x2892   :  { %v5640_v36 = vsel %vm535_vm3, %v5636_v35, -inf }
0x2893   :  { %5641 = vmax.xlane.f32.xlu0 %v5640_v36  ;;  %v9153_v37 = vpop.f32.mrf.mxu1 }
0x2895   :  { %v5802_v38 = vpop.f32.mrf.mxu1 }
0x2896   :  { %v5806_v39 = vsel %vm535_vm3, %v5802_v38, -inf }
0x2897   :  { %5807 = vmax.xlane.f32.xlu0 %v5806_v39  ;;  %v9163_v40 = vpop.f32.mrf.mxu1 }
0x28a6   :  { %v5312_v41 = vpop.xlane.xlu0 %5311 }
0x28a7   :  { %v5313_v42 = vsub.f32 %v5306_v28, %v5312_v41  ;;  %v4870_v28 = vld [vmem:[#allocation7 + $0x1c0] sm:$0xff] }
0x28a8   :  { %9176 = vmatpush3.msra.mxu1 %v4870_v28 }
0x28a9   :  { %v5314_v43 = vmul.f32 1.442695, %v5313_v42  ;;  %9191 = vmatprep.subr.mxu1 %v9600_v0 }
0x28ab   :  { %9455 = vpow2.f32 %v5314_v43 }
0x28b8   :  { %v9456_v46 = vpop.eup %9455 }
0x28b9   :  { %v5316_v47 = vsel %vm535_vm3, %v9456_v46, 0.0 }
0x28ba   :  { %5317 = vadd.xlane.f32.xlu0 %v5316_v47 }
0x2918   :  { %v5475_v48 = vpop.xlane.xlu1 %5474 }
0x2919   :  { %v5476_v49 = vsub.f32 %v5469_v32, %v5475_v48 }
0x291b   :  { %v5477_v50 = vmul.f32 1.442695, %v5476_v49  ;;  %v5992_v49 = vld [vmem:[#allocation7 + $0x250] sm:$0xff] }
0x291c   :  { %v5642_v51 = vpop.xlane.xlu0 %5641 }
0x291d   :  { %9457 = vpow2.f32 %v5477_v50  ;;  %v5643_v52 = vsub.f32 %v5636_v35, %v5642_v51  ;;  %v5991_v50 = vld [vmem:[#allocation7 + $0x248] sm:$0xff]  ;;  %v5990_v51 = vld [vmem:[#allocation7 + $0x240] sm:$0xff] }
0x291f   :  { %v5644_v53 = vmul.f32 1.442695, %v5643_v52 }
0x2920   :  { %v5808_v58 = vpop.xlane.xlu0 %5807 }
0x2921   :  { %9459 = vpow2.f32 %v5644_v53  ;;  %v5809_v60 = vsub.f32 %v5802_v38, %v5808_v58  ;;  %v8278_v38 = vld [vmem:[#allocation7 + $0x188] ss:$0 sm:$0xff] }
0x2922   :  { %v8281_v58 = vld [vmem:[#allocation7 + $0x228] ss:$0 sm:$0xff] }
0x2923   :  { %v5810_v61 = vmul.f32 1.442695, %v5809_v60 }
0x292a   :  { %v9458_v54 = vpop.eup %9457 }
0x292b   :  { %v5479_v55 = vsel %vm535_vm3, %v9458_v54, 0.0 }
0x292c   :  { %5480 = vadd.xlane.f32.xlu1 %v5479_v55 }
0x292e   :  { %v9460_v56 = vpop.eup %9459 }
0x292f   :  { %v5646_v57 = vsel %vm535_vm3, %v9460_v56, 0.0 }
0x2930   :  { %5647 = vadd.xlane.f32.xlu0 %v5646_v57 }
0x293d   :  { %5652 = vrot.lane.b32.xlu1 %v5230_v44, %s9603_s2 }
0x2943   :  { %v5318_v59 = vpop.xlane.xlu0 %5317 }
0x2944   :  { %9461 = vrcp.f32 %v5318_v59 }
0x2945   :  { %9463 = vpow2.f32 %v5810_v61  ;;  %v6103_v61 = vld [vmem:[#allocation7 + $0x2c8] sm:$0xff] }
0x2946   :  { %5486 = vrot.lane.b32.xlu0 %v5230_v44, %s9602_s0 }
0x2951   :  { %v9462_v62 = vpop.eup %9461 }
0x2952   :  { %v5320_v63 = vmul.f32 %v9462_v62, %v9456_v46  ;;  %v9464_v2 = vpop.eup %9463  ;;  %v6107_v62 = vld [vmem:[#allocation7 + $0x288] sm:$0xff] }
0x2953   :  { %v5812_v22 = vsel %vm535_vm3, %v9464_v2, 0.0 }
0x2954   :  { %v5321_v1 = vadd.f32 1e-06, %v5320_v63  ;;  %v6102_v63 = vld [vmem:[#allocation7 + $0x2c0] sm:$0xff] }
0x2956   :  { %9137 = vmatmul.mubr.msk.f32.vlgmr.msra.gmra.mxu0 %vm535_vm3, %v5321_v1  ;;  %v6106_v1 = vld [vmem:[#allocation7 + $0x280] sm:$0xff] }
0x2957   :  { %9146 = vmatprep.mubr.msk.f32.mxu0 %vm9601_vm1, %v9600_v0 }
0x2961   :  { %5813 = vadd.xlane.f32.xlu1 %v5812_v22  ;;  %v6105_v22 = vld [vmem:[#allocation7 + $0x278] sm:$0xff] }
0x2972   :  { %5818 = vrot.lane.b32.xlu1 %v5230_v44, %s9604_s28 }
0x29b5   :  { %v5481_v3 = vpop.xlane.xlu1 %5480 }
0x29b6   :  { %9465 = vrcp.f32 %v5481_v3  ;;  %v6100_v3 = vld [vmem:[#allocation7 + $0x2b0] sm:$0xff] }
0x29b9   :  { %v5648_v4 = vpop.xlane.xlu0 %5647  ;;  %v5653_v10 = vpop.permute.xlu1 %5652 }
0x29ba   :  { %9467 = vrcp.f32 %v5648_v4  ;;  %v6104_v4 = vld [vmem:[#allocation7 + $0x270] sm:$0xff] }
0x29bd   :  { %v5487_v5 = vpop.permute.xlu0 %5486 }
0x29be   :  { %9145 = vmatpush3.msra.mxu0 %v5487_v5  ;;  %v8282_v5 = vld [vmem:[#allocation7 + $0x220] ss:$0 sm:$0xff] }
0x29bf   :  { %9154 = vmatprep.subr.mxu0 %v9600_v0 }
0x29c3   :  { %v9466_v6 = vpop.eup %9465 }
0x29c4   :  { %v5483_v8 = vmul.f32 %v9466_v6, %v9458_v54 }
0x29c6   :  { %v5484_v9 = vadd.f32 1e-06, %v5483_v8 }
0x29c7   :  { %v9468_v30 = vpop.eup %9467 }
0x29c8   :  { %9147 = vmatmul.mubr.msk.f32.vlgmr.msra.gmra.mxu0 %vm535_vm3, %v5484_v9  ;;  %v5650_v11 = vmul.f32 %v9468_v30, %v9460_v56  ;;  %v8280_v56 = vld [vmem:[#allocation7 + $0x230] ss:$0 sm:$0xff] }
0x29c9   :  { %9155 = vmatpush3.msra.mxu0 %v5653_v10  ;;  %9156 = vmatprep.mubr.msk.f32.mxu0 %vm9601_vm1, %v9600_v0 }
0x29ca   :  { %v5651_v12 = vadd.f32 1e-06, %v5650_v11  ;;  %9164 = vmatprep.subr.mxu0 %v9600_v0 }
0x29cc   :  { %9157 = vmatmul.mubr.msk.f32.vlgmr.msra.gmra.mxu0 %vm535_vm3, %v5651_v12 }
0x29cd   :  { %9166 = vmatprep.mubr.msk.f32.mxu0 %vm9601_vm1, %v9600_v0 }
0x29ea   :  { %v5814_v13 = vpop.xlane.xlu1 %5813 }
0x29eb   :  { %9469 = vrcp.f32 %v5814_v13 }
0x29ee   :  { %v5819_v14 = vpop.permute.xlu1 %5818 }
0x29ef   :  { %9165 = vmatpush3.msra.mxu0 %v5819_v14 }
0x29f0   :  { %9180 = vmatprep.subr.mxu0 %v9600_v0 }
0x29f8   :  { %v9470_v15 = vpop.eup %9469 }
0x29f9   :  { %v5816_v16 = vmul.f32 %v9470_v15, %v9464_v2  ;;  %v6101_v2 = vld [vmem:[#allocation7 + $0x2b8] sm:$0xff]  ;;  %v6111_v15 = vld [vmem:[#allocation7 + $0x2e8] sm:$0xff] }
0x29fb   :  { %v5817_v17 = vadd.f32 1e-06, %v5816_v16  ;;  %v6110_v16 = vld [vmem:[#allocation7 + $0x2e0] sm:$0xff] }
0x29fd   :  { %9167 = vmatmul.mubr.msk.f32.vlgmr.msra.gmra.mxu0 %vm535_vm3, %v5817_v17  ;;  %v6109_v17 = vld [vmem:[#allocation7 + $0x2d8] sm:$0xff] }
0x29fe   :  { %9188 = vmatprep.mubr.msk.f32.mxu0 %vm9601_vm1, %v9600_v0  ;;  %9181 = vmatpush3.msra.mxu0 %v5992_v49 }
0x29ff   :  { %9182 = vmatprep.subr.mxu0 %v9600_v0 }
0x2a00   :  { %9183 = vmatpush3.msra.mxu0 %v5991_v50 }
0x2a01   :  { %9184 = vmatprep.subr.mxu0 %v9600_v0 }
0x2a02   :  { %9185 = vmatpush3.msra.mxu0 %v5990_v51 }
0x2a03   :  { %9186 = vmatprep.subr.mxu0 %v9600_v0 }
0x2a16   :  { %v5391_v18 = vpop.f32.mrf.mxu0 }
0x2a18   :  { %v9138_v19 = vpop.f32.mrf.mxu0 }
0x2a19   :  { %v6112_v19 = vld [vmem:[#allocation7 + $0x260] sm:$0xff] }
0x2a88   :  { %v5558_v24 = vpop.f32.mrf.mxu0 }
0x2a89   :  { %5895 = vrot.lane.b32.xlu1 %v5558_v24, %s9598_s18 }
0x2a8a   :  { %v9148_v25 = vpop.f32.mrf.mxu0 }
0x2a8c   :  { %v5724_v26 = vpop.f32.mrf.mxu0 }
0x2a8d   :  { %5899 = vrot.lane.b32.xlu0 %v5724_v26, %s9605_s29 }
0x2a8e   :  { %v9158_v27 = vpop.f32.mrf.mxu0 }
0x2abd   :  { %v5890_v29 = vpop.f32.mrf.mxu0 }
0x2abe   :  { %5903 = vrot.lane.b32.xlu1 %v5890_v29, %s9606_s30  ;;  %v6113_v29 = vld [vmem:[#allocation7 + $0x268] sm:$0xff] }
0x2abf   :  { %v9168_v31 = vpop.f32.mrf.mxu0 }
0x2afb   :  { %v5896_v32 = vpop.permute.xlu1 %5895 }
0x2afc   :  { %v5906_v34 = vsel %vm535_vm3, %v5391_v18, %v5896_v32  ;;  %v6108_v18 = vld [vmem:[#allocation7 + $0x2d0] sm:$0xff] }
0x2aff   :  { %v5900_v33 = vpop.permute.xlu0 %5899 }
0x2b00   :  { %v5907_v35 = vsel %vm312_vm2, %v5906_v34, %v5900_v33 }
0x2b30   :  { %v5904_v36 = vpop.permute.xlu1 %5903 }
0x2b31   :  { %v5908_v37 = vsel %vm1865_vm4, %v5907_v35, %v5904_v36 }
0x2b32   :  { %9178 = vmatmul.mubr.msk.f32.vlgmr.msra.gmra.mxu1 %vm82_vm0, %v5908_v37 }
0x2b33   :  { %9199 = vmatprep.mubr.msk.f32.mxu1 %vm9601_vm1, %v9600_v0  ;;  %9192 = vmatpush3.msra.mxu1 %v6103_v61 }
0x2b34   :  { %9193 = vmatprep.subr.mxu1 %v9600_v0 }
0x2b35   :  { %9194 = vmatpush3.msra.mxu1 %v6102_v63 }
0x2b36   :  { %9195 = vmatprep.subr.mxu1 %v9600_v0 }
0x2b37   :  { %9196 = vmatpush3.msra.mxu1 %v6101_v2 }
0x2b38   :  { %9197 = vmatprep.subr.mxu1 %v9600_v0 }
0x2b39   :  { %9198 = vmatpush3.msra.mxu1 %v6100_v3 }
0x2b3a   :  { %9213 = vmatprep.subr.mxu1 %v9600_v0 }
0x2bf2   :  { %v5982_v39 = vpop.f32.mrf.mxu1 }
0x2bf3   :  { %v5983_v40 = vadd.f32 %v8278_v38, %v5982_v39 }
0x2bf4   :  { %v9179_v41 = vpop.f32.mrf.mxu1 }
0x2bf5   :  { %v10154_v42 = vadd.f32 %v5983_v40, %v10061_v7  ;;  %v5989_v7 = vld [vmem:[#allocation7 + $0x238] sm:$0xff] }
0x2bf6   :  { %9187 = vmatpush3.msra.mxu0 %v5989_v7 }
0x2bf7   :  { %v5994_v43 = vsel %vm82_vm0, %v10154_v42, 0.0  ;;  %9202 = vmatprep.subr.mxu0 %v9600_v0 }
0x2bf8   :  { %5995 = vadd.xlane.f32.xlu0 %v5994_v43 }
0x2c81   :  { %v5996_v44 = vpop.xlane.xlu0 %5995 }
0x2c82   :  { %v5997_v45 = vmul.f32 0.03125, %v5996_v44 }
0x2c84   :  { %v5998_v46 = vsub.f32 %v10154_v42, %v5997_v45 }
0x2c86   :  { %v5999_v47 = vmul.f32 %v5998_v46, %v5998_v46 }
0x2c88   :  { %v6000_v48 = vsel %vm82_vm0, %v5999_v47, 0.0 }
0x2c89   :  { %6001 = vadd.xlane.f32.xlu1 %v6000_v48 }
0x2d12   :  { %v6002_v52 = vpop.xlane.xlu1 %6001 }
0x2d13   :  { %v6003_v53 = vmul.f32 0.03125, %v6002_v52 }
0x2d15   :  { %v6004_v54 = vadd.f32 1e-05, %v6003_v53 }
0x2d17   :  { %9471 = vrsqrt.f32 %v6004_v54 }
0x2d24   :  { %v9472_v55 = vpop.eup %9471 }
0x2d25   :  { %v6006_v57 = vmul.f32 %v9472_v55, %v5998_v46 }
0x2d27   :  { %v6011_v59 = vmul.f32 %v8280_v56, %v6006_v57 }
0x2d29   :  { %v6016_v60 = vadd.f32 %v8281_v58, %v6011_v59 }
0x2d2b   :  { %9189 = vmatmul.mubr.msk.f32.vlgmr.msra.gmra.mxu0 %vm82_vm0, %v6016_v60 }
0x2d2c   :  { %9210 = vmatprep.mubr.msk.f32.mxu0 %vm9601_vm1, %v9600_v0  ;;  %9203 = vmatpush3.msra.mxu0 %v6107_v62 }
0x2d2d   :  { %9204 = vmatprep.subr.mxu0 %v9600_v0 }
0x2d2e   :  { %9205 = vmatpush3.msra.mxu0 %v6106_v1 }
0x2d2f   :  { %9206 = vmatprep.subr.mxu0 %v9600_v0 }
0x2d30   :  { %9207 = vmatpush3.msra.mxu0 %v6105_v22 }
0x2d31   :  { %9208 = vmatprep.subr.mxu0 %v9600_v0 }
0x2d32   :  { %9209 = vmatpush3.msra.mxu0 %v6104_v4 }
0x2d33   :  { %9224 = vmatprep.subr.mxu0 %v9600_v0 }
0x2deb   :  { %v6090_v6 = vpop.f32.mrf.mxu0 }
0x2dec   :  { %v6091_v8 = vadd.f32 %v8282_v5, %v6090_v6 }
0x2ded   :  { %v9190_v9 = vpop.f32.mrf.mxu0 }
0x2dee   :  { %v6095_v30 = vmul.f32 0.70710677, %v6091_v8  ;;  %v6094_v11 = vmul.f32 0.5, %v6091_v8 }
0x2df0   :  { %9473 = verf.f32 %v6095_v30 }
0x2dfd   :  { %v9474_v10 = vpop.eup %9473 }
0x2dfe   :  { %v6097_v12 = vadd.f32 1.0, %v9474_v10 }
0x2e00   :  { %v6098_v13 = vmul.f32 %v6097_v12, %v6094_v11 }
0x2e02   :  { %v10176_v14 = vadd.f32 %v6098_v13, %v10154_v42 }
0x2e04   :  { %9200 = vmatmul.mubr.msk.f32.vlgmr.msra.gmra.mxu1 %vm82_vm0, %v10176_v14  ;;  %9211 = vmatmul.mubr.msk.f32.vlgmr.msra.gmra.mxu0 %vm82_vm0, %v10176_v14 }
0x2e05   :  { %9214 = vmatpush3.msra.mxu1 %v6111_v15  ;;  %9221 = vmatprep.mubr.msk.f32.mxu1 %vm9601_vm1, %v9600_v0 }
0x2e06   :  { %9215 = vmatprep.subr.mxu1 %v9600_v0  ;;  %9226 = vmatprep.mubr.msk.f32.mxu0 %vm9601_vm1, %v9600_v0 }
0x2e07   :  { %9216 = vmatpush3.msra.mxu1 %v6110_v16 }
0x2e08   :  { %9217 = vmatprep.subr.mxu1 %v9600_v0 }
0x2e09   :  { %9218 = vmatpush3.msra.mxu1 %v6109_v17 }
0x2e0a   :  { %9219 = vmatprep.subr.mxu1 %v9600_v0 }
0x2e0b   :  { %9220 = vmatpush3.msra.mxu1 %v6108_v18 }
0x2e0c   :  { %9222 = vmatmul.mubr.msk.f32.vlgmr.msra.gmra.mxu1 %vm82_vm0, %v10176_v14  ;;  %9234 = vmatprep.subr.mxu1 %v9600_v0 }
0x2e0d   :  { %9236 = vmatprep.mubr.msk.f32.mxu1 %vm9601_vm1, %v9600_v0 }
0x2ec4   :  { %v6188_v20 = vpop.f32.mrf.mxu1  ;;  %v6258_v21 = vpop.f32.mrf.mxu0 }
0x2ec5   :  { %9225 = vmatpush3.msra.mxu0 %v6258_v21  ;;  %6639 = vrot.lane.b32.xlu1 %v6188_v20, %s9602_s0 }
0x2ec6   :  { %v9201_v23 = vpop.f32.mrf.mxu1  ;;  %v9212_v24 = vpop.f32.mrf.mxu0  ;;  %9227 = vmatmul.mubr.msk.f32.vlgmr.msra.gmra.mxu0 %vm535_vm3, %v6112_v19  ;;  %9229 = vmatprep.subr.mxu0 %v9600_v0 }
0x2ec7   :  { %9231 = vmatprep.mubr.msk.f32.mxu0 %vm9601_vm1, %v9600_v0 }
0x2ec9   :  { %6806 = vrot.lane.b32.xlu1 %v6188_v20, %s9603_s2 }
0x2ecc   :  { %v6328_v25 = vpop.f32.mrf.mxu1 }
0x2ecd   :  { %9230 = vmatpush3.msra.mxu0 %v6328_v25  ;;  %6972 = vrot.lane.b32.xlu1 %v6188_v20, %s9604_s28 }
0x2ece   :  { %v9223_v26 = vpop.f32.mrf.mxu1  ;;  %9239 = vmatprep.subr.mxu0 %v9600_v0  ;;  %9232 = vmatmul.mubr.msk.f32.vlgmr.msra.gmra.mxu0 %vm535_vm3, %v6113_v29  ;;  %v6117_v29 = vld [vmem:[#allocation7 + $0x2a8] sm:$0xff] }
0x2ecf   :  { %9241 = vmatprep.mubr.msk.f32.mxu0 %vm9601_vm1, %v9600_v0 }
0x2f37   :  { %v6640_v31 = vpop.permute.xlu1 %6639 }
0x2f3b   :  { %v6807_v34 = vpop.permute.xlu1 %6806 }
0x2f3f   :  { %v6973_v36 = vpop.permute.xlu1 %6972 }
0x2f86   :  { %v6401_v27 = vpop.f32.mrf.mxu0 }
0x2f87   :  { %6641 = vrot.lane.b32.xlu0 %v6401_v27, %s9602_s0  ;;  %9235 = vmatpush3.xpose.msk.msra.mxu1 %vm535_vm3, %v6401_v27 }
0x2f88   :  { %v9228_v28 = vpop.f32.mrf.mxu0  ;;  %9244 = vmatprep.subr.mxu1 %v9600_v0 }
0x2f8a   :  { %9237 = vmatmul.mubr.msk.f32.vlgmr.msra.gmra.mxu1 %vm535_vm3, %v6188_v20 }
0x2f8b   :  { %6808 = vrot.lane.b32.xlu0 %v6401_v27, %s9603_s2  ;;  %9246 = vmatprep.mubr.msk.f32.mxu1 %vm9601_vm1, %v9600_v0 }
0x2f8e   :  { %v6474_v7 = vpop.f32.mrf.mxu0 }
0x2f8f   :  { %6974 = vrot.lane.b32.xlu0 %v6401_v27, %s9604_s28  ;;  %9240 = vmatpush3.msra.mxu0 %v6474_v7 }
0x2f90   :  { %v9233_v52 = vpop.f32.mrf.mxu0  ;;  %9249 = vmatprep.subr.mxu0 %v9600_v0 }
0x2ff9   :  { %v6642_v32 = vpop.permute.xlu0 %6641 }
0x2ffa   :  { %9245 = vmatpush3.xpose.msk.msra.mxu1 %vm535_vm3, %v6642_v32  ;;  %v6115_v32 = vld [vmem:[#allocation7 + $0x298] sm:$0xff] }
0x2ffb   :  { %9254 = vmatprep.subr.mxu1 %v9600_v0 }
0x2ffd   :  { %v6809_v33 = vpop.permute.xlu0 %6808  ;;  %9247 = vmatmul.mubr.msk.f32.vlgmr.msra.gmra.mxu1 %vm535_vm3, %v6640_v31  ;;  %v6116_v31 = vld [vmem:[#allocation7 + $0x2a0] sm:$0xff] }
0x2ffe   :  { %9255 = vmatpush3.xpose.msk.msra.mxu1 %vm535_vm3, %v6809_v33  ;;  %9256 = vmatprep.mubr.msk.f32.mxu1 %vm9601_vm1, %v9600_v0 }
0x2fff   :  { %9264 = vmatprep.subr.mxu1 %v9600_v0 }
0x3001   :  { %v6975_v35 = vpop.permute.xlu0 %6974  ;;  %9257 = vmatmul.mubr.msk.f32.vlgmr.msra.gmra.mxu1 %vm535_vm3, %v6807_v34 }
0x3002   :  { %9265 = vmatpush3.xpose.msk.msra.mxu1 %vm535_vm3, %v6975_v35  ;;  %9266 = vmatprep.mubr.msk.f32.mxu1 %vm9601_vm1, %v9600_v0 }
0x3003   :  { %9274 = vmatprep.subr.mxu1 %v9600_v0 }
0x3005   :  { %9267 = vmatmul.mubr.msk.f32.vlgmr.msra.gmra.mxu1 %vm535_vm3, %v6973_v36 }
0x3006   :  { %9282 = vmatprep.mubr.msk.f32.mxu1 %vm9601_vm1, %v9600_v0  ;;  %9275 = vmatpush3.msra.mxu1 %v6117_v29 }
0x3007   :  { %9276 = vmatprep.subr.mxu1 %v9600_v0 }
0x3008   :  { %9277 = vmatpush3.msra.mxu1 %v6116_v31 }
0x3009   :  { %9278 = vmatprep.subr.mxu1 %v9600_v0 }
0x300a   :  { %9279 = vmatpush3.msra.mxu1 %v6115_v32  ;;  %v7356_v32 = vld [vmem:[#allocation7 + $0xc8] sm:$0xff] }
0x300b   :  { %9280 = vmatprep.subr.mxu1 %v9600_v0 }
0x304a   :  { %v6550_v37 = vpop.f32.mrf.mxu1 }
0x304b   :  { %v6554_v38 = vsel %vm535_vm3, %v6550_v37, -inf }
0x304c   :  { %6555 = vmax.xlane.f32.xlu0 %v6554_v38  ;;  %v9238_v39 = vpop.f32.mrf.mxu1 }
0x30bd   :  { %v6713_v40 = vpop.f32.mrf.mxu1 }
0x30be   :  { %v6717_v41 = vsel %vm535_vm3, %v6713_v40, -inf }
0x30bf   :  { %6718 = vmax.xlane.f32.xlu1 %v6717_v41  ;;  %v9248_v42 = vpop.f32.mrf.mxu1 }
0x30c1   :  { %v6880_v43 = vpop.f32.mrf.mxu1 }
0x30c2   :  { %v6884_v44 = vsel %vm535_vm3, %v6880_v43, -inf }
0x30c3   :  { %6885 = vmax.xlane.f32.xlu0 %v6884_v44  ;;  %v9258_v45 = vpop.f32.mrf.mxu1 }
0x30c5   :  { %v7046_v46 = vpop.f32.mrf.mxu1 }
0x30c6   :  { %v7050_v47 = vsel %vm535_vm3, %v7046_v46, -inf }
0x30c7   :  { %7051 = vmax.xlane.f32.xlu0 %v7050_v47  ;;  %v9268_v48 = vpop.f32.mrf.mxu1 }
0x30d5   :  { %v6556_v49 = vpop.xlane.xlu0 %6555 }
0x30d6   :  { %v6557_v50 = vsub.f32 %v6550_v37, %v6556_v49  ;;  %v6114_v37 = vld [vmem:[#allocation7 + $0x290] sm:$0xff] }
0x30d7   :  { %9281 = vmatpush3.msra.mxu1 %v6114_v37 }
0x30d8   :  { %v6558_v51 = vmul.f32 1.442695, %v6557_v50  ;;  %9296 = vmatprep.subr.mxu1 %v9600_v0 }
0x30da   :  { %9475 = vpow2.f32 %v6558_v51 }
0x30e7   :  { %v9476_v53 = vpop.eup %9475 }
0x30e8   :  { %v6560_v54 = vsel %vm535_vm3, %v9476_v53, 0.0 }
0x30e9   :  { %6561 = vadd.xlane.f32.xlu0 %v6560_v54 }
0x3148   :  { %v6719_v55 = vpop.xlane.xlu1 %6718 }
0x3149   :  { %v6720_v56 = vsub.f32 %v6713_v40, %v6719_v55 }
0x314b   :  { %v6721_v57 = vmul.f32 1.442695, %v6720_v56  ;;  %v7236_v56 = vld [vmem:[#allocation7 + $0x320] sm:$0xff] }
0x314c   :  { %v6886_v58 = vpop.xlane.xlu0 %6885 }
0x314d   :  { %9477 = vpow2.f32 %v6721_v57  ;;  %v6887_v59 = vsub.f32 %v6880_v43, %v6886_v58  ;;  %v7235_v57 = vld [vmem:[#allocation7 + $0x318] sm:$0xff]  ;;  %v7234_v58 = vld [vmem:[#allocation7 + $0x310] sm:$0xff] }
0x314f   :  { %v6888_v60 = vmul.f32 1.442695, %v6887_v59 }
0x3150   :  { %v7052_v2 = vpop.xlane.xlu0 %7051 }
0x3151   :  { %9479 = vpow2.f32 %v6888_v60  ;;  %v7053_v3 = vsub.f32 %v7046_v46, %v7052_v2  ;;  %v8301_v46 = vld [vmem:[#allocation7 + $0x258] ss:$0 sm:$0xff] }
0x3152   :  { %v8304_v2 = vld [vmem:[#allocation7 + $0x2f8] ss:$0 sm:$0xff] }
0x3153   :  { %v7054_v4 = vmul.f32 1.442695, %v7053_v3 }
0x315a   :  { %v9478_v61 = vpop.eup %9477 }
0x315b   :  { %v6723_v62 = vsel %vm535_vm3, %v9478_v61, 0.0 }
0x315c   :  { %6724 = vadd.xlane.f32.xlu1 %v6723_v62 }
0x315e   :  { %v9480_v63 = vpop.eup %9479 }
0x315f   :  { %v6890_v1 = vsel %vm535_vm3, %v9480_v63, 0.0 }
0x3160   :  { %6891 = vadd.xlane.f32.xlu0 %v6890_v1 }
0x316d   :  { %6896 = vrot.lane.b32.xlu1 %v6474_v7, %s9603_s2 }
0x3172   :  { %v6562_v22 = vpop.xlane.xlu0 %6561 }
0x3173   :  { %9481 = vrcp.f32 %v6562_v22 }
0x3174   :  { %9483 = vpow2.f32 %v7054_v4  ;;  %v7347_v4 = vld [vmem:[#allocation7 + $0x120] sm:$0xff] }
0x3176   :  { %6730 = vrot.lane.b32.xlu0 %v6474_v7, %s9602_s0 }
0x3180   :  { %v9482_v5 = vpop.eup %9481 }
0x3181   :  { %v6564_v6 = vmul.f32 %v9482_v5, %v9476_v53  ;;  %v9484_v9 = vpop.eup %9483  ;;  %v7346_v5 = vld [vmem:[#allocation7 + $0x118] sm:$0xff] }
0x3182   :  { %v7056_v30 = vsel %vm535_vm3, %v9484_v9, 0.0 }
0x3183   :  { %v6565_v8 = vadd.f32 1e-06, %v6564_v6  ;;  %v7345_v6 = vld [vmem:[#allocation7 + $0x110] sm:$0xff] }
0x3185   :  { %9242 = vmatmul.mubr.msk.f32.vlgmr.msra.gmra.mxu0 %vm535_vm3, %v6565_v8  ;;  %v7344_v8 = vld [vmem:[#allocation7 + $0x108] sm:$0xff] }
0x3186   :  { %9251 = vmatprep.mubr.msk.f32.mxu0 %vm9601_vm1, %v9600_v0 }
0x3191   :  { %7057 = vadd.xlane.f32.xlu1 %v7056_v30  ;;  %v7351_v30 = vld [vmem:[#allocation7 + $0xf0] sm:$0xff] }
0x31a2   :  { %7062 = vrot.lane.b32.xlu1 %v6474_v7, %s9604_s28 }
0x31e5   :  { %v6725_v10 = vpop.xlane.xlu1 %6724 }
0x31e6   :  { %9485 = vrcp.f32 %v6725_v10  ;;  %v7355_v10 = vld [vmem:[#allocation7 + $0x140] sm:$0xff] }
0x31e9   :  { %v6892_v11 = vpop.xlane.xlu0 %6891  ;;  %v6897_v18 = vpop.permute.xlu1 %6896 }
0x31ea   :  { %9487 = vrcp.f32 %v6892_v11  ;;  %v7350_v11 = vld [vmem:[#allocation7 + $0xe8] sm:$0xff] }
0x31ed   :  { %v6731_v12 = vpop.permute.xlu0 %6730 }
0x31ee   :  { %9250 = vmatpush3.msra.mxu0 %v6731_v12  ;;  %v7354_v12 = vld [vmem:[#allocation7 + $0x138] sm:$0xff] }
0x31ef   :  { %9259 = vmatprep.subr.mxu0 %v9600_v0 }
0x31f3   :  { %v9486_v13 = vpop.eup %9485 }
0x31f4   :  { %v6727_v15 = vmul.f32 %v9486_v13, %v9478_v61  ;;  %v7349_v13 = vld [vmem:[#allocation7 + $0xe0] sm:$0xff] }
0x31f6   :  { %v6728_v16 = vadd.f32 1e-06, %v6727_v15  ;;  %v7353_v15 = vld [vmem:[#allocation7 + $0x130] sm:$0xff] }
0x31f7   :  { %v9488_v17 = vpop.eup %9487 }
0x31f8   :  { %9252 = vmatmul.mubr.msk.f32.vlgmr.msra.gmra.mxu0 %vm535_vm3, %v6728_v16  ;;  %v6894_v19 = vmul.f32 %v9488_v17, %v9480_v63  ;;  %v8303_v63 = vld [vmem:[#allocation7 + $0x300] ss:$0 sm:$0xff]  ;;  %v7348_v16 = vld [vmem:[#allocation7 + $0xd8] sm:$0xff]  ;;  %v7352_v17 = vld [vmem:[#allocation7 + $0x128] sm:$0xff] }
0x31f9   :  { %9260 = vmatpush3.msra.mxu0 %v6897_v18  ;;  %9261 = vmatprep.mubr.msk.f32.mxu0 %vm9601_vm1, %v9600_v0  ;;  %v8305_v18 = vld [vmem:[#allocation7 + $0x2f0] ss:$0 sm:$0xff] }
0x31fa   :  { %v6895_v20 = vadd.f32 1e-06, %v6894_v19  ;;  %9269 = vmatprep.subr.mxu0 %v9600_v0 }
0x31fc   :  { %9262 = vmatmul.mubr.msk.f32.vlgmr.msra.gmra.mxu0 %vm535_vm3, %v6895_v20 }
0x31fd   :  { %9271 = vmatprep.mubr.msk.f32.mxu0 %vm9601_vm1, %v9600_v0 }
0x321a   :  { %v7058_v21 = vpop.xlane.xlu1 %7057 }
0x321b   :  { %9489 = vrcp.f32 %v7058_v21 }
0x321e   :  { %v7063_v23 = vpop.permute.xlu1 %7062 }
0x321f   :  { %9270 = vmatpush3.msra.mxu0 %v7063_v23 }
0x3220   :  { %9285 = vmatprep.subr.mxu0 %v9600_v0 }
0x3228   :  { %v9490_v24 = vpop.eup %9489 }
0x3229   :  { %v7060_v25 = vmul.f32 %v9490_v24, %v9484_v9  ;;  %v4114_v9 = vld [vmem:[#allocation5 + $0x8] sm:$0xff] }
0x322b   :  { %v7061_v26 = vadd.f32 1e-06, %v7060_v25 }
0x322d   :  { %9272 = vmatmul.mubr.msk.f32.vlgmr.msra.gmra.mxu0 %vm535_vm3, %v7061_v26 }
0x322e   :  { %9293 = vmatprep.mubr.msk.f32.mxu0 %vm9601_vm1, %v9600_v0  ;;  %9286 = vmatpush3.msra.mxu0 %v7236_v56 }
0x322f   :  { %9287 = vmatprep.subr.mxu0 %v9600_v0 }
0x3230   :  { %9288 = vmatpush3.msra.mxu0 %v7235_v57  ;;  %v9504_v57 = vld [vmem:[#allocation7 + $0x348] sm:$0xff] }
0x3231   :  { %9289 = vmatprep.subr.mxu0 %v9600_v0 }
0x3232   :  { %9290 = vmatpush3.msra.mxu0 %v7234_v58  ;;  %v9505_v58 = vld [vmem:[#allocation7 + $0x340] sm:$0xff] }
0x3233   :  { %9291 = vmatprep.subr.mxu0 %v9600_v0 }
0x3245   :  { %v6635_v27 = vpop.f32.mrf.mxu0 }
0x3247   :  { %v9243_v28 = vpop.f32.mrf.mxu0 }
0x32b8   :  { %v6802_v33 = vpop.f32.mrf.mxu0 }
0x32b9   :  { %7139 = vrot.lane.b32.xlu1 %v6802_v33, %s9598_s18 }
0x32ba   :  { %v9253_v34 = vpop.f32.mrf.mxu0 }
0x32bc   :  { %v6968_v35 = vpop.f32.mrf.mxu0 }
0x32bd   :  { %7143 = vrot.lane.b32.xlu0 %v6968_v35, %s9605_s29 }
0x32be   :  { %v9263_v36 = vpop.f32.mrf.mxu0 }
0x32ed   :  { %v7134_v38 = vpop.f32.mrf.mxu0 }
0x32ee   :  { %7147 = vrot.lane.b32.xlu1 %v7134_v38, %s9606_s30 }
0x32ef   :  { %v9273_v39 = vpop.f32.mrf.mxu0 }
0x32f0   :  { %v7357_v39 = vld [vmem:[#allocation7 + $0xd0] sm:$0xff] }
0x332b   :  { %v7140_v40 = vpop.permute.xlu1 %7139 }
0x332c   :  { %v7150_v42 = vsel %vm535_vm3, %v6635_v27, %v7140_v40 }
0x332f   :  { %v7144_v41 = vpop.permute.xlu0 %7143 }
0x3330   :  { %v7151_v43 = vsel %vm312_vm2, %v7150_v42, %v7144_v41 }
0x3360   :  { %v7148_v44 = vpop.permute.xlu1 %7147 }
0x3361   :  { %v7152_v45 = vsel %vm1865_vm4, %v7151_v43, %v7148_v44 }
0x3362   :  { %9283 = vmatmul.mubr.msk.f32.vlgmr.msra.gmra.mxu1 %vm82_vm0, %v7152_v45 }
0x3363   :  { %9304 = vmatprep.mubr.msk.f32.mxu1 %vm9601_vm1, %v9600_v0  ;;  %9297 = vmatpush3.msra.mxu1 %v7347_v4 }
0x3364   :  { %9298 = vmatprep.subr.mxu1 %v9600_v0 }
0x3365   :  { %9299 = vmatpush3.msra.mxu1 %v7346_v5 }
0x3366   :  { %9300 = vmatprep.subr.mxu1 %v9600_v0 }
0x3367   :  { %9301 = vmatpush3.msra.mxu1 %v7345_v6  ;;  %v7966_v6 = vld [vmem:[#allocation7 + $0x178] sm:$0xff] }
0x3368   :  { %9302 = vmatprep.subr.mxu1 %v9600_v0 }
0x3369   :  { %9303 = vmatpush3.msra.mxu1 %v7344_v8  ;;  %v7965_v8 = vld [vmem:[#allocation7 + $0x170] sm:$0xff] }
0x336a   :  { %9318 = vmatprep.subr.mxu1 %v9600_v0  ;;  %9305 = vmatmul.mubr.msk.f32.vlgmr.msra.gmra.mxu1 %vm82_vm0, %v4114_v9  ;;  %v7964_v9 = vld [vmem:[#allocation7 + $0x168] sm:$0xff] }
0x336b   :  { %9319 = vmatpush3.msra.mxu1 %v7355_v10  ;;  %9326 = vmatprep.mubr.msk.f32.mxu1 %vm9601_vm1, %v9600_v0 }
0x336c   :  { %9320 = vmatprep.subr.mxu1 %v9600_v0 }
0x336d   :  { %9321 = vmatpush3.msra.mxu1 %v7354_v12 }
0x336e   :  { %9322 = vmatprep.subr.mxu1 %v9600_v0 }
0x336f   :  { %9323 = vmatpush3.msra.mxu1 %v7353_v15  ;;  %v8317_v15 = vld [vmem:[#allocation7 + $0x158] ss:$0 sm:$0xff] }
0x3370   :  { %9324 = vmatprep.subr.mxu1 %v9600_v0 }
0x3371   :  { %9325 = vmatpush3.msra.mxu1 %v7352_v17  ;;  %v8318_v17 = vld [vmem:[#allocation7 + $0x150] ss:$0 sm:$0xff] }
0x3372   :  { %9339 = vmatprep.subr.mxu1 %v9600_v0 }
0x3422   :  { %v7226_v47 = vpop.f32.mrf.mxu1 }
0x3423   :  { %v7227_v48 = vadd.f32 %v8301_v46, %v7226_v47 }
0x3424   :  { %v9284_v49 = vpop.f32.mrf.mxu1 }
0x3425   :  { %v10269_v50 = vadd.f32 %v7227_v48, %v10176_v14  ;;  %v7233_v14 = vld [vmem:[#allocation7 + $0x308] sm:$0xff] }
0x3426   :  { %9292 = vmatpush3.msra.mxu0 %v7233_v14  ;;  %v9506_v14 = vld [vmem:[#allocation7 + $0x338] sm:$0xff] }
0x3427   :  { %v7238_v51 = vsel %vm82_vm0, %v10269_v50, 0.0  ;;  %9307 = vmatprep.subr.mxu0 %v9600_v0 }
0x3428   :  { %7239 = vadd.xlane.f32.xlu0 %v7238_v51 }
0x342a   :  { %v7430_v29 = vpop.f32.mrf.mxu1 }
0x342c   :  { %v9306_v31 = vpop.f32.mrf.mxu1 }
0x34b1   :  { %v7240_v7 = vpop.xlane.xlu0 %7239 }
0x34b2   :  { %v7241_v52 = vmul.f32 0.03125, %v7240_v7 }
0x34b4   :  { %v7242_v53 = vsub.f32 %v10269_v50, %v7241_v52 }
0x34b6   :  { %v7243_v54 = vmul.f32 %v7242_v53, %v7242_v53 }
0x34b8   :  { %v7244_v55 = vsel %vm82_vm0, %v7243_v54, 0.0  ;;  %v7358_v54 = vld [vmem:[#allocation7 + $0xf8] sm:$0xff] }
0x34b9   :  { %7245 = vadd.xlane.f32.xlu1 %v7244_v55 }
0x3542   :  { %v7246_v59 = vpop.xlane.xlu1 %7245 }
0x3543   :  { %v7247_v60 = vmul.f32 0.03125, %v7246_v59  ;;  %v9507_v59 = vld [vmem:[#allocation7 + $0x330] sm:$0xff] }
0x3545   :  { %v7248_v61 = vadd.f32 1e-05, %v7247_v60  ;;  %v8315_v60 = vld [vmem:[#allocation7 + $0xc0] ss:$0 sm:$0xff] }
0x3547   :  { %9491 = vrsqrt.f32 %v7248_v61 }
0x3554   :  { %v9492_v62 = vpop.eup %9491 }
0x3555   :  { %v7250_v1 = vmul.f32 %v9492_v62, %v7242_v53 }
0x3557   :  { %v7255_v22 = vmul.f32 %v8303_v63, %v7250_v1 }
0x3559   :  { %v7260_v3 = vadd.f32 %v8304_v2, %v7255_v22 }
0x355b   :  { %9294 = vmatmul.mubr.msk.f32.vlgmr.msra.gmra.mxu0 %vm82_vm0, %v7260_v3 }
0x355c   :  { %9315 = vmatprep.mubr.msk.f32.mxu0 %vm9601_vm1, %v9600_v0  ;;  %9308 = vmatpush3.msra.mxu0 %v7351_v30  ;;  %v7963_v30 = vld [vmem:[#allocation7 + $0x160] sm:$0xff] }
0x355d   :  { %9309 = vmatprep.subr.mxu0 %v9600_v0 }
0x355e   :  { %9310 = vmatpush3.msra.mxu0 %v7350_v11 }
0x355f   :  { %9311 = vmatprep.subr.mxu0 %v9600_v0 }
0x3560   :  { %9312 = vmatpush3.msra.mxu0 %v7349_v13 }
0x3561   :  { %9313 = vmatprep.subr.mxu0 %v9600_v0 }
0x3562   :  { %9314 = vmatpush3.msra.mxu0 %v7348_v16 }
0x3563   :  { %9329 = vmatprep.subr.mxu0 %v9600_v0 }
0x361b   :  { %v7334_v19 = vpop.f32.mrf.mxu0 }
0x361c   :  { %v7335_v20 = vadd.f32 %v8305_v18, %v7334_v19 }
0x361d   :  { %v9295_v21 = vpop.f32.mrf.mxu0 }
0x361e   :  { %v7339_v23 = vmul.f32 0.70710677, %v7335_v20  ;;  %v7338_v25 = vmul.f32 0.5, %v7335_v20  ;;  %v8319_v20 = vld [vmem:[#allocation7 + $0x148] ss:$0 sm:$0xff] }
0x3620   :  { %9493 = verf.f32 %v7339_v23 }
0x362d   :  { %v9494_v24 = vpop.eup %9493 }
0x362e   :  { %v7341_v26 = vadd.f32 1.0, %v9494_v24 }
0x3630   :  { %v7342_v27 = vmul.f32 %v7341_v26, %v7338_v25 }
0x3632   :  { %v7343_v28 = vadd.f32 %v7342_v27, %v10269_v50  ;;  %v7359_v50 = vld [vmem:[#allocation7 + $0x100] sm:$0xff] }
0x3634   :  { %9316 = vmatmul.mubr.msk.f32.vlgmr.msra.gmra.mxu0 %vm82_vm0, %v7343_v28  ;;  %9327 = vmatmul.mubr.msk.f32.vlgmr.msra.gmra.mxu1 %vm82_vm0, %v7343_v28 }
0x3635   :  { %9331 = vmatprep.mubr.msk.f32.mxu0 %vm9601_vm1, %v9600_v0  ;;  %9341 = vmatprep.mubr.msk.f32.mxu1 %vm9601_vm1, %v9600_v0 }
0x36f4   :  { %v7503_v33 = vpop.f32.mrf.mxu0  ;;  %v7573_v34 = vpop.f32.mrf.mxu1 }
0x36f5   :  { %9330 = vmatpush3.msra.mxu0 %v7503_v33 }
0x36f6   :  { %v9317_v35 = vpop.f32.mrf.mxu0  ;;  %v9328_v36 = vpop.f32.mrf.mxu1  ;;  %9332 = vmatmul.mubr.msk.f32.vlgmr.msra.gmra.mxu0 %vm535_vm3, %v7356_v32  ;;  %9334 = vmatprep.subr.mxu0 %v9600_v0  ;;  %v9508_v32 = vld [vmem:[#allocation7 + $0x328] ss:$0 sm:$0xff] }
0x36f7   :  { %9335 = vmatpush3.msra.mxu0 %v7573_v34  ;;  %9336 = vmatprep.mubr.msk.f32.mxu0 %vm9601_vm1, %v9600_v0 }
0x36f8   :  { %9344 = vmatprep.subr.mxu0 %v9600_v0 }
0x36fa   :  { %9337 = vmatmul.mubr.msk.f32.vlgmr.msra.gmra.mxu0 %vm535_vm3, %v7357_v39 }
0x36fb   :  { %9346 = vmatprep.mubr.msk.f32.mxu0 %vm9601_vm1, %v9600_v0 }
0x37b6   :  { %v7646_v37 = vpop.f32.mrf.mxu0 }
0x37b7   :  { %9340 = vmatpush3.xpose.msk.msra.mxu1 %vm312_vm2, %v7646_v37 }
0x37b8   :  { %v9333_v38 = vpop.f32.mrf.mxu0  ;;  %9349 = vmatprep.subr.mxu1 %v9600_v0 }
0x37ba   :  { %9342 = vmatmul.mubr.msk.f32.vlgmr.msra.gmra.mxu1 %vm312_vm2, %v7430_v29  ;;  %v7719_v48 = vpop.f32.mrf.mxu0 }
0x37bb   :  { %9353 = vmatprep.mubr.msk.f32.mxu1 %vm9601_vm1, %v9600_v0  ;;  %9345 = vmatpush3.msra.mxu0 %v7719_v48 }
0x37bc   :  { %v9338_v49 = vpop.f32.mrf.mxu0  ;;  %9356 = vmatprep.subr.mxu0 %v9600_v0  ;;  %9350 = vmatpush3.msra.mxu1 %v7359_v50 }
0x37bd   :  { %9351 = vmatprep.subr.mxu1 %v9600_v0 }
0x37be   :  { %9352 = vmatpush3.msra.mxu1 %v7358_v54 }
0x37bf   :  { %9367 = vmatprep.subr.mxu1 %v9600_v0 }
0x387a   :  { %v7795_v40 = vpop.f32.mrf.mxu1 }
0x387b   :  { %v7799_v41 = vsel %vm535_vm3, %v7795_v40, -inf }
0x387c   :  { %7800 = vmax.xlane.f32.xlu0 %v7799_v41  ;;  %v9343_v42 = vpop.f32.mrf.mxu1 }
0x3905   :  { %v7801_v43 = vpop.xlane.xlu0 %7800 }
0x3906   :  { %v7802_v44 = vsub.f32 %v7795_v40, %v7801_v43 }
0x3908   :  { %v7803_v45 = vmul.f32 1.442695, %v7802_v44 }
0x390a   :  { %9495 = vpow2.f32 %v7803_v45 }
0x3917   :  { %v9496_v46 = vpop.eup %9495 }
0x3918   :  { %v7805_v47 = vsel %vm535_vm3, %v9496_v46, 0.0 }
0x3919   :  { %7806 = vadd.xlane.f32.xlu0 %v7805_v47 }
0x39a2   :  { %v7807_v51 = vpop.xlane.xlu0 %7806 }
0x39a3   :  { %9497 = vrcp.f32 %v7807_v51 }
0x39b0   :  { %v9498_v7 = vpop.eup %9497 }
0x39b1   :  { %v7809_v52 = vmul.f32 %v9498_v7, %v9496_v46 }
0x39b3   :  { %v7810_v53 = vadd.f32 1e-06, %v7809_v52 }
0x39b5   :  { %9347 = vmatmul.mubr.msk.f32.vlgmr.msra.gmra.mxu0 %vm535_vm3, %v7810_v53 }
0x39b6   :  { %9364 = vmatprep.mubr.msk.f32.mxu0 %vm9601_vm1, %v9600_v0  ;;  %9357 = vmatpush3.msra.mxu0 %v7966_v6 }
0x39b7   :  { %9358 = vmatprep.subr.mxu0 %v9600_v0 }
0x39b8   :  { %9359 = vmatpush3.msra.mxu0 %v7965_v8 }
0x39b9   :  { %9360 = vmatprep.subr.mxu0 %v9600_v0 }
0x39ba   :  { %9361 = vmatpush3.msra.mxu0 %v7964_v9 }
0x39bb   :  { %9362 = vmatprep.subr.mxu0 %v9600_v0 }
0x39bc   :  { %9363 = vmatpush3.msra.mxu0 %v7963_v30 }
0x3a75   :  { %v7880_v55 = vpop.f32.mrf.mxu0 }
0x3a76   :  { %9354 = vmatmul.mubr.msk.f32.vlgmr.msra.gmra.mxu1 %vm312_vm2, %v7880_v55 }
0x3a77   :  { %v9348_v56 = vpop.f32.mrf.mxu0  ;;  %9368 = vmatpush3.msra.mxu1 %v9504_v57  ;;  %9375 = vmatprep.mubr.msk.f32.mxu1 %vm9601_vm1, %v9600_v0 }
0x3a78   :  { %9369 = vmatprep.subr.mxu1 %v9600_v0 }
0x3a79   :  { %9370 = vmatpush3.msra.mxu1 %v9505_v58 }
0x3a7a   :  { %9371 = vmatprep.subr.mxu1 %v9600_v0 }
0x3a7b   :  { %9372 = vmatpush3.msra.mxu1 %v9506_v14 }
0x3a7c   :  { %9373 = vmatprep.subr.mxu1 %v9600_v0 }
0x3a7d   :  { %9374 = vmatpush3.msra.mxu1 %v9507_v59 }
0x3b36   :  { %v7957_v61 = vpop.f32.mrf.mxu1 }
0x3b37   :  { %v7958_v62 = vadd.f32 %v8315_v60, %v7957_v61 }
0x3b38   :  { %v9355_v63 = vpop.f32.mrf.mxu1 }
0x3b39   :  { %v7968_v1 = vsel %vm82_vm0, %v7958_v62, 0.0 }
0x3b3a   :  { %7969 = vadd.xlane.f32.xlu0 %v7968_v1 }
0x3bc3   :  { %v7970_v2 = vpop.xlane.xlu0 %7969 }
0x3bc4   :  { %v7971_v22 = vmul.f32 0.03125, %v7970_v2 }
0x3bc6   :  { %v7972_v3 = vsub.f32 %v7958_v62, %v7971_v22 }
0x3bc8   :  { %v7973_v4 = vmul.f32 %v7972_v3, %v7972_v3 }
0x3bca   :  { %v7974_v5 = vsel %vm82_vm0, %v7973_v4, 0.0 }
0x3bcb   :  { %7975 = vadd.xlane.f32.xlu1 %v7974_v5 }
0x3c54   :  { %v7976_v10 = vpop.xlane.xlu1 %7975 }
0x3c55   :  { %v7977_v11 = vmul.f32 0.03125, %v7976_v10 }
0x3c57   :  { %v7978_v12 = vadd.f32 1e-05, %v7977_v11 }
0x3c59   :  { %9499 = vrsqrt.f32 %v7978_v12 }
0x3c66   :  { %v9500_v13 = vpop.eup %9499 }
0x3c67   :  { %v7980_v16 = vmul.f32 %v9500_v13, %v7972_v3 }
0x3c69   :  { %v7985_v18 = vmul.f32 %v8317_v15, %v7980_v16 }
0x3c6b   :  { %v7990_v19 = vadd.f32 %v8318_v17, %v7985_v18 }
0x3c6d   :  { %9365 = vmatmul.mubr.msk.f32.vlgmr.msra.gmra.mxu0 %vm82_vm0, %v7990_v19 }
0x3d2d   :  { %v8064_v21 = vpop.f32.mrf.mxu0 }
0x3d2e   :  { %v8065_v23 = vadd.f32 %v8319_v20, %v8064_v21 }
0x3d2f   :  { %v9366_v24 = vpop.f32.mrf.mxu0 }
0x3d30   :  { %v8069_v25 = vmul.f32 0.70710677, %v8065_v23  ;;  %v8068_v26 = vmul.f32 0.5, %v8065_v23 }
0x3d32   :  { %9501 = verf.f32 %v8069_v25 }
0x3d3f   :  { %v9502_v0 = vpop.eup %9501 }
0x3d40   :  { %v8071_v27 = vadd.f32 1.0, %v9502_v0 }
0x3d42   :  { %v8072_v28 = vmul.f32 %v8071_v27, %v8068_v26 }
0x3d44   :  { %v8073_v29 = vadd.f32 %v8072_v28, %v7958_v62 }
0x3d46   :  { %9376 = vmatmul.mubr.msk.f32.vlgmr.msra.gmra.mxu1 %vm82_vm0, %v8073_v29 }
0x3e06   :  { %v8143_v31 = vpop.f32.mrf.mxu1 }
0x3e07   :  { %v8144_v33 = vadd.f32 %v9508_v32, %v8143_v31 }
0x3e08   :  { %v9377_v34 = vpop.f32.mrf.mxu1 }
0x3e09   :  { %8148 = vst [vmem:[#allocation8 + $0x8] sm:$0xff] %v8144_v33 }
0x3e0a   :  { %9580 = shalt.err (!%p9577_p5)
}
0x3e0b   :  { %8160 = dma.vmem_to_hbm [thread:$0]  %s8155_s5, 256, %s10347_s3, [#allocation4], %s9597_s17, %s9597_s17, %s9598_s18  }
0x3e0c   :  { %9593 = dma.done.wait [#allocation4], 256  }
0x3e0d   :  { %9594 = vsyncadd [#allocation4], 4294967040 }
0x3e0e   :  { %8164 = vsyncpa [#allocation3], 1 }
0x3e0f   :  { %8165 = vsyncpa [#allocation6], 1 }
0x3e10   :  { %8166 = vsyncpa [#allocation4], 1 }

</bundles_post_ra>
